<compile_context>
chip_gen: v6e
topology: v6e:2x2x1
jax: 0.10.0
libtpu: 0.0.40
codegen_flags: <defaults>
</compile_context>

<pallas_src>
import jax
import jax.numpy as jnp
import numpy as np
from jax.experimental import pallas as pl
from jax.experimental.pallas import tpu as pltpu

F32 = jnp.float32
BF16 = jnp.bfloat16
_BN_EPS = 1e-5

# Conv blocks: (kernel, stride, padding, C_in, C_out).  Input length 2048.
_CONV_DEFS = [
    (64, 16, 28, 1, 32),
    (3, 1, 1, 32, 32),
    (3, 1, 1, 32, 64),
    (3, 1, 1, 64, 64),
    (3, 1, 1, 64, 64),
]

_PAD_ROW = 8   # activations live at sublane-aligned rows 8..L+7 of each scratch slab


# ------------------------------ Pallas kernel --------------------------------

def _store_padded(hin_ref, h, L):
    """Write h ([B, L, C]) at sublane-aligned rows 8..L+7 of hin_ref
    ([B, L+16, C]); zero the halo rows 7 and L+8 (k=3 conv zero padding)."""
    B, _, C = h.shape
    zrow = jnp.zeros((B, 1, C), F32)
    hin_ref[:, pl.ds(_PAD_ROW - 1, 1), :] = zrow
    hin_ref[:, pl.ds(_PAD_ROW + L, 1), :] = zrow
    hin_ref[:, pl.ds(_PAD_ROW, L), :] = h


def _conv3_block(hin_ref, w_ref, sh_ref, L):
    """Conv1d(k=3,s=1,p=1) + folded-BN shift + ReLU + MaxPool1d(2,2), batched.

    hin_ref: [B, L+16, C_in] f32 scratch; data rows 8..L+7, zero rows 7 and L+8.
    w_ref:   [3*C_in, C_out] bf16 (BN scale folded, taps flattened along K).
    sh_ref:  [1, C_out] f32.
    Returns pooled activations [B, L//2, C_out] f32.

    The four stride-2 row views t[o] (o=0..3) starting at the left zero-halo row
    provide the taps of even (o=0,1,2) and odd (o=1,2,3) conv positions; they are
    lane-concatenated (K=3*C_in) and the even/odd sets sublane-concatenated
    (M=2*L/2), so the whole block is ONE matmul and the pool is an elementwise
    max of the two M halves.
    """
    B = hin_ref.shape[0]
    L2 = L // 2
    t = [hin_ref[:, pl.ds(_PAD_ROW - 1 + o, L2, stride=2), :].astype(BF16)
         for o in range(4)]
    a = jnp.concatenate(
        [jnp.concatenate(t[0:3], axis=-1),     # even conv positions 2i
         jnp.concatenate(t[1:4], axis=-1)],    # odd  conv positions 2i+1
        axis=1)                                # [B, 2*L2, 3*C_in]
    cin3 = a.shape[-1]
    cout = w_ref.shape[-1]
    y = jnp.dot(a.reshape(B * 2 * L2, cin3), w_ref[...],
                preferred_element_type=F32) + sh_ref[...]
    y = jnp.maximum(y, 0.0).reshape(B, 2 * L2, cout)
    return jnp.maximum(y[:, :L2, :], y[:, L2:, :])        # MaxPool1d(2, 2)


def _tcnn_kernel(p_ref,
                 w1_ref, sh1_ref, w2_ref, sh2_ref, w3_ref, sh3_ref,
                 w4_ref, sh4_ref, w5_ref, sh5_ref,
                 wm1_ref, bm1_ref, wm2_ref, bm2_ref, wm3_ref, bm3_ref,
                 out_ref,
                 hin2, hin3, hin4, hin5):
    B = p_ref.shape[0]

    # ---- block 1: Conv1d(1,32,64,s=16,p=28) + BN + ReLU + MaxPool(2,2) -------
    # Host-side im2col patches arrive pre-split into even/odd conv positions
    # ([B, 2, 64, 64] bf16); one matmul with M = B*128, pool = max of halves.
    a1 = p_ref[...].reshape(B * 128, 64)
    y1 = jnp.dot(a1, w1_ref[...], preferred_element_type=F32) + sh1_ref[...]
    y1 = jnp.maximum(y1, 0.0).reshape(B, 2, 64, 32)
    _store_padded(hin2, jnp.maximum(y1[:, 0], y1[:, 1]), 64)     # [B, 64, 32]

    # ---- blocks 2..5: Conv1d(k=3,s=1,p=1) + BN + ReLU + MaxPool(2,2) ---------
    _store_padded(hin3, _conv3_block(hin2, w2_ref, sh2_ref, 64), 32)
    _store_padded(hin4, _conv3_block(hin3, w3_ref, sh3_ref, 32), 16)
    _store_padded(hin5, _conv3_block(hin4, w4_ref, sh4_ref, 16), 8)
    feat = _conv3_block(hin5, w5_ref, sh5_ref, 8)                # [B, 4, 64]

    # ---- classifier head: 256 -> 1024(pad 1000) -> 128(pad 100) -> 128(pad 10)
    # Position-major flatten ([B, 256]); wm1 rows were permuted at init to match
    # PyTorch's channel-major x.view(B, -1).
    flat = jnp.concatenate([feat[:, l, :] for l in range(4)], axis=-1)
    h = jnp.dot(flat.astype(BF16), wm1_ref[...], preferred_element_type=F32)
    h = jnp.maximum(h + bm1_ref[...], 0.0)                       # [B, 1024]
    h = jnp.dot(h.astype(BF16), wm2_ref[...], preferred_element_type=F32)
    h = jnp.maximum(h + bm2_ref[...], 0.0)                       # [B, 128]
    out_ref[...] = jnp.dot(h.astype(BF16), wm3_ref[...],
                           preferred_element_type=F32) + bm3_ref[...]  # [B, 128]
    # TODO(synk): train-mode Dropout / BatchNorm running-stat updates are not
    # implemented (eval / inference semantics only).


# ------------------------------- JAX wrapper ----------------------------------

def _conv1_patches(x):
    """[B, 1, 2048] NCW -> im2col patches for Conv1d(k=64, s=16, p=28), pre-split
    into even/odd output positions: [B, 2, 64, 64] bf16.  Built purely from
    pad / reshape / static strided slices (no gather)."""
    B = x.shape[0]
    xp = jnp.pad(x[:, 0, :], ((0, 0), (28, 36)))   # left pad 28 (as PyTorch);
    r = xp.reshape(B, 132, 16)                     # extra right zeros unused
    even = jnp.concatenate([r[:, t:t + 127:2, :] for t in range(4)], axis=-1)
    odd = jnp.concatenate([r[:, t + 1:t + 128:2, :] for t in range(4)], axis=-1)
    return jnp.stack([even, odd], axis=1).astype(BF16)   # [B, 2, 64, 64]


def _const_spec(a):
    zeros = (0,) * a.ndim
    return pl.BlockSpec(a.shape, lambda g, _z=zeros: _z)


def tcnn_forward(x, kp, b_tile=8):
    """x: [B, 1, 2048] f32 (NCW, like the PyTorch module). Returns logits [B, 10]."""
    B = x.shape[0]
    g = pl.cdiv(B, b_tile)
    Bp = g * b_tile
    patches = _conv1_patches(x)
    if Bp != B:
        patches = jnp.pad(patches, ((0, Bp - B), (0, 0), (0, 0), (0, 0)))

    weights = (kp["w1"], kp["sh1"], kp["w2"], kp["sh2"], kp["w3"], kp["sh3"],
               kp["w4"], kp["sh4"], kp["w5"], kp["sh5"],
               kp["wm1"], kp["bm1"], kp["wm2"], kp["bm2"], kp["wm3"], kp["bm3"])

    in_specs = [pl.BlockSpec((b_tile, 2, 64, 64), lambda i: (i, 0, 0, 0))]
    in_specs += [_const_spec(w) for w in weights]

    grid_spec = pltpu.PrefetchScalarGridSpec(
        num_scalar_prefetch=0,
        grid=(g,),
        in_specs=in_specs,
        out_specs=pl.BlockSpec((b_tile, 128), lambda i: (i, 0)),
        scratch_shapes=[
            pltpu.VMEM((b_tile, 64 + 16, 32), F32),   # block-2 input slab
            pltpu.VMEM((b_tile, 32 + 16, 32), F32),   # block-3 input slab
            pltpu.VMEM((b_tile, 16 + 16, 64), F32),   # block-4 input slab
            pltpu.VMEM((b_tile, 8 + 16, 64), F32),    # block-5 input slab
        ],
    )
    out = pl.pallas_call(
        _tcnn_kernel,
        out_shape=jax.ShapeDtypeStruct((Bp, 128), F32),
        grid_spec=grid_spec,
        compiler_params=pltpu.CompilerParams(
            dimension_semantics=("parallel",)),       # batch tiles across cores
    )(patches, *weights)
    return out[:B, :10]


# --------------------------- parameters & reference ---------------------------

def init_torch_params(key):
    """Random parameters in the PyTorch module's native layouts."""
    keys = iter(jax.random.split(key, 40))
    conv, mlp = [], []
    for (K, s, p, ci, co) in _CONV_DEFS:
        w = jax.random.normal(next(keys), (co, ci, K), F32) / np.sqrt(ci * K)
        b = 0.05 * jax.random.normal(next(keys), (co,), F32)
        gamma = 1.0 + 0.1 * jax.random.normal(next(keys), (co,), F32)
        beta = 0.1 * jax.random.normal(next(keys), (co,), F32)
        mean = 0.1 * jax.random.normal(next(keys), (co,), F32)
        var = 1.0 + 0.1 * jax.random.uniform(next(keys), (co,), F32)
        conv.append((w, b, gamma, beta, mean, var))
    for (di, do) in [(256, 1000), (1000, 100), (100, 10)]:
        w = jax.random.normal(next(keys), (do, di), F32) / np.sqrt(di)
        b = 0.05 * jax.random.normal(next(keys), (do,), F32)
        mlp.append((w, b))
    return {"conv": conv, "mlp": mlp}


def to_kernel_params(pt):
    """Fold eval-mode BN into the conv weights, flatten taps along K, zero-pad the
    MLP dims to 1024/128/128, and cast matmul operands to bf16."""
    kp = {}
    folded = []
    for (w, b, gamma, beta, mean, var) in pt["conv"]:
        scale = gamma / jnp.sqrt(var + _BN_EPS)
        folded.append((w * scale[:, None, None],
                       (scale * (b - mean) + beta).reshape(1, -1)))
    w1f, kp["sh1"] = folded[0]
    kp["w1"] = jnp.transpose(w1f[:, 0, :]).astype(BF16)               # [64, 32]
    for i, n in zip(range(1, 5), "2345"):
        wf, kp["sh" + n] = folded[i]
        co, ci, _ = wf.shape
        kp["w" + n] = (jnp.transpose(wf, (2, 1, 0))                   # [3, Cin, Cout]
                       .reshape(3 * ci, co).astype(BF16))             # [3*Cin, Cout]

    (wl1, bl1), (wl2, bl2), (wl3, bl3) = pt["mlp"]
    # kernel flattens features position-major ([4 pos, 64 ch]); PyTorch's
    # x.view(B, -1) is channel-major -> permute W1^T rows accordingly (free).
    r = jnp.arange(256)
    perm = (r % 64) * 4 + (r // 64)
    kp["wm1"] = jnp.pad(wl1.T[perm], ((0, 0), (0, 24))).astype(BF16)   # [256, 1024]
    kp["bm1"] = jnp.pad(bl1, (0, 24)).reshape(1, 1024)
    kp["wm2"] = jnp.pad(wl2.T, ((0, 24), (0, 28))).astype(BF16)        # [1024, 128]
    kp["bm2"] = jnp.pad(bl2, (0, 28)).reshape(1, 128)
    kp["wm3"] = jnp.pad(wl3.T, ((0, 28), (0, 118))).astype(BF16)       # [128, 128]
    kp["bm3"] = jnp.pad(bl3, (0, 118)).reshape(1, 128)
    return kp


def _q(v):
    # mirror the kernel's bf16 MXU operands (f32 accumulation)
    return v.astype(BF16).astype(F32)


def reference_forward(x, pt):
    """Pure-JAX reference with PyTorch eval-mode semantics (im2col + gather)."""
    h = x
    for (K, s, p, ci, co), (w, b, gamma, beta, mean, var) in zip(_CONV_DEFS,
                                                                 pt["conv"]):
        scale = gamma / jnp.sqrt(var + _BN_EPS)
        w_f = w * scale[:, None, None]
        shift = scale * (b - mean) + beta
        B, C, L = h.shape
        xp = jnp.pad(h, ((0, 0), (0, 0), (p, p)))
        L_out = (L + 2 * p - K) // s + 1
        idx = jnp.arange(L_out)[:, None] * s + jnp.arange(K)[None, :]
        patches = jnp.transpose(xp[:, :, idx], (0, 2, 1, 3)).reshape(B, L_out, C * K)
        y = _q(patches) @ _q(w_f.reshape(co, C * K).T) + shift[None, None, :]
        y = jnp.maximum(y, 0.0)
        y = jnp.maximum(y[:, 0::2, :], y[:, 1::2, :])              # MaxPool1d(2,2)
        h = jnp.transpose(y, (0, 2, 1))                            # back to NCW
    feat = h.reshape(h.shape[0], -1)                               # [B, 256]
    (w1, b1), (w2, b2), (w3, b3) = pt["mlp"]
    z = jnp.maximum(_q(feat) @ _q(w1.T) + b1, 0.0)
    z = jnp.maximum(_q(z) @ _q(w2.T) + b2, 0.0)
    return _q(z) @ _q(w3.T) + b3


if __name__ == "__main__":
    key = jax.random.PRNGKey(0)
    pt_params = init_torch_params(key)
    kparams = to_kernel_params(pt_params)

    # Input length 2048 -> flattened feature size is exactly 256 (64 ch * 4).
    # Batch 16 with b_tile=8 -> grid of 2 (keeps both v7x TensorCores busy).
    x = jax.random.normal(jax.random.fold_in(key, 7), (16, 1, 2048), F32)

    out = jax.block_until_ready(jax.jit(tcnn_forward)(x, kparams))
    assert out.shape == (16, 10) and out.dtype == jnp.float32

    ref = reference_forward(x, pt_params)
    np.testing.assert_allclose(np.asarray(out), np.asarray(ref),
                               rtol=5e-2, atol=5e-2)
    print("KERNEL_OK")
</pallas_src>

<mosaic_0001>
module attributes {stable_mosaic.version = 11 : i64} {
  func.func @_tcnn_kernel(%arg0: i32, %arg1: memref<8x2x64x64xbf16, #tpu.memory_space<vmem>>, %arg2: memref<64x32xbf16, #tpu.memory_space<vmem>>, %arg3: memref<1x32xf32, #tpu.memory_space<vmem>>, %arg4: memref<96x32xbf16, #tpu.memory_space<vmem>>, %arg5: memref<1x32xf32, #tpu.memory_space<vmem>>, %arg6: memref<96x64xbf16, #tpu.memory_space<vmem>>, %arg7: memref<1x64xf32, #tpu.memory_space<vmem>>, %arg8: memref<192x64xbf16, #tpu.memory_space<vmem>>, %arg9: memref<1x64xf32, #tpu.memory_space<vmem>>, %arg10: memref<192x64xbf16, #tpu.memory_space<vmem>>, %arg11: memref<1x64xf32, #tpu.memory_space<vmem>>, %arg12: memref<256x1024xbf16, #tpu.memory_space<vmem>>, %arg13: memref<1x1024xf32, #tpu.memory_space<vmem>>, %arg14: memref<1024x128xbf16, #tpu.memory_space<vmem>>, %arg15: memref<1x128xf32, #tpu.memory_space<vmem>>, %arg16: memref<128x128xbf16, #tpu.memory_space<vmem>>, %arg17: memref<1x128xf32, #tpu.memory_space<vmem>>, %arg18: memref<8x128xf32, #tpu.memory_space<vmem>>, %arg19: memref<8x80x32xf32, #tpu.memory_space<vmem>>, %arg20: memref<8x48x32xf32, #tpu.memory_space<vmem>>, %arg21: memref<8x32x64xf32, #tpu.memory_space<vmem>>, %arg22: memref<8x24x64xf32, #tpu.memory_space<vmem>>) attributes {dimension_semantics = [#tpu.dimension_semantics<parallel>], iteration_bounds = array<i64: 2>, scalar_prefetch = 0 : i64, scratch_operands = 4 : i64, tpu.core_type = #tpu.core_type<tc>, window_params = [{transform_indices = @transform_0, window_bounds = array<i64: 8, 2, 64, 64>}, {pipeline_mode = #tpu.pipeline_mode<synchronous>, transform_indices = @transform_1, window_bounds = array<i64: 64, 32>}, {pipeline_mode = #tpu.pipeline_mode<synchronous>, transform_indices = @transform_2, window_bounds = array<i64: 1, 32>}, {pipeline_mode = #tpu.pipeline_mode<synchronous>, transform_indices = @transform_3, window_bounds = array<i64: 96, 32>}, {pipeline_mode = #tpu.pipeline_mode<synchronous>, transform_indices = @transform_4, window_bounds = array<i64: 1, 32>}, {pipeline_mode = #tpu.pipeline_mode<synchronous>, transform_indices = @transform_5, window_bounds = array<i64: 96, 64>}, {pipeline_mode = #tpu.pipeline_mode<synchronous>, transform_indices = @transform_6, window_bounds = array<i64: 1, 64>}, {pipeline_mode = #tpu.pipeline_mode<synchronous>, transform_indices = @transform_7, window_bounds = array<i64: 192, 64>}, {pipeline_mode = #tpu.pipeline_mode<synchronous>, transform_indices = @transform_8, window_bounds = array<i64: 1, 64>}, {pipeline_mode = #tpu.pipeline_mode<synchronous>, transform_indices = @transform_9, window_bounds = array<i64: 192, 64>}, {pipeline_mode = #tpu.pipeline_mode<synchronous>, transform_indices = @transform_10, window_bounds = array<i64: 1, 64>}, {pipeline_mode = #tpu.pipeline_mode<synchronous>, transform_indices = @transform_11, window_bounds = array<i64: 256, 1024>}, {pipeline_mode = #tpu.pipeline_mode<synchronous>, transform_indices = @transform_12, window_bounds = array<i64: 1, 1024>}, {pipeline_mode = #tpu.pipeline_mode<synchronous>, transform_indices = @transform_13, window_bounds = array<i64: 1024, 128>}, {pipeline_mode = #tpu.pipeline_mode<synchronous>, transform_indices = @transform_14, window_bounds = array<i64: 1, 128>}, {pipeline_mode = #tpu.pipeline_mode<synchronous>, transform_indices = @transform_15, window_bounds = array<i64: 128, 128>}, {pipeline_mode = #tpu.pipeline_mode<synchronous>, transform_indices = @transform_16, window_bounds = array<i64: 1, 128>}, {transform_indices = @transform_17, window_bounds = array<i64: 8, 128>}]} {
    %c0 = arith.constant 0 : index
    %c0_0 = arith.constant 0 : index
    %c0_1 = arith.constant 0 : index
    %c0_2 = arith.constant 0 : index
    %0 = vector.load %arg1[%c0, %c0_0, %c0_1, %c0_2] : memref<8x2x64x64xbf16, #tpu.memory_space<vmem>>, vector<8x2x64x64xbf16>
    %1 = vector.shape_cast %0 : vector<8x2x64x64xbf16> to vector<1024x64xbf16>
    %c0_3 = arith.constant 0 : index
    %c0_4 = arith.constant 0 : index
    %2 = vector.load %arg2[%c0_3, %c0_4] : memref<64x32xbf16, #tpu.memory_space<vmem>>, vector<64x32xbf16>
    %cst = arith.constant dense<0.000000e+00> : vector<1024x32xf32>
    %3 = tpu.matmul %1, %2, %cst {dimension_numbers = #tpu.dot_dimension_numbers<[1], [0], [0], [1], [0, 0, 1, 1], [], []>} : vector<1024x64xbf16>, vector<64x32xbf16>, vector<1024x32xf32> -> vector<1024x32xf32>
    %c0_5 = arith.constant 0 : index
    %c0_6 = arith.constant 0 : index
    %4 = vector.load %arg3[%c0_5, %c0_6] : memref<1x32xf32, #tpu.memory_space<vmem>>, vector<1x32xf32>
    %5 = vector.broadcast %4 : vector<1x32xf32> to vector<1024x32xf32>
    %6 = arith.addf %3, %5 : vector<1024x32xf32>
    %cst_7 = arith.constant 0.000000e+00 : f32
    %7 = vector.broadcast %cst_7 : f32 to vector<1024x32xf32>
    %8 = arith.maximumf %6, %7 : vector<1024x32xf32>
    %9 = vector.shape_cast %8 : vector<1024x32xf32> to vector<8x2x64x32xf32>
    %10 = vector.extract_strided_slice %9 {offsets = [0, 0, 0, 0], sizes = [8, 1, 64, 32], strides = [1, 1, 1, 1]} : vector<8x2x64x32xf32> to vector<8x1x64x32xf32>
    %11 = vector.shape_cast %10 : vector<8x1x64x32xf32> to vector<8x64x32xf32>
    %12 = vector.extract_strided_slice %9 {offsets = [0, 1, 0, 0], sizes = [8, 1, 64, 32], strides = [1, 1, 1, 1]} : vector<8x2x64x32xf32> to vector<8x1x64x32xf32>
    %13 = vector.shape_cast %12 : vector<8x1x64x32xf32> to vector<8x64x32xf32>
    %14 = arith.maximumf %11, %13 : vector<8x64x32xf32>
    %cst_8 = arith.constant 0.000000e+00 : f32
    %15 = vector.broadcast %cst_8 : f32 to vector<8x1x32xf32>
    %c0_9 = arith.constant 0 : index
    %c7 = arith.constant 7 : index
    %c0_10 = arith.constant 0 : index
    %16 = vector.load %arg19[%c0_9, %c7, %c0_10] : memref<8x80x32xf32, #tpu.memory_space<vmem>>, vector<8x1x32xf32>
    tpu.vector_store %arg19[%c0_9, %c7, %c0_10], %15 {strides = array<i32>} : memref<8x80x32xf32, #tpu.memory_space<vmem>>, vector<8x1x32xf32>,
    %c0_11 = arith.constant 0 : index
    %c72 = arith.constant 72 : index
    %c0_12 = arith.constant 0 : index
    %17 = vector.load %arg19[%c0_11, %c72, %c0_12] : memref<8x80x32xf32, #tpu.memory_space<vmem>>, vector<8x1x32xf32>
    tpu.vector_store %arg19[%c0_11, %c72, %c0_12], %15 {strides = array<i32>} : memref<8x80x32xf32, #tpu.memory_space<vmem>>, vector<8x1x32xf32>,
    %c0_13 = arith.constant 0 : index
    %c8 = arith.constant 8 : index
    %c0_14 = arith.constant 0 : index
    %18 = vector.load %arg19[%c0_13, %c8, %c0_14] : memref<8x80x32xf32, #tpu.memory_space<vmem>>, vector<8x64x32xf32>
    tpu.vector_store %arg19[%c0_13, %c8, %c0_14], %14 {strides = array<i32>} : memref<8x80x32xf32, #tpu.memory_space<vmem>>, vector<8x64x32xf32>,
    %c0_15 = arith.constant 0 : index
    %c7_16 = arith.constant 7 : index
    %c0_17 = arith.constant 0 : index
    %19 = tpu.strided_load %arg19[%c0_15, %c7_16, %c0_17] {strides = array<i32: 1, 2, 1>} : memref<8x80x32xf32, #tpu.memory_space<vmem>>, vector<8x32x32xf32>
    %20 = arith.truncf %19 : vector<8x32x32xf32> to vector<8x32x32xbf16>
    %c0_18 = arith.constant 0 : index
    %c8_19 = arith.constant 8 : index
    %c0_20 = arith.constant 0 : index
    %21 = tpu.strided_load %arg19[%c0_18, %c8_19, %c0_20] {strides = array<i32: 1, 2, 1>} : memref<8x80x32xf32, #tpu.memory_space<vmem>>, vector<8x32x32xf32>
    %22 = arith.truncf %21 : vector<8x32x32xf32> to vector<8x32x32xbf16>
    %c0_21 = arith.constant 0 : index
    %c9 = arith.constant 9 : index
    %c0_22 = arith.constant 0 : index
    %23 = tpu.strided_load %arg19[%c0_21, %c9, %c0_22] {strides = array<i32: 1, 2, 1>} : memref<8x80x32xf32, #tpu.memory_space<vmem>>, vector<8x32x32xf32>
    %24 = arith.truncf %23 : vector<8x32x32xf32> to vector<8x32x32xbf16>
    %c0_23 = arith.constant 0 : index
    %c10 = arith.constant 10 : index
    %c0_24 = arith.constant 0 : index
    %25 = tpu.strided_load %arg19[%c0_23, %c10, %c0_24] {strides = array<i32: 1, 2, 1>} : memref<8x80x32xf32, #tpu.memory_space<vmem>>, vector<8x32x32xf32>
    %26 = arith.truncf %25 : vector<8x32x32xf32> to vector<8x32x32xbf16>
    %27 = tpu.concatenate %20, %22, %24 in 2 : vector<8x32x32xbf16>, vector<8x32x32xbf16>, vector<8x32x32xbf16> -> vector<8x32x96xbf16>
    %28 = tpu.concatenate %22, %24, %26 in 2 : vector<8x32x32xbf16>, vector<8x32x32xbf16>, vector<8x32x32xbf16> -> vector<8x32x96xbf16>
    %29 = tpu.concatenate %27, %28 in 1 : vector<8x32x96xbf16>, vector<8x32x96xbf16> -> vector<8x64x96xbf16>
    %30 = vector.shape_cast %29 : vector<8x64x96xbf16> to vector<512x96xbf16>
    %c0_25 = arith.constant 0 : index
    %c0_26 = arith.constant 0 : index
    %31 = vector.load %arg4[%c0_25, %c0_26] : memref<96x32xbf16, #tpu.memory_space<vmem>>, vector<96x32xbf16>
    %cst_27 = arith.constant dense<0.000000e+00> : vector<512x32xf32>
    %32 = tpu.matmul %30, %31, %cst_27 {dimension_numbers = #tpu.dot_dimension_numbers<[1], [0], [0], [1], [0, 0, 1, 1], [], []>} : vector<512x96xbf16>, vector<96x32xbf16>, vector<512x32xf32> -> vector<512x32xf32>
    %c0_28 = arith.constant 0 : index
    %c0_29 = arith.constant 0 : index
    %33 = vector.load %arg5[%c0_28, %c0_29] : memref<1x32xf32, #tpu.memory_space<vmem>>, vector<1x32xf32>
    %34 = vector.broadcast %33 : vector<1x32xf32> to vector<512x32xf32>
    %35 = arith.addf %32, %34 : vector<512x32xf32>
    %cst_30 = arith.constant 0.000000e+00 : f32
    %36 = vector.broadcast %cst_30 : f32 to vector<512x32xf32>
    %37 = arith.maximumf %35, %36 : vector<512x32xf32>
    %38 = vector.shape_cast %37 : vector<512x32xf32> to vector<8x64x32xf32>
    %39 = vector.extract_strided_slice %38 {offsets = [0, 0, 0], sizes = [8, 32, 32], strides = [1, 1, 1]} : vector<8x64x32xf32> to vector<8x32x32xf32>
    %40 = vector.extract_strided_slice %38 {offsets = [0, 32, 0], sizes = [8, 32, 32], strides = [1, 1, 1]} : vector<8x64x32xf32> to vector<8x32x32xf32>
    %41 = arith.maximumf %39, %40 : vector<8x32x32xf32>
    %cst_31 = arith.constant 0.000000e+00 : f32
    %42 = vector.broadcast %cst_31 : f32 to vector<8x1x32xf32>
    %c0_32 = arith.constant 0 : index
    %c7_33 = arith.constant 7 : index
    %c0_34 = arith.constant 0 : index
    %43 = vector.load %arg20[%c0_32, %c7_33, %c0_34] : memref<8x48x32xf32, #tpu.memory_space<vmem>>, vector<8x1x32xf32>
    tpu.vector_store %arg20[%c0_32, %c7_33, %c0_34], %42 {strides = array<i32>} : memref<8x48x32xf32, #tpu.memory_space<vmem>>, vector<8x1x32xf32>,
    %c0_35 = arith.constant 0 : index
    %c40 = arith.constant 40 : index
    %c0_36 = arith.constant 0 : index
    %44 = vector.load %arg20[%c0_35, %c40, %c0_36] : memref<8x48x32xf32, #tpu.memory_space<vmem>>, vector<8x1x32xf32>
    tpu.vector_store %arg20[%c0_35, %c40, %c0_36], %42 {strides = array<i32>} : memref<8x48x32xf32, #tpu.memory_space<vmem>>, vector<8x1x32xf32>,
    %c0_37 = arith.constant 0 : index
    %c8_38 = arith.constant 8 : index
    %c0_39 = arith.constant 0 : index
    %45 = vector.load %arg20[%c0_37, %c8_38, %c0_39] : memref<8x48x32xf32, #tpu.memory_space<vmem>>, vector<8x32x32xf32>
    tpu.vector_store %arg20[%c0_37, %c8_38, %c0_39], %41 {strides = array<i32>} : memref<8x48x32xf32, #tpu.memory_space<vmem>>, vector<8x32x32xf32>,
    %c0_40 = arith.constant 0 : index
    %c7_41 = arith.constant 7 : index
    %c0_42 = arith.constant 0 : index
    %46 = tpu.strided_load %arg20[%c0_40, %c7_41, %c0_42] {strides = array<i32: 1, 2, 1>} : memref<8x48x32xf32, #tpu.memory_space<vmem>>, vector<8x16x32xf32>
    %47 = arith.truncf %46 : vector<8x16x32xf32> to vector<8x16x32xbf16>
    %c0_43 = arith.constant 0 : index
    %c8_44 = arith.constant 8 : index
    %c0_45 = arith.constant 0 : index
    %48 = tpu.strided_load %arg20[%c0_43, %c8_44, %c0_45] {strides = array<i32: 1, 2, 1>} : memref<8x48x32xf32, #tpu.memory_space<vmem>>, vector<8x16x32xf32>
    %49 = arith.truncf %48 : vector<8x16x32xf32> to vector<8x16x32xbf16>
    %c0_46 = arith.constant 0 : index
    %c9_47 = arith.constant 9 : index
    %c0_48 = arith.constant 0 : index
    %50 = tpu.strided_load %arg20[%c0_46, %c9_47, %c0_48] {strides = array<i32: 1, 2, 1>} : memref<8x48x32xf32, #tpu.memory_space<vmem>>, vector<8x16x32xf32>
    %51 = arith.truncf %50 : vector<8x16x32xf32> to vector<8x16x32xbf16>
    %c0_49 = arith.constant 0 : index
    %c10_50 = arith.constant 10 : index
    %c0_51 = arith.constant 0 : index
    %52 = tpu.strided_load %arg20[%c0_49, %c10_50, %c0_51] {strides = array<i32: 1, 2, 1>} : memref<8x48x32xf32, #tpu.memory_space<vmem>>, vector<8x16x32xf32>
    %53 = arith.truncf %52 : vector<8x16x32xf32> to vector<8x16x32xbf16>
    %54 = tpu.concatenate %47, %49, %51 in 2 : vector<8x16x32xbf16>, vector<8x16x32xbf16>, vector<8x16x32xbf16> -> vector<8x16x96xbf16>
    %55 = tpu.concatenate %49, %51, %53 in 2 : vector<8x16x32xbf16>, vector<8x16x32xbf16>, vector<8x16x32xbf16> -> vector<8x16x96xbf16>
    %56 = tpu.concatenate %54, %55 in 1 : vector<8x16x96xbf16>, vector<8x16x96xbf16> -> vector<8x32x96xbf16>
    %57 = vector.shape_cast %56 : vector<8x32x96xbf16> to vector<256x96xbf16>
    %c0_52 = arith.constant 0 : index
    %c0_53 = arith.constant 0 : index
    %58 = vector.load %arg6[%c0_52, %c0_53] : memref<96x64xbf16, #tpu.memory_space<vmem>>, vector<96x64xbf16>
    %cst_54 = arith.constant dense<0.000000e+00> : vector<256x64xf32>
    %59 = tpu.matmul %57, %58, %cst_54 {dimension_numbers = #tpu.dot_dimension_numbers<[1], [0], [0], [1], [0, 0, 1, 1], [], []>} : vector<256x96xbf16>, vector<96x64xbf16>, vector<256x64xf32> -> vector<256x64xf32>
    %c0_55 = arith.constant 0 : index
    %c0_56 = arith.constant 0 : index
    %60 = vector.load %arg7[%c0_55, %c0_56] : memref<1x64xf32, #tpu.memory_space<vmem>>, vector<1x64xf32>
    %61 = vector.broadcast %60 : vector<1x64xf32> to vector<256x64xf32>
    %62 = arith.addf %59, %61 : vector<256x64xf32>
    %cst_57 = arith.constant 0.000000e+00 : f32
    %63 = vector.broadcast %cst_57 : f32 to vector<256x64xf32>
    %64 = arith.maximumf %62, %63 : vector<256x64xf32>
    %65 = vector.shape_cast %64 : vector<256x64xf32> to vector<8x32x64xf32>
    %66 = vector.extract_strided_slice %65 {offsets = [0, 0, 0], sizes = [8, 16, 64], strides = [1, 1, 1]} : vector<8x32x64xf32> to vector<8x16x64xf32>
    %67 = vector.extract_strided_slice %65 {offsets = [0, 16, 0], sizes = [8, 16, 64], strides = [1, 1, 1]} : vector<8x32x64xf32> to vector<8x16x64xf32>
    %68 = arith.maximumf %66, %67 : vector<8x16x64xf32>
    %cst_58 = arith.constant 0.000000e+00 : f32
    %69 = vector.broadcast %cst_58 : f32 to vector<8x1x64xf32>
    %c0_59 = arith.constant 0 : index
    %c7_60 = arith.constant 7 : index
    %c0_61 = arith.constant 0 : index
    %70 = vector.load %arg21[%c0_59, %c7_60, %c0_61] : memref<8x32x64xf32, #tpu.memory_space<vmem>>, vector<8x1x64xf32>
    tpu.vector_store %arg21[%c0_59, %c7_60, %c0_61], %69 {strides = array<i32>} : memref<8x32x64xf32, #tpu.memory_space<vmem>>, vector<8x1x64xf32>,
    %c0_62 = arith.constant 0 : index
    %c24 = arith.constant 24 : index
    %c0_63 = arith.constant 0 : index
    %71 = vector.load %arg21[%c0_62, %c24, %c0_63] : memref<8x32x64xf32, #tpu.memory_space<vmem>>, vector<8x1x64xf32>
    tpu.vector_store %arg21[%c0_62, %c24, %c0_63], %69 {strides = array<i32>} : memref<8x32x64xf32, #tpu.memory_space<vmem>>, vector<8x1x64xf32>,
    %c0_64 = arith.constant 0 : index
    %c8_65 = arith.constant 8 : index
    %c0_66 = arith.constant 0 : index
    %72 = vector.load %arg21[%c0_64, %c8_65, %c0_66] : memref<8x32x64xf32, #tpu.memory_space<vmem>>, vector<8x16x64xf32>
    tpu.vector_store %arg21[%c0_64, %c8_65, %c0_66], %68 {strides = array<i32>} : memref<8x32x64xf32, #tpu.memory_space<vmem>>, vector<8x16x64xf32>,
    %c0_67 = arith.constant 0 : index
    %c7_68 = arith.constant 7 : index
    %c0_69 = arith.constant 0 : index
    %73 = tpu.strided_load %arg21[%c0_67, %c7_68, %c0_69] {strides = array<i32: 1, 2, 1>} : memref<8x32x64xf32, #tpu.memory_space<vmem>>, vector<8x8x64xf32>
    %74 = arith.truncf %73 : vector<8x8x64xf32> to vector<8x8x64xbf16>
    %c0_70 = arith.constant 0 : index
    %c8_71 = arith.constant 8 : index
    %c0_72 = arith.constant 0 : index
    %75 = tpu.strided_load %arg21[%c0_70, %c8_71, %c0_72] {strides = array<i32: 1, 2, 1>} : memref<8x32x64xf32, #tpu.memory_space<vmem>>, vector<8x8x64xf32>
    %76 = arith.truncf %75 : vector<8x8x64xf32> to vector<8x8x64xbf16>
    %c0_73 = arith.constant 0 : index
    %c9_74 = arith.constant 9 : index
    %c0_75 = arith.constant 0 : index
    %77 = tpu.strided_load %arg21[%c0_73, %c9_74, %c0_75] {strides = array<i32: 1, 2, 1>} : memref<8x32x64xf32, #tpu.memory_space<vmem>>, vector<8x8x64xf32>
    %78 = arith.truncf %77 : vector<8x8x64xf32> to vector<8x8x64xbf16>
    %c0_76 = arith.constant 0 : index
    %c10_77 = arith.constant 10 : index
    %c0_78 = arith.constant 0 : index
    %79 = tpu.strided_load %arg21[%c0_76, %c10_77, %c0_78] {strides = array<i32: 1, 2, 1>} : memref<8x32x64xf32, #tpu.memory_space<vmem>>, vector<8x8x64xf32>
    %80 = arith.truncf %79 : vector<8x8x64xf32> to vector<8x8x64xbf16>
    %81 = tpu.concatenate %74, %76, %78 in 2 : vector<8x8x64xbf16>, vector<8x8x64xbf16>, vector<8x8x64xbf16> -> vector<8x8x192xbf16>
    %82 = tpu.concatenate %76, %78, %80 in 2 : vector<8x8x64xbf16>, vector<8x8x64xbf16>, vector<8x8x64xbf16> -> vector<8x8x192xbf16>
    %83 = tpu.concatenate %81, %82 in 1 : vector<8x8x192xbf16>, vector<8x8x192xbf16> -> vector<8x16x192xbf16>
    %84 = vector.shape_cast %83 : vector<8x16x192xbf16> to vector<128x192xbf16>
    %c0_79 = arith.constant 0 : index
    %c0_80 = arith.constant 0 : index
    %85 = vector.load %arg8[%c0_79, %c0_80] : memref<192x64xbf16, #tpu.memory_space<vmem>>, vector<192x64xbf16>
    %cst_81 = arith.constant dense<0.000000e+00> : vector<128x64xf32>
    %86 = tpu.matmul %84, %85, %cst_81 {dimension_numbers = #tpu.dot_dimension_numbers<[1], [0], [0], [1], [0, 0, 1, 1], [], []>} : vector<128x192xbf16>, vector<192x64xbf16>, vector<128x64xf32> -> vector<128x64xf32>
    %c0_82 = arith.constant 0 : index
    %c0_83 = arith.constant 0 : index
    %87 = vector.load %arg9[%c0_82, %c0_83] : memref<1x64xf32, #tpu.memory_space<vmem>>, vector<1x64xf32>
    %88 = vector.broadcast %87 : vector<1x64xf32> to vector<128x64xf32>
    %89 = arith.addf %86, %88 : vector<128x64xf32>
    %cst_84 = arith.constant 0.000000e+00 : f32
    %90 = vector.broadcast %cst_84 : f32 to vector<128x64xf32>
    %91 = arith.maximumf %89, %90 : vector<128x64xf32>
    %92 = vector.shape_cast %91 : vector<128x64xf32> to vector<8x16x64xf32>
    %93 = vector.extract_strided_slice %92 {offsets = [0, 0, 0], sizes = [8, 8, 64], strides = [1, 1, 1]} : vector<8x16x64xf32> to vector<8x8x64xf32>
    %94 = vector.extract_strided_slice %92 {offsets = [0, 8, 0], sizes = [8, 8, 64], strides = [1, 1, 1]} : vector<8x16x64xf32> to vector<8x8x64xf32>
    %95 = arith.maximumf %93, %94 : vector<8x8x64xf32>
    %cst_85 = arith.constant 0.000000e+00 : f32
    %96 = vector.broadcast %cst_85 : f32 to vector<8x1x64xf32>
    %c0_86 = arith.constant 0 : index
    %c7_87 = arith.constant 7 : index
    %c0_88 = arith.constant 0 : index
    %97 = vector.load %arg22[%c0_86, %c7_87, %c0_88] : memref<8x24x64xf32, #tpu.memory_space<vmem>>, vector<8x1x64xf32>
    tpu.vector_store %arg22[%c0_86, %c7_87, %c0_88], %96 {strides = array<i32>} : memref<8x24x64xf32, #tpu.memory_space<vmem>>, vector<8x1x64xf32>,
    %c0_89 = arith.constant 0 : index
    %c16 = arith.constant 16 : index
    %c0_90 = arith.constant 0 : index
    %98 = vector.load %arg22[%c0_89, %c16, %c0_90] : memref<8x24x64xf32, #tpu.memory_space<vmem>>, vector<8x1x64xf32>
    tpu.vector_store %arg22[%c0_89, %c16, %c0_90], %96 {strides = array<i32>} : memref<8x24x64xf32, #tpu.memory_space<vmem>>, vector<8x1x64xf32>,
    %c0_91 = arith.constant 0 : index
    %c8_92 = arith.constant 8 : index
    %c0_93 = arith.constant 0 : index
    %99 = vector.load %arg22[%c0_91, %c8_92, %c0_93] : memref<8x24x64xf32, #tpu.memory_space<vmem>>, vector<8x8x64xf32>
    tpu.vector_store %arg22[%c0_91, %c8_92, %c0_93], %95 {strides = array<i32>} : memref<8x24x64xf32, #tpu.memory_space<vmem>>, vector<8x8x64xf32>,
    %c0_94 = arith.constant 0 : index
    %c7_95 = arith.constant 7 : index
    %c0_96 = arith.constant 0 : index
    %100 = tpu.strided_load %arg22[%c0_94, %c7_95, %c0_96] {strides = array<i32: 1, 2, 1>} : memref<8x24x64xf32, #tpu.memory_space<vmem>>, vector<8x4x64xf32>
    %101 = arith.truncf %100 : vector<8x4x64xf32> to vector<8x4x64xbf16>
    %c0_97 = arith.constant 0 : index
    %c8_98 = arith.constant 8 : index
    %c0_99 = arith.constant 0 : index
    %102 = tpu.strided_load %arg22[%c0_97, %c8_98, %c0_99] {strides = array<i32: 1, 2, 1>} : memref<8x24x64xf32, #tpu.memory_space<vmem>>, vector<8x4x64xf32>
    %103 = arith.truncf %102 : vector<8x4x64xf32> to vector<8x4x64xbf16>
    %c0_100 = arith.constant 0 : index
    %c9_101 = arith.constant 9 : index
    %c0_102 = arith.constant 0 : index
    %104 = tpu.strided_load %arg22[%c0_100, %c9_101, %c0_102] {strides = array<i32: 1, 2, 1>} : memref<8x24x64xf32, #tpu.memory_space<vmem>>, vector<8x4x64xf32>
    %105 = arith.truncf %104 : vector<8x4x64xf32> to vector<8x4x64xbf16>
    %c0_103 = arith.constant 0 : index
    %c10_104 = arith.constant 10 : index
    %c0_105 = arith.constant 0 : index
    %106 = tpu.strided_load %arg22[%c0_103, %c10_104, %c0_105] {strides = array<i32: 1, 2, 1>} : memref<8x24x64xf32, #tpu.memory_space<vmem>>, vector<8x4x64xf32>
    %107 = arith.truncf %106 : vector<8x4x64xf32> to vector<8x4x64xbf16>
    %108 = tpu.concatenate %101, %103, %105 in 2 : vector<8x4x64xbf16>, vector<8x4x64xbf16>, vector<8x4x64xbf16> -> vector<8x4x192xbf16>
    %109 = tpu.concatenate %103, %105, %107 in 2 : vector<8x4x64xbf16>, vector<8x4x64xbf16>, vector<8x4x64xbf16> -> vector<8x4x192xbf16>
    %110 = tpu.concatenate %108, %109 in 1 : vector<8x4x192xbf16>, vector<8x4x192xbf16> -> vector<8x8x192xbf16>
    %111 = vector.shape_cast %110 : vector<8x8x192xbf16> to vector<64x192xbf16>
    %c0_106 = arith.constant 0 : index
    %c0_107 = arith.constant 0 : index
    %112 = vector.load %arg10[%c0_106, %c0_107] : memref<192x64xbf16, #tpu.memory_space<vmem>>, vector<192x64xbf16>
    %cst_108 = arith.constant dense<0.000000e+00> : vector<64x64xf32>
    %113 = tpu.matmul %111, %112, %cst_108 {dimension_numbers = #tpu.dot_dimension_numbers<[1], [0], [0], [1], [0, 0, 1, 1], [], []>} : vector<64x192xbf16>, vector<192x64xbf16>, vector<64x64xf32> -> vector<64x64xf32>
    %c0_109 = arith.constant 0 : index
    %c0_110 = arith.constant 0 : index
    %114 = vector.load %arg11[%c0_109, %c0_110] : memref<1x64xf32, #tpu.memory_space<vmem>>, vector<1x64xf32>
    %115 = vector.broadcast %114 : vector<1x64xf32> to vector<64x64xf32>
    %116 = arith.addf %113, %115 : vector<64x64xf32>
    %cst_111 = arith.constant 0.000000e+00 : f32
    %117 = vector.broadcast %cst_111 : f32 to vector<64x64xf32>
    %118 = arith.maximumf %116, %117 : vector<64x64xf32>
    %119 = vector.shape_cast %118 : vector<64x64xf32> to vector<8x8x64xf32>
    %120 = vector.extract_strided_slice %119 {offsets = [0, 0, 0], sizes = [8, 4, 64], strides = [1, 1, 1]} : vector<8x8x64xf32> to vector<8x4x64xf32>
    %121 = vector.extract_strided_slice %119 {offsets = [0, 4, 0], sizes = [8, 4, 64], strides = [1, 1, 1]} : vector<8x8x64xf32> to vector<8x4x64xf32>
    %122 = arith.maximumf %120, %121 : vector<8x4x64xf32>
    %123 = vector.extract_strided_slice %122 {offsets = [0, 0, 0], sizes = [8, 1, 64], strides = [1, 1, 1]} : vector<8x4x64xf32> to vector<8x1x64xf32>
    %124 = vector.shape_cast %123 : vector<8x1x64xf32> to vector<8x64xf32>
    %125 = vector.extract_strided_slice %122 {offsets = [0, 1, 0], sizes = [8, 1, 64], strides = [1, 1, 1]} : vector<8x4x64xf32> to vector<8x1x64xf32>
    %126 = vector.shape_cast %125 : vector<8x1x64xf32> to vector<8x64xf32>
    %127 = vector.extract_strided_slice %122 {offsets = [0, 2, 0], sizes = [8, 1, 64], strides = [1, 1, 1]} : vector<8x4x64xf32> to vector<8x1x64xf32>
    %128 = vector.shape_cast %127 : vector<8x1x64xf32> to vector<8x64xf32>
    %129 = vector.extract_strided_slice %122 {offsets = [0, 3, 0], sizes = [8, 1, 64], strides = [1, 1, 1]} : vector<8x4x64xf32> to vector<8x1x64xf32>
    %130 = vector.shape_cast %129 : vector<8x1x64xf32> to vector<8x64xf32>
    %131 = tpu.concatenate %124, %126, %128, %130 in 1 : vector<8x64xf32>, vector<8x64xf32>, vector<8x64xf32>, vector<8x64xf32> -> vector<8x256xf32>
    %132 = arith.truncf %131 : vector<8x256xf32> to vector<8x256xbf16>
    %c0_112 = arith.constant 0 : index
    %c0_113 = arith.constant 0 : index
    %133 = vector.load %arg12[%c0_112, %c0_113] : memref<256x1024xbf16, #tpu.memory_space<vmem>>, vector<256x1024xbf16>
    %cst_114 = arith.constant dense<0.000000e+00> : vector<8x1024xf32>
    %134 = tpu.matmul %132, %133, %cst_114 {dimension_numbers = #tpu.dot_dimension_numbers<[1], [0], [0], [1], [0, 0, 1, 1], [], []>} : vector<8x256xbf16>, vector<256x1024xbf16>, vector<8x1024xf32> -> vector<8x1024xf32>
    %c0_115 = arith.constant 0 : index
    %c0_116 = arith.constant 0 : index
    %135 = vector.load %arg13[%c0_115, %c0_116] : memref<1x1024xf32, #tpu.memory_space<vmem>>, vector<1x1024xf32>
    %136 = vector.broadcast %135 : vector<1x1024xf32> to vector<8x1024xf32>
    %137 = arith.addf %134, %136 : vector<8x1024xf32>
    %cst_117 = arith.constant 0.000000e+00 : f32
    %138 = vector.broadcast %cst_117 : f32 to vector<8x1024xf32>
    %139 = arith.maximumf %137, %138 : vector<8x1024xf32>
    %140 = arith.truncf %139 : vector<8x1024xf32> to vector<8x1024xbf16>
    %c0_118 = arith.constant 0 : index
    %c0_119 = arith.constant 0 : index
    %141 = vector.load %arg14[%c0_118, %c0_119] : memref<1024x128xbf16, #tpu.memory_space<vmem>>, vector<1024x128xbf16>
    %cst_120 = arith.constant dense<0.000000e+00> : vector<8x128xf32>
    %142 = tpu.matmul %140, %141, %cst_120 {dimension_numbers = #tpu.dot_dimension_numbers<[1], [0], [0], [1], [0, 0, 1, 1], [], []>} : vector<8x1024xbf16>, vector<1024x128xbf16>, vector<8x128xf32> -> vector<8x128xf32>
    %c0_121 = arith.constant 0 : index
    %c0_122 = arith.constant 0 : index
    %143 = vector.load %arg15[%c0_121, %c0_122] : memref<1x128xf32, #tpu.memory_space<vmem>>, vector<1x128xf32>
    %144 = vector.broadcast %143 : vector<1x128xf32> to vector<8x128xf32>
    %145 = arith.addf %142, %144 : vector<8x128xf32>
    %cst_123 = arith.constant 0.000000e+00 : f32
    %146 = vector.broadcast %cst_123 : f32 to vector<8x128xf32>
    %147 = arith.maximumf %145, %146 : vector<8x128xf32>
    %148 = arith.truncf %147 : vector<8x128xf32> to vector<8x128xbf16>
    %c0_124 = arith.constant 0 : index
    %c0_125 = arith.constant 0 : index
    %149 = vector.load %arg16[%c0_124, %c0_125] : memref<128x128xbf16, #tpu.memory_space<vmem>>, vector<128x128xbf16>
    %cst_126 = arith.constant dense<0.000000e+00> : vector<8x128xf32>
    %150 = tpu.matmul %148, %149, %cst_126 {dimension_numbers = #tpu.dot_dimension_numbers<[1], [0], [0], [1], [0, 0, 1, 1], [], []>} : vector<8x128xbf16>, vector<128x128xbf16>, vector<8x128xf32> -> vector<8x128xf32>
    %c0_127 = arith.constant 0 : index
    %c0_128 = arith.constant 0 : index
    %151 = vector.load %arg17[%c0_127, %c0_128] : memref<1x128xf32, #tpu.memory_space<vmem>>, vector<1x128xf32>
    %152 = vector.broadcast %151 : vector<1x128xf32> to vector<8x128xf32>
    %153 = arith.addf %150, %152 : vector<8x128xf32>
    %c0_129 = arith.constant 0 : index
    %c0_130 = arith.constant 0 : index
    %154 = vector.load %arg18[%c0_129, %c0_130] : memref<8x128xf32, #tpu.memory_space<vmem>>, vector<8x128xf32>
    tpu.vector_store %arg18[%c0_129, %c0_130], %153 {strides = array<i32>} : memref<8x128xf32, #tpu.memory_space<vmem>>, vector<8x128xf32>,
    return
  }
  func.func @transform_0(%arg0: i32) -> (i32, i32, i32, i32) {
    %c0_i32 = arith.constant 0 : i32
    %c0_i32_0 = arith.constant 0 : i32
    %c0_i32_1 = arith.constant 0 : i32
    %c0_i32_2 = arith.constant 0 : i32
    return %arg0, %c0_i32, %c0_i32_0, %c0_i32_1 : i32, i32, i32, i32
  }
  func.func @transform_1(%arg0: i32) -> (i32, i32) {
    %c0_i32 = arith.constant 0 : i32
    %c0_i32_0 = arith.constant 0 : i32
    %c0_i32_1 = arith.constant 0 : i32
    return %c0_i32, %c0_i32_0 : i32, i32
  }
  func.func @transform_2(%arg0: i32) -> (i32, i32) {
    %c0_i32 = arith.constant 0 : i32
    %c0_i32_0 = arith.constant 0 : i32
    %c0_i32_1 = arith.constant 0 : i32
    return %c0_i32, %c0_i32_0 : i32, i32
  }
  func.func @transform_3(%arg0: i32) -> (i32, i32) {
    %c0_i32 = arith.constant 0 : i32
    %c0_i32_0 = arith.constant 0 : i32
    %c0_i32_1 = arith.constant 0 : i32
    return %c0_i32, %c0_i32_0 : i32, i32
  }
  func.func @transform_4(%arg0: i32) -> (i32, i32) {
    %c0_i32 = arith.constant 0 : i32
    %c0_i32_0 = arith.constant 0 : i32
    %c0_i32_1 = arith.constant 0 : i32
    return %c0_i32, %c0_i32_0 : i32, i32
  }
  func.func @transform_5(%arg0: i32) -> (i32, i32) {
    %c0_i32 = arith.constant 0 : i32
    %c0_i32_0 = arith.constant 0 : i32
    %c0_i32_1 = arith.constant 0 : i32
    return %c0_i32, %c0_i32_0 : i32, i32
  }
  func.func @transform_6(%arg0: i32) -> (i32, i32) {
    %c0_i32 = arith.constant 0 : i32
    %c0_i32_0 = arith.constant 0 : i32
    %c0_i32_1 = arith.constant 0 : i32
    return %c0_i32, %c0_i32_0 : i32, i32
  }
  func.func @transform_7(%arg0: i32) -> (i32, i32) {
    %c0_i32 = arith.constant 0 : i32
    %c0_i32_0 = arith.constant 0 : i32
    %c0_i32_1 = arith.constant 0 : i32
    return %c0_i32, %c0_i32_0 : i32, i32
  }
  func.func @transform_8(%arg0: i32) -> (i32, i32) {
    %c0_i32 = arith.constant 0 : i32
    %c0_i32_0 = arith.constant 0 : i32
    %c0_i32_1 = arith.constant 0 : i32
    return %c0_i32, %c0_i32_0 : i32, i32
  }
  func.func @transform_9(%arg0: i32) -> (i32, i32) {
    %c0_i32 = arith.constant 0 : i32
    %c0_i32_0 = arith.constant 0 : i32
    %c0_i32_1 = arith.constant 0 : i32
    return %c0_i32, %c0_i32_0 : i32, i32
  }
  func.func @transform_10(%arg0: i32) -> (i32, i32) {
    %c0_i32 = arith.constant 0 : i32
    %c0_i32_0 = arith.constant 0 : i32
    %c0_i32_1 = arith.constant 0 : i32
    return %c0_i32, %c0_i32_0 : i32, i32
  }
  func.func @transform_11(%arg0: i32) -> (i32, i32) {
    %c0_i32 = arith.constant 0 : i32
    %c0_i32_0 = arith.constant 0 : i32
    %c0_i32_1 = arith.constant 0 : i32
    return %c0_i32, %c0_i32_0 : i32, i32
  }
  func.func @transform_12(%arg0: i32) -> (i32, i32) {
    %c0_i32 = arith.constant 0 : i32
    %c0_i32_0 = arith.constant 0 : i32
    %c0_i32_1 = arith.constant 0 : i32
    return %c0_i32, %c0_i32_0 : i32, i32
  }
  func.func @transform_13(%arg0: i32) -> (i32, i32) {
    %c0_i32 = arith.constant 0 : i32
    %c0_i32_0 = arith.constant 0 : i32
    %c0_i32_1 = arith.constant 0 : i32
    return %c0_i32, %c0_i32_0 : i32, i32
  }
  func.func @transform_14(%arg0: i32) -> (i32, i32) {
    %c0_i32 = arith.constant 0 : i32
    %c0_i32_0 = arith.constant 0 : i32
    %c0_i32_1 = arith.constant 0 : i32
    return %c0_i32, %c0_i32_0 : i32, i32
  }
  func.func @transform_15(%arg0: i32) -> (i32, i32) {
    %c0_i32 = arith.constant 0 : i32
    %c0_i32_0 = arith.constant 0 : i32
    %c0_i32_1 = arith.constant 0 : i32
    return %c0_i32, %c0_i32_0 : i32, i32
  }
  func.func @transform_16(%arg0: i32) -> (i32, i32) {
    %c0_i32 = arith.constant 0 : i32
    %c0_i32_0 = arith.constant 0 : i32
    %c0_i32_1 = arith.constant 0 : i32
    return %c0_i32, %c0_i32_0 : i32, i32
  }
  func.func @transform_17(%arg0: i32) -> (i32, i32) {
    %c0_i32 = arith.constant 0 : i32
    %c0_i32_0 = arith.constant 0 : i32
    return %arg0, %c0_i32 : i32, i32
  }
}

</mosaic_0001>

<bundles_post_ra>
// kernel: tcnn_forward.1
= control target key start
LH: loop header
LB: loop body
LE: loop exit
PB: predicated region body
PF: predicated region fallthrough
CT: control target
= control target key end

     0   :  { %s10376_s0 = inlined_call_operand.vmem [shape: bf16[16,2,64,64], index: 0, kind: input, shape index: {}]   ;;  %s10377_s1 = inlined_call_operand.vmem [shape: bf16[64,32], index: 1, kind: input, shape index: {}]   ;;  %s10378_s2 = inlined_call_operand.vmem [shape: f32[1,32], index: 2, kind: input, shape index: {}]   ;;  %s10379_s3 = inlined_call_operand.vmem [shape: bf16[96,32], index: 3, kind: input, shape index: {}]   ;;  %s10380_s4 = inlined_call_operand.vmem [shape: f32[1,32], index: 4, kind: input, shape index: {}]   ;;  %s10381_s5 = inlined_call_operand.vmem [shape: bf16[96,64], index: 5, kind: input, shape index: {}]   ;;  %s10382_s6 = inlined_call_operand.vmem [shape: f32[1,64], index: 6, kind: input, shape index: {}]   ;;  %s10383_s7 = inlined_call_operand.vmem [shape: bf16[192,64], index: 7, kind: input, shape index: {}]   ;;  %s10384_s8 = inlined_call_operand.vmem [shape: f32[1,64], index: 8, kind: input, shape index: {}]   ;;  %s10385_s9 = inlined_call_operand.vmem [shape: bf16[192,64], index: 9, kind: input, shape index: {}]   ;;  %s10386_s10 = inlined_call_operand.vmem [shape: f32[1,64], index: 10, kind: input, shape index: {}]   ;;  %s10387_s11 = inlined_call_operand.vmem [shape: bf16[256,1024], index: 11, kind: input, shape index: {}]   ;;  %s10388_s12 = inlined_call_operand.vmem [shape: f32[1,1024], index: 12, kind: input, shape index: {}]   ;;  %s10389_s13 = inlined_call_operand.vmem [shape: bf16[1024,128], index: 13, kind: input, shape index: {}]   ;;  %s10390_s14 = inlined_call_operand.vmem [shape: f32[1,128], index: 14, kind: input, shape index: {}]   ;;  %s10391_s15 = inlined_call_operand.vmem [shape: bf16[128,128], index: 15, kind: input, shape index: {}]   ;;  %s10392_s16 = inlined_call_operand.vmem [shape: f32[1,128], index: 16, kind: input, shape index: {}]   ;;  %s10393_s17 = inlined_call_operand.hbm [shape: f32[16,128], index: 17, kind: output, shape index: {}]  }
   0x1   :  { %10401 = sst [smem:[#allocation14_spill]] %s10376_s0 }
   0x2   :  { %10402 = sst [smem:[#allocation15_spill]] %s10377_s1 }
   0x3   :  { %10403 = sst [smem:[#allocation16_spill]] %s10378_s2 }
   0x4   :  { %22 = vsyncpa [#allocation7], 0 }
   0x5   :  { %24 = vsyncpa [#allocation7 + $0x1], 0  ;;  %s8264_s24 = smov 0   ;;  %s8266_s25 = smov 0  }
   0x6   :  { %s8268_s26 = smov 0   ;;  %s8270_s27 = smov 0  }
   0x7 LB: > { %10404 = sst [smem:[#allocation9_spill]] %s8154_s24  ;;  %s8285_s28 = sadd.s32 4294967295, %s8166_s27   ;;  %s8166_s27 = sphi %s8270_s27, %s10417_s27   ;;  %s8162_s26 = sphi %s8268_s26, %s10419_s26   ;;  %s8158_s25 = sphi %s8266_s25, %s10421_s25   ;;  %s8154_s24 = sphi %s8264_s24, %s10420_s24  }
   0x8   : > { %10405 = sst [smem:[#allocation10_spill]] %s8162_s26  ;;  %s6923_s29 = sadd.s32 4294967294, %s8166_s27  }
   0x9   : > { %s8289_s0 = sadd.s32 1, %s8166_s27   ;;  %s399_s30 = sadd.s32 1, %s8162_s26 }
   0xa   : > { %10406 = sst [smem:[#allocation11_spill]] %s8289_s0  ;;  %s396_s18 = ssub.s32 %s8166_s27, %s8289_s0 }
   0xb   : > { %p409_p0 = scmp.ne.s32.totalorder %s8162_s26, %s8158_s25  ;;  %p397_p1 = scmp.eq.s32.totalorder %s396_s18, 0 }
   0xc   : > { %p410_p2 = scmp.eq.s32.totalorder %s8285_s28, 1  ;;  %p415_p3 = scmp.ne.s32.totalorder %s8158_s25, %s8154_s24 }
   0xd   : > { %p416_p4 = scmp.eq.s32.totalorder %s6923_s29, 1  ;;  %p6926_p7 = scmp.ge.s32.totalorder %s8166_s27, 1 }
   0xe   : > { %s8300_s19 = scalar_select %p397_p1, %s8162_s26, %s399_s30  }
   0xf   : > { %p8302_p5 = por %p410_p2, %p409_p0  ;;  %p8306_p6 = por %p416_p4, %p415_p3 }
  0x10   : > { %10407 = sst [smem:[#allocation12_spill]] %s8300_s19  ;;  %p492_p8 = scmp.lt.s32.totalorder %s8166_s27, 3 }
  0x11   : > { %s10409_s20 = scalar_select %p8306_p6, 1, 0 }
  0x12   : > { %p493_p9 = pnand %p6926_p7, %p492_p8 }
  0x13   : > { %10410 = sst [smem:[#allocation13_spill]] %s10409_s20  ;;  %s6928_s29 = sshll.u32 (!%p493_p9), %s8285_s28, 3 }
  0x14   : > { %496 = sbr.rel (%p493_p9) target bundleno = 2651 (0xa5b), region = 88  ;;  %s10411_s23 = sld [smem:[#allocation15_spill]] (!%p493_p9) }
  0x15   : > { %p546_p10 = scmp.lt.s32.totalorder (!%p493_p9), %s6928_s29, 15  ;;  %s10412_s22 = sld [smem:[#allocation14_spill]] (!%p493_p9) }
  0x16   : > { %s10413_s2 = sld [smem:[#allocation16_spill]] (!%p493_p9)  ;;  %s10400_s21 = smov (!%p493_p9), 64  }
  0x17   : > { %s542_s20 = sand.u32 (!%p493_p9), 1, %s8158_s25   ;;  %s7375_s18 = sshll.u32 (!%p493_p9), %s8285_s28, 7 }
  0x18   : > { %s6851_s30 = scalar_lea.sflag (!%p493_p9), [#allocation7], %s542_s20  ;;  %s8173_s28 = smov (!%p493_p9), [#allocation6]  }
  0x19   : > { %s10423_s29 = smov (!%p546_p10, %s6928_s29), 15  ;;  %vm1040_vm0 = vcmask 523264   ;;  %vm1970_vm1 = vcmask 253952   ;;  %v8168_v31 = vmov 0.0   ;;  %vm1987_vm2 = vcmask 261120  }
  0x1a   : > { %v7929_v0 = vld [vmem:[%s10411_s23 + $0x18] sm:$0xff]   ;;  %v7930_v1 = vld [vmem:[%s10411_s23 + $0x10] sm:$0xff]   ;;  %v7931_v2 = vld [vmem:[%s10411_s23 + $0x8] sm:$0xff]   ;;  %s7378_s0 = sshll.u32 %s10423_s29, 6  ;;  %1979 = vst.msk [vmem:[#allocation2 + $0x48] sm:$0x1] %vm1970_vm1, %v8168_v31 }
  0x1b   : > { %7604 = vmatprep.subr.bf16.mxu0 %v7929_v0  ;;  %s8325_s24 = scalar_lea.vmem %s10412_s22, %s7378_s0  ;;  %v7932_v4 = vld [vmem:[%s10411_s23] sm:$0xff]   ;;  %1971 = vst.msk [vmem:[#allocation2 + $0x7] sm:$0x1] %vm1970_vm1, %v8168_v31  ;;  %1972 = vst.msk [vmem:[#allocation2 + $0x57] sm:$0x1] %vm1970_vm1, %v8168_v31  ;;  %s8170_s22 = smov 32  }
  0x1c   : > { %7605 = vmatpush3.bf16.msra.mxu0 %v7929_v0  ;;  %v7933_v3 = vld [vmem:[%s8325_s24] sm:$0xff]   ;;  %v7934_v5 = vld [vmem:[%s8325_s24 + $0x8] sm:$0xff]   ;;  %v7935_v6 = vld [vmem:[%s8325_s24 + $0x10] sm:$0xff]   ;;  %1973 = vst.msk [vmem:[#allocation2 + $0xa7] sm:$0x1] %vm1970_vm1, %v8168_v31  ;;  %vm2763_vm3 = vcmask 785408   ;;  %s10335_s0 = scalar_lea.hbm %s10393_s17, %s7375_s18 }
  0x1d   : > { %7606 = vmatprep.subr.bf16.mxu0 %v7930_v1  ;;  %7612 = vmatprep.mubr.msk.bf16.mxu0 %vm1040_vm0, %v7933_v3  ;;  %v7936_v7 = vld [vmem:[%s8325_s24 + $0x18] sm:$0xff]   ;;  %v7937_v8 = vld [vmem:[%s8325_s24 + $0x20] sm:$0xff]   ;;  %v7938_v9 = vld [vmem:[%s8325_s24 + $0x28] sm:$0xff]   ;;  %1974 = vst.msk [vmem:[#allocation2 + $0xf7] sm:$0x1] %vm1970_vm1, %v8168_v31  ;;  %vm3885_vm4 = vcmask 516096  }
  0x1e   : > { %v7939_v10 = vld [vmem:[%s8325_s24 + $0x30] sm:$0xff]   ;;  %v7940_v11 = vld [vmem:[%s8325_s24 + $0x38] sm:$0xff]   ;;  %v7941_v12 = vld [vmem:[%s8325_s24 + $0x40] sm:$0xff]   ;;  %1975 = vst.msk [vmem:[#allocation2 + $0x147] sm:$0x1] %vm1970_vm1, %v8168_v31  ;;  %vm4142_vm5 = vcmask 1043456  }
  0x1f   : > { %v7942_v13 = vld [vmem:[%s8325_s24 + $0x48] sm:$0xff]   ;;  %v7943_v14 = vld [vmem:[%s8325_s24 + $0x50] sm:$0xff]   ;;  %v7944_v15 = vld [vmem:[%s8325_s24 + $0x58] sm:$0xff]   ;;  %1976 = vst.msk [vmem:[#allocation2 + $0x197] sm:$0x1] %vm1970_vm1, %v8168_v31  ;;  %vm4679_vm6 = vcmask 1041408  }
  0x20   : > { %7607 = vmatpush3.bf16.msra.mxu0 %v7930_v1  ;;  %v7945_v16 = vld [vmem:[%s8325_s24 + $0x60] sm:$0xff]   ;;  %v7946_v17 = vld [vmem:[%s8325_s24 + $0x68] sm:$0xff]   ;;  %v7947_v18 = vld [vmem:[%s8325_s24 + $0x70] sm:$0xff]   ;;  %1977 = vst.msk [vmem:[#allocation2 + $0x1e7] sm:$0x1] %vm1970_vm1, %v8168_v31  ;;  %vm4993_vm7 = vcmask 1041409  }
  0x21   : > { %7608 = vmatprep.subr.bf16.mxu0 %v7931_v2  ;;  %v7948_v19 = vld [vmem:[%s8325_s24 + $0x78] sm:$0xff]   ;;  %v7949_v20 = vld [vmem:[%s8325_s24 + $0x80] sm:$0xff]   ;;  %v7950_v21 = vld [vmem:[%s8325_s24 + $0x88] sm:$0xff]   ;;  %1978 = vst.msk [vmem:[#allocation2 + $0x237] sm:$0x1] %vm1970_vm1, %v8168_v31  ;;  %vm4996_vm8 = vcmask 1042434  }
  0x22   : > { %v7951_v22 = vld [vmem:[%s8325_s24 + $0x90] sm:$0xff]   ;;  %v7952_v23 = vld [vmem:[%s8325_s24 + $0x98] sm:$0xff]   ;;  %v7953_v24 = vld [vmem:[%s8325_s24 + $0xa0] sm:$0xff]   ;;  %1980 = vst.msk [vmem:[#allocation2 + $0x98] sm:$0x1] %vm1970_vm1, %v8168_v31  ;;  %vm4999_vm9 = vcmask 1043459  }
  0x23   : > { %v7954_v25 = vld [vmem:[%s8325_s24 + $0xa8] sm:$0xff]   ;;  %v7955_v26 = vld [vmem:[%s8325_s24 + $0xb0] sm:$0xff]   ;;  %v7956_v27 = vld [vmem:[%s8325_s24 + $0xb8] sm:$0xff]   ;;  %1981 = vst.msk [vmem:[#allocation2 + $0xe8] sm:$0x1] %vm1970_vm1, %v8168_v31  ;;  %vm5002_vm10 = vcmask 1044484  }
  0x24   : > { %7609 = vmatpush3.bf16.msra.mxu0 %v7931_v2  ;;  %v7957_v28 = vld [vmem:[%s8325_s24 + $0xc0] sm:$0xff]   ;;  %v7958_v29 = vld [vmem:[%s8325_s24 + $0xc8] sm:$0xff]   ;;  %v7959_v30 = vld [vmem:[%s8325_s24 + $0xd0] sm:$0xff]   ;;  %1982 = vst.msk [vmem:[#allocation2 + $0x138] sm:$0x1] %vm1970_vm1, %v8168_v31  ;;  %vm5005_vm11 = vcmask 1045509  }
  0x25   : > { %7610 = vmatprep.subr.bf16.mxu0 %v7932_v4  ;;  %1983 = vst.msk [vmem:[#allocation2 + $0x188] sm:$0x1] %vm1970_vm1, %v8168_v31  ;;  %1984 = vst.msk [vmem:[#allocation2 + $0x1d8] sm:$0x1] %vm1970_vm1, %v8168_v31  ;;  %v7960_v32 = vld [vmem:[%s8325_s24 + $0xd8] sm:$0xff]   ;;  %v7961_v33 = vld [vmem:[%s8325_s24 + $0xe0] sm:$0xff]  }
  0x26   : > { %1985 = vst.msk [vmem:[#allocation2 + $0x228] sm:$0x1] %vm1970_vm1, %v8168_v31  ;;  %1986 = vst.msk [vmem:[#allocation2 + $0x278] sm:$0x1] %vm1970_vm1, %v8168_v31  ;;  %v7962_v34 = vld [vmem:[%s8325_s24 + $0xe8] sm:$0xff]   ;;  %v7963_v35 = vld [vmem:[%s8325_s24 + $0xf0] sm:$0xff]  }
  0x27   : > { %3213 = vst.msk [vmem:[#allocation3 + $0x7] sm:$0x1] %vm1970_vm1, %v8168_v31  ;;  %3214 = vst.msk [vmem:[#allocation3 + $0x37] sm:$0x1] %vm1970_vm1, %v8168_v31  ;;  %v7964_v36 = vld [vmem:[%s8325_s24 + $0xf8] sm:$0xff]   ;;  %v7965_v37 = vld [vmem:[%s8325_s24 + $0x100] sm:$0xff]  }
  0x28   : > { %7611 = vmatpush3.bf16.msra.mxu0 %v7932_v4  ;;  %3215 = vst.msk [vmem:[#allocation3 + $0x67] sm:$0x1] %vm1970_vm1, %v8168_v31  ;;  %3216 = vst.msk [vmem:[#allocation3 + $0x97] sm:$0x1] %vm1970_vm1, %v8168_v31  ;;  %v7966_v38 = vld [vmem:[%s8325_s24 + $0x108] sm:$0xff]   ;;  %v7967_v39 = vld [vmem:[%s8325_s24 + $0x110] sm:$0xff]  }
  0x29   : > { %3217 = vst.msk [vmem:[#allocation3 + $0xc7] sm:$0x1] %vm1970_vm1, %v8168_v31  ;;  %3218 = vst.msk [vmem:[#allocation3 + $0xf7] sm:$0x1] %vm1970_vm1, %v8168_v31  ;;  %v7968_v40 = vld [vmem:[%s8325_s24 + $0x118] sm:$0xff]   ;;  %v7969_v41 = vld [vmem:[%s8325_s24 + $0x120] sm:$0xff]  }
  0x2a   : > { %3219 = vst.msk [vmem:[#allocation3 + $0x127] sm:$0x1] %vm1970_vm1, %v8168_v31  ;;  %3220 = vst.msk [vmem:[#allocation3 + $0x157] sm:$0x1] %vm1970_vm1, %v8168_v31  ;;  %v7970_v42 = vld [vmem:[%s8325_s24 + $0x128] sm:$0xff]   ;;  %v7971_v43 = vld [vmem:[%s8325_s24 + $0x130] sm:$0xff]  }
  0x2b   : > { %7613 = vmatmul.mubr.msk.bf16.vlgmr.msra.gmra.mxu0 %vm1040_vm0, %v7934_v5  ;;  %3221 = vst.msk [vmem:[#allocation3 + $0x28] sm:$0x1] %vm1970_vm1, %v8168_v31  ;;  %3222 = vst.msk [vmem:[#allocation3 + $0x58] sm:$0x1] %vm1970_vm1, %v8168_v31  ;;  %v7972_v44 = vld [vmem:[%s8325_s24 + $0x138] sm:$0xff]   ;;  %v7973_v45 = vld [vmem:[%s8325_s24 + $0x140] sm:$0xff]  }
  0x2c   : > { %7616 = vmatprep.mubr.msk.bf16.mxu0 %vm1040_vm0, %v7935_v6  ;;  %3223 = vst.msk [vmem:[#allocation3 + $0x88] sm:$0x1] %vm1970_vm1, %v8168_v31  ;;  %3224 = vst.msk [vmem:[#allocation3 + $0xb8] sm:$0x1] %vm1970_vm1, %v8168_v31  ;;  %v7974_v46 = vld [vmem:[%s8325_s24 + $0x148] sm:$0xff]   ;;  %v7975_v47 = vld [vmem:[%s8325_s24 + $0x150] sm:$0xff]  }
  0x2d   : > { %3225 = vst.msk [vmem:[#allocation3 + $0xe8] sm:$0x1] %vm1970_vm1, %v8168_v31  ;;  %3226 = vst.msk [vmem:[#allocation3 + $0x118] sm:$0x1] %vm1970_vm1, %v8168_v31  ;;  %v7976_v48 = vld [vmem:[%s8325_s24 + $0x158] sm:$0xff]   ;;  %v7977_v49 = vld [vmem:[%s8325_s24 + $0x160] sm:$0xff]  }
  0x2e   : > { %3227 = vst.msk [vmem:[#allocation3 + $0x148] sm:$0x1] %vm1970_vm1, %v8168_v31  ;;  %3228 = vst.msk [vmem:[#allocation3 + $0x178] sm:$0x1] %vm1970_vm1, %v8168_v31  ;;  %v7978_v50 = vld [vmem:[%s8325_s24 + $0x168] sm:$0xff]   ;;  %v7979_v51 = vld [vmem:[%s8325_s24 + $0x170] sm:$0xff]  }
  0x2f   : > { %v7980_v52 = vld [vmem:[%s8325_s24 + $0x178] sm:$0xff]   ;;  %v7981_v53 = vld [vmem:[%s8325_s24 + $0x180] sm:$0xff]   ;;  %v7982_v54 = vld [vmem:[%s8325_s24 + $0x188] sm:$0xff]   ;;  %3894 = vst.msk [vmem:[#allocation4 + $0x18] sm:$0x1] %vm3885_vm4, %v8168_v31  ;;  %vm5008_vm12 = vcmask 1046534  }
  0x30   : > { %v7983_v55 = vld [vmem:[%s8325_s24 + $0x190] sm:$0xff]   ;;  %v7984_v59 = vld [vmem:[%s8325_s24 + $0x198] sm:$0xff]   ;;  %v7985_v60 = vld [vmem:[%s8325_s24 + $0x1a0] sm:$0xff]   ;;  %3886 = vst.msk [vmem:[#allocation4 + $0x7] sm:$0x1] %vm3885_vm4, %v8168_v31  ;;  %vm5011_vm13 = vcmask 1047559  }
  0x31   : > { %v7997_v0 = vld [vmem:[%s10379_s3 + $0x28] sm:$0xff]   ;;  %v8506_v1 = vld [vmem:[%s10413_s2] ss:$0 sm:$0xff]  ;;  %v7987_v4 = vld [vmem:[%s8325_s24 + $0x1b0] sm:$0xff]   ;;  %3887 = vst.msk [vmem:[#allocation4 + $0x27] sm:$0x1] %vm3885_vm4, %v8168_v31 }
  0x32   : > { %v7986_v3 = vld [vmem:[%s8325_s24 + $0x1a8] sm:$0xff]   ;;  %7740 = vmatprep.subr.bf16.mxu1 %v7997_v0  ;;  %3888 = vst.msk [vmem:[#allocation4 + $0x47] sm:$0x1] %vm3885_vm4, %v8168_v31  ;;  %3889 = vst.msk [vmem:[#allocation4 + $0x67] sm:$0x1] %vm3885_vm4, %v8168_v31  ;;  %s10414_s29 = smov 64  }
  0x33   : > { %7617 = vmatmul.mubr.msk.bf16.gmra.mxu0 %vm1040_vm0, %v7936_v7  ;;  %7741 = vmatpush3.bf16.msra.mxu1 %v7997_v0  ;;  %v7998_v7 = vld [vmem:[%s10379_s3 + $0x20] sm:$0xff]   ;;  %3890 = vst.msk [vmem:[#allocation4 + $0x87] sm:$0x1] %vm3885_vm4, %v8168_v31  ;;  %3891 = vst.msk [vmem:[#allocation4 + $0xa7] sm:$0x1] %vm3885_vm4, %v8168_v31  ;;  %vm8172_vm14 = vmmov 0  }
  0x34   : > { %7620 = vmatprep.mubr.msk.bf16.mxu0 %vm1040_vm0, %v7937_v8  ;;  %7742 = vmatprep.subr.bf16.mxu1 %v7998_v7  ;;  %3892 = vst.msk [vmem:[#allocation4 + $0xc7] sm:$0x1] %vm3885_vm4, %v8168_v31  ;;  %3893 = vst.msk [vmem:[#allocation4 + $0xe7] sm:$0x1] %vm3885_vm4, %v8168_v31 }
  0x35   : > { %3895 = vst.msk [vmem:[#allocation4 + $0x38] sm:$0x1] %vm3885_vm4, %v8168_v31  ;;  %3896 = vst.msk [vmem:[#allocation4 + $0x58] sm:$0x1] %vm3885_vm4, %v8168_v31 }
  0x36   : > { %3897 = vst.msk [vmem:[#allocation4 + $0x78] sm:$0x1] %vm3885_vm4, %v8168_v31  ;;  %3898 = vst.msk [vmem:[#allocation4 + $0x98] sm:$0x1] %vm3885_vm4, %v8168_v31 }
  0x37   : > { %7743 = vmatpush3.bf16.msra.mxu1 %v7998_v7  ;;  %3899 = vst.msk [vmem:[#allocation4 + $0xb8] sm:$0x1] %vm3885_vm4, %v8168_v31  ;;  %3900 = vst.msk [vmem:[#allocation4 + $0xd8] sm:$0x1] %vm3885_vm4, %v8168_v31 }
  0x38   : > { %3901 = vst.msk [vmem:[#allocation4 + $0xf8] sm:$0x1] %vm3885_vm4, %v8168_v31  ;;  %4431 = vst.msk [vmem:[#allocation5 + $0x7] sm:$0x1] %vm3885_vm4, %v8168_v31 }
  0x39   : > { %4432 = vst.msk [vmem:[#allocation5 + $0x1f] sm:$0x1] %vm3885_vm4, %v8168_v31  ;;  %4433 = vst.msk [vmem:[#allocation5 + $0x37] sm:$0x1] %vm3885_vm4, %v8168_v31 }
  0x3a   : > { %4434 = vst.msk [vmem:[#allocation5 + $0x4f] sm:$0x1] %vm3885_vm4, %v8168_v31  ;;  %4435 = vst.msk [vmem:[#allocation5 + $0x67] sm:$0x1] %vm3885_vm4, %v8168_v31 }
  0x3b   : > { %7621 = vmatmul.mubr.msk.bf16.gmra.mxu0 %vm1040_vm0, %v7938_v9  ;;  %4436 = vst.msk [vmem:[#allocation5 + $0x7f] sm:$0x1] %vm3885_vm4, %v8168_v31  ;;  %4437 = vst.msk [vmem:[#allocation5 + $0x97] sm:$0x1] %vm3885_vm4, %v8168_v31 }
  0x3c   : > { %7624 = vmatprep.mubr.msk.bf16.mxu0 %vm1040_vm0, %v7939_v10  ;;  %4438 = vst.msk [vmem:[#allocation5 + $0xaf] sm:$0x1] %vm3885_vm4, %v8168_v31  ;;  %4439 = vst.msk [vmem:[#allocation5 + $0x10] sm:$0x1] %vm3885_vm4, %v8168_v31 }
  0x3d   : > { %4440 = vst.msk [vmem:[#allocation5 + $0x28] sm:$0x1] %vm3885_vm4, %v8168_v31  ;;  %4441 = vst.msk [vmem:[#allocation5 + $0x40] sm:$0x1] %vm3885_vm4, %v8168_v31 }
  0x3e   : > { %4442 = vst.msk [vmem:[#allocation5 + $0x58] sm:$0x1] %vm3885_vm4, %v8168_v31  ;;  %4443 = vst.msk [vmem:[#allocation5 + $0x70] sm:$0x1] %vm3885_vm4, %v8168_v31 }
  0x3f   : > { %4444 = vst.msk [vmem:[#allocation5 + $0x88] sm:$0x1] %vm3885_vm4, %v8168_v31  ;;  %4445 = vst.msk [vmem:[#allocation5 + $0xa0] sm:$0x1] %vm3885_vm4, %v8168_v31 }
  0x40   : > { %4446 = vst.msk [vmem:[#allocation5 + $0xb8] sm:$0x1] %vm3885_vm4, %v8168_v31 }
  0x43   : > { %7625 = vmatmul.mubr.msk.bf16.gmra.mxu0 %vm1040_vm0, %v7940_v11 }
  0x44   : > { %7628 = vmatprep.mubr.msk.bf16.mxu0 %vm1040_vm0, %v7941_v12 }
  0x4b   : > { %7629 = vmatmul.mubr.msk.bf16.gmra.mxu0 %vm1040_vm0, %v7942_v13 }
  0x4c   : > { %7632 = vmatprep.mubr.msk.bf16.mxu0 %vm1040_vm0, %v7943_v14 }
  0x53   : > { %7633 = vmatmul.mubr.msk.bf16.gmra.mxu0 %vm1040_vm0, %v7944_v15 }
  0x54   : > { %7636 = vmatprep.mubr.msk.bf16.mxu0 %vm1040_vm0, %v7945_v16  ;;  %v7999_v16 = vld [vmem:[%s10379_s3 + $0x18] sm:$0xff]  }
  0x55   : > { %7744 = vmatprep.subr.bf16.mxu1 %v7999_v16 }
  0x56   : > { %7745 = vmatpush3.bf16.msra.mxu1 %v7999_v16  ;;  %v7994_v16 = vld [vmem:[%s8325_s24 + $0x1e8] sm:$0xff]  }
  0x5b   : > { %7637 = vmatmul.mubr.msk.bf16.gmra.mxu0 %vm1040_vm0, %v7946_v17 }
  0x5c   : > { %7640 = vmatprep.mubr.msk.bf16.mxu0 %vm1040_vm0, %v7947_v18 }
  0x63   : > { %7641 = vmatmul.mubr.msk.bf16.gmra.mxu0 %vm1040_vm0, %v7948_v19  ;;  %v7988_v19 = vld [vmem:[%s8325_s24 + $0x1b8] sm:$0xff]  }
  0x64   : > { %7644 = vmatprep.mubr.msk.bf16.mxu0 %vm1040_vm0, %v7949_v20 }
  0x6b   : > { %7645 = vmatmul.mubr.msk.bf16.gmra.mxu0 %vm1040_vm0, %v7950_v21 }
  0x6c   : > { %7648 = vmatprep.mubr.msk.bf16.mxu0 %vm1040_vm0, %v7951_v22 }
  0x73   : > { %7649 = vmatmul.mubr.msk.bf16.gmra.mxu0 %vm1040_vm0, %v7952_v23 }
  0x74   : > { %7652 = vmatprep.mubr.msk.bf16.mxu0 %vm1040_vm0, %v7953_v24  ;;  %v7989_v24 = vld [vmem:[%s8325_s24 + $0x1c0] sm:$0xff]  }
  0x7b   : > { %7653 = vmatmul.mubr.msk.bf16.gmra.mxu0 %vm1040_vm0, %v7954_v25 }
  0x7c   : > { %7656 = vmatprep.mubr.msk.bf16.mxu0 %vm1040_vm0, %v7955_v26 }
  0x83   : > { %7657 = vmatmul.mubr.msk.bf16.gmra.mxu0 %vm1040_vm0, %v7956_v27 }
  0x84   : > { %7660 = vmatprep.mubr.msk.bf16.mxu0 %vm1040_vm0, %v7957_v28 }
  0x8b   : > { %7661 = vmatmul.mubr.msk.bf16.gmra.mxu0 %vm1040_vm0, %v7958_v29 }
  0x8c   : > { %7664 = vmatprep.mubr.msk.bf16.mxu0 %vm1040_vm0, %v7959_v30 }
  0x93   : > { %7665 = vmatmul.mubr.msk.bf16.gmra.mxu0 %vm1040_vm0, %v7960_v32  ;;  %v8000_v32 = vld [vmem:[%s10379_s3 + $0x10] sm:$0xff]  }
  0x94   : > { %7668 = vmatprep.mubr.msk.bf16.mxu0 %vm1040_vm0, %v7961_v33  ;;  %7746 = vmatprep.subr.bf16.mxu1 %v8000_v32 }
  0x95   : > { %7747 = vmatpush3.bf16.msra.mxu1 %v8000_v32 }
  0x9b   : > { %7669 = vmatmul.mubr.msk.bf16.gmra.mxu0 %vm1040_vm0, %v7962_v34 }
  0x9c   : > { %7672 = vmatprep.mubr.msk.bf16.mxu0 %vm1040_vm0, %v7963_v35 }
  0xa3   : > { %7673 = vmatmul.mubr.msk.bf16.gmra.mxu0 %vm1040_vm0, %v7964_v36 }
  0xa4   : > { %7676 = vmatprep.mubr.msk.bf16.mxu0 %vm1040_vm0, %v7965_v37 }
  0xab   : > { %7677 = vmatmul.mubr.msk.bf16.gmra.mxu0 %vm1040_vm0, %v7966_v38 }
  0xac   : > { %7680 = vmatprep.mubr.msk.bf16.mxu0 %vm1040_vm0, %v7967_v39 }
  0xb3   : > { %7681 = vmatmul.mubr.msk.bf16.gmra.mxu0 %vm1040_vm0, %v7968_v40 }
  0xb4   : > { %7684 = vmatprep.mubr.msk.bf16.mxu0 %vm1040_vm0, %v7969_v41 }
  0xbb   : > { %7685 = vmatmul.mubr.msk.bf16.gmra.mxu0 %vm1040_vm0, %v7970_v42 }
  0xbc   : > { %7688 = vmatprep.mubr.msk.bf16.mxu0 %vm1040_vm0, %v7971_v43 }
  0xc3   : > { %7689 = vmatmul.mubr.msk.bf16.gmra.mxu0 %vm1040_vm0, %v7972_v44 }
  0xc4   : > { %7692 = vmatprep.mubr.msk.bf16.mxu0 %vm1040_vm0, %v7973_v45  ;;  %v8001_v45 = vld [vmem:[%s10379_s3 + $0x8] sm:$0xff]  }
  0xc5   : > { %7748 = vmatprep.subr.bf16.mxu1 %v8001_v45 }
  0xc6   : > { %7749 = vmatpush3.bf16.msra.mxu1 %v8001_v45 }
  0xcb   : > { %7693 = vmatmul.mubr.msk.bf16.gmra.mxu0 %vm1040_vm0, %v7974_v46 }
  0xcc   : > { %7696 = vmatprep.mubr.msk.bf16.mxu0 %vm1040_vm0, %v7975_v47 }
  0xd3   : > { %7697 = vmatmul.mubr.msk.bf16.gmra.mxu0 %vm1040_vm0, %v7976_v48  ;;  %v7990_v48 = vld [vmem:[%s8325_s24 + $0x1c8] sm:$0xff]  }
  0xd4   : > { %7700 = vmatprep.mubr.msk.bf16.mxu0 %vm1040_vm0, %v7977_v49 }
  0xdb   : > { %7701 = vmatmul.mubr.msk.bf16.gmra.mxu0 %vm1040_vm0, %v7978_v50 }
  0xdc   : > { %7704 = vmatprep.mubr.msk.bf16.mxu0 %vm1040_vm0, %v7979_v51 }
  0xe3   : > { %7705 = vmatmul.mubr.msk.bf16.gmra.mxu0 %vm1040_vm0, %v7980_v52 }
  0xe4   : > { %7708 = vmatprep.mubr.msk.bf16.mxu0 %vm1040_vm0, %v7981_v53  ;;  %v7991_v53 = vld [vmem:[%s8325_s24 + $0x1d0] sm:$0xff]  }
  0xeb   : > { %v7614_v56 = vpop.f32.mrf.mxu0  ;;  %7709 = vmatmul.mubr.msk.bf16.gmra.mxu0 %vm1040_vm0, %v7982_v54 }
  0xec   : > { %7712 = vmatprep.mubr.msk.bf16.mxu0 %vm1040_vm0, %v7983_v55  ;;  %v1276_v6 = vadd.f32 %v7614_v56, %v8506_v1 }
  0xed   : > { %v1267_v57 = vpop.f32.mrf.mxu0 }
  0xee   : > { %v1268_v8 = vadd.f32 %v8506_v1, %v1267_v57  ;;  %v1780_v12 = vmax.f32 %v1276_v6, 0.0 }
  0xef   : > { %v7615_v58 = vpop.f32.mrf.mxu0 }
  0xf0   : > { %v1279_v13 = vadd.f32 %v7615_v58, %v8506_v1  ;;  %v1778_v17 = vmax.f32 %v1268_v8, 0.0 }
  0xf1   : > { %v1270_v61 = vpop.f32.mrf.mxu0 }
  0xf2   : > { %v1271_v20 = vadd.f32 %v8506_v1, %v1270_v61  ;;  %v1781_v27 = vmax.f32 %v1279_v13, 0.0 }
  0xf3   : > { %v7618_v62 = vpop.f32.mrf.mxu0  ;;  %7713 = vmatmul.mubr.msk.bf16.gmra.mxu0 %vm1040_vm0, %v7984_v59  ;;  %v8002_v59 = vld [vmem:[%s10379_s3] sm:$0xff]  }
  0xf4   : > { %7716 = vmatprep.mubr.msk.bf16.mxu0 %vm1040_vm0, %v7985_v60  ;;  %v1292_v25 = vadd.f32 %v7618_v62, %v8506_v1  ;;  %v1779_v35 = vmax.f32 %v1271_v20, 0.0  ;;  %7750 = vmatprep.subr.bf16.mxu1 %v8002_v59 }
  0xf5   : > { %v1283_v63 = vpop.f32.mrf.mxu0  ;;  %7751 = vmatpush3.bf16.msra.mxu1 %v8002_v59 }
  0xf6   : > { %v1284_v33 = vadd.f32 %v8506_v1, %v1283_v63  ;;  %v1784_v39 = vmax.f32 %v1292_v25, 0.0 }
  0xf7   : > { %v7619_v2 = vpop.f32.mrf.mxu0 }
  0xf8   : > { %v1295_v41 = vadd.f32 %v7619_v2, %v8506_v1  ;;  %v1782_v46 = vmax.f32 %v1284_v33, 0.0 }
  0xf9   : > { %v1286_v5 = vpop.f32.mrf.mxu0 }
  0xfa   : > { %v1287_v49 = vadd.f32 %v8506_v1, %v1286_v5  ;;  %v1785_v55 = vmax.f32 %v1295_v41, 0.0 }
  0xfb   : > { %v7622_v9 = vpop.f32.mrf.mxu0  ;;  %7717 = vmatmul.mubr.msk.bf16.gmra.mxu0 %vm1040_vm0, %v7986_v3 }
  0xfc   : > { %v1308_v10 = vadd.f32 %v7622_v9, %v8506_v1  ;;  %7720 = vmatprep.mubr.msk.bf16.mxu0 %vm1040_vm0, %v7987_v4  ;;  %v1783_v61 = vmax.f32 %v1287_v49, 0.0  ;;  %v7992_v4 = vld [vmem:[%s8325_s24 + $0x1d8] sm:$0xff]  }
  0xfd   : > { %v1299_v11 = vpop.f32.mrf.mxu0 }
  0xfe   : > { %v1788_v14 = vmax.f32 %v1308_v10, 0.0  ;;  %v1300_v15 = vadd.f32 %v8506_v1, %v1299_v11  ;;  %v7993_v11 = vld [vmem:[%s8325_s24 + $0x1e0] sm:$0xff]  }
  0xff   : > { %v7623_v18 = vpop.f32.mrf.mxu0 }
 0x100   : > { %v1908_v21 = vmax.f32 %v1780_v12, %v1788_v14  ;;  %v1786_v22 = vmax.f32 %v1300_v15, 0.0  ;;  %v1311_v23 = vadd.f32 %v7623_v18, %v8506_v1 }
 0x101   : > { %v1302_v26 = vpop.f32.mrf.mxu0 }
 0x102   : > { %1990 = vst.msk [vmem:[#allocation2 + $0x18] sm:$0xff] %vm1987_vm2, %v1908_v21  ;;  %v1906_v28 = vmax.f32 %v1778_v17, %v1786_v22  ;;  %v1789_v29 = vmax.f32 %v1311_v23, 0.0  ;;  %v1303_v30 = vadd.f32 %v8506_v1, %v1302_v26  ;;  %v7995_v23 = vld [vmem:[%s8325_s24 + $0x1f0] sm:$0xff]  }
 0x103   : > { %v7626_v34 = vpop.f32.mrf.mxu0  ;;  %7721 = vmatmul.mubr.msk.bf16.gmra.mxu0 %vm1040_vm0, %v7988_v19 }
 0x104   : > { %1988 = vst.msk [vmem:[#allocation2 + $0x8] sm:$0xff] %vm1987_vm2, %v1906_v28  ;;  %v1909_v36 = vmax.f32 %v1781_v27, %v1789_v29  ;;  %v1787_v37 = vmax.f32 %v1303_v30, 0.0  ;;  %v1324_v38 = vadd.f32 %v7626_v34, %v8506_v1  ;;  %7724 = vmatprep.mubr.msk.bf16.mxu0 %vm1040_vm0, %v7989_v24 }
 0x105   : > { %v1315_v40 = vpop.f32.mrf.mxu0 }
 0x106   : > { %1991 = vst.msk [vmem:[#allocation2 + $0x20] sm:$0xff] %vm1987_vm2, %v1909_v36  ;;  %v1907_v42 = vmax.f32 %v1779_v35, %v1787_v37  ;;  %v1792_v43 = vmax.f32 %v1324_v38, 0.0  ;;  %v1316_v44 = vadd.f32 %v8506_v1, %v1315_v40 }
 0x107   : > { %v7627_v47 = vpop.f32.mrf.mxu0 }
 0x108   : > { %1989 = vst.msk [vmem:[#allocation2 + $0x10] sm:$0xff] %vm1987_vm2, %v1907_v42  ;;  %v1912_v50 = vmax.f32 %v1784_v39, %v1792_v43  ;;  %v1790_v51 = vmax.f32 %v1316_v44, 0.0  ;;  %v1327_v52 = vadd.f32 %v7627_v47, %v8506_v1  ;;  %v7996_v43 = vld [vmem:[%s8325_s24 + $0x1f8] sm:$0xff]  }
 0x109   : > { %v1318_v54 = vpop.f32.mrf.mxu0 }
 0x10a   : > { %1994 = vst.msk [vmem:[#allocation2 + $0x38] sm:$0xff] %vm1987_vm2, %v1912_v50  ;;  %v1910_v56 = vmax.f32 %v1782_v46, %v1790_v51  ;;  %v1793_v57 = vmax.f32 %v1327_v52, 0.0  ;;  %v1319_v58 = vadd.f32 %v8506_v1, %v1318_v54 }
 0x10b   : > { %v7630_v60 = vpop.f32.mrf.mxu0  ;;  %7725 = vmatmul.mubr.msk.bf16.gmra.mxu0 %vm1040_vm0, %v7990_v48 }
 0x10c   : > { %1992 = vst.msk [vmem:[#allocation2 + $0x28] sm:$0xff] %vm1987_vm2, %v1910_v56  ;;  %v1913_v62 = vmax.f32 %v1785_v55, %v1793_v57  ;;  %v1791_v63 = vmax.f32 %v1319_v58, 0.0  ;;  %7728 = vmatprep.mubr.msk.bf16.mxu0 %vm1040_vm0, %v7991_v53  ;;  %v1340_v25 = vadd.f32 %v7630_v60, %v8506_v1 }
 0x10d   : > { %v1331_v0 = vpop.f32.mrf.mxu0  ;;  %v2215_v3 = vld [vmem:[#allocation2 + $0x19] ss:$2 sm:$0xff]  ;;  %v2135_v8 = vld [vmem:[#allocation2 + $0x18] ss:$2 sm:$0xff] }
 0x10e   : > { %1995 = vst.msk [vmem:[#allocation2 + $0x40] sm:$0xff] %vm1987_vm2, %v1913_v62  ;;  %v1911_v2 = vmax.f32 %v1783_v61, %v1791_v63  ;;  %v1332_v26 = vadd.f32 %v8506_v1, %v1331_v0  ;;  %v1796_v33 = vmax.f32 %v1340_v25, 0.0 }
 0x10f   : > { %v7631_v5 = vpop.f32.mrf.mxu0  ;;  %v2213_v6 = vld [vmem:[#allocation2 + $0x9] ss:$2 sm:$0xff]  ;;  %v2133_v7 = vld [vmem:[#allocation2 + $0x8] ss:$2 sm:$0xff] }
 0x110   : > { %1993 = vst.msk [vmem:[#allocation2 + $0x30] sm:$0xff] %vm1987_vm2, %v1911_v2  ;;  %v2276_v9 = vpack.c.bf16 %v2215_v3, %v2213_v6  ;;  %v8560_v10 = vpack.c.bf16 %v2135_v8, %v2133_v7  ;;  %v1343_v34 = vadd.f32 %v7631_v5, %v8506_v1  ;;  %v2293_v37 = vld [vmem:[#allocation2 + $0xa] ss:$2 sm:$0xff]  ;;  %v1794_v38 = vmax.f32 %v1332_v26, 0.0 }
 0x111   : > { %v1334_v12 = vpop.f32.mrf.mxu0 }
 0x112   : > { %2436 = vrot.lane.b32.xlu1 %v2276_v9, %s10400_s21  ;;  %2388 = vrot.lane.b32.xlu0 %v8560_v10, %s8170_s22  ;;  %v1335_v39 = vadd.f32 %v8506_v1, %v1334_v12  ;;  %v1797_v50 = vmax.f32 %v1343_v34, 0.0 }
 0x113   : > { %v7634_v13 = vpop.f32.mrf.mxu0  ;;  %7729 = vmatmul.mubr.msk.bf16.gmra.mxu0 %vm1040_vm0, %v7992_v4  ;;  %v2295_v29 = vld [vmem:[#allocation2 + $0x1a] ss:$2 sm:$0xff] }
 0x114   : > { %7732 = vmatprep.mubr.msk.bf16.mxu0 %vm1040_vm0, %v7993_v11  ;;  %v2356_v42 = vpack.c.bf16 %v2295_v29, %v2293_v37  ;;  %v1356_v48 = vadd.f32 %v7634_v13, %v8506_v1  ;;  %v1795_v56 = vmax.f32 %v1335_v39, 0.0 }
 0x115   : > { %v1347_v14 = vpop.f32.mrf.mxu0  ;;  %v2219_v15 = vld [vmem:[#allocation2 + $0x39] ss:$2 sm:$0xff]  ;;  %v2139_v20 = vld [vmem:[#allocation2 + $0x38] ss:$2 sm:$0xff] }
 0x116   : > { %v2299_v41 = vld [vmem:[#allocation2 + $0x3a] ss:$2 sm:$0xff]  ;;  %v1348_v54 = vadd.f32 %v8506_v1, %v1347_v14  ;;  %v1800_v60 = vmax.f32 %v1356_v48, 0.0 }
 0x117   : > { %v7635_v17 = vpop.f32.mrf.mxu0  ;;  %v2217_v18 = vld [vmem:[#allocation2 + $0x29] ss:$2 sm:$0xff]  ;;  %v2137_v19 = vld [vmem:[#allocation2 + $0x28] ss:$2 sm:$0xff] }
 0x118   : > { %v2277_v21 = vpack.c.bf16 %v2219_v15, %v2217_v18  ;;  %v8569_v22 = vpack.c.bf16 %v2139_v20, %v2137_v19  ;;  %v2297_v32 = vld [vmem:[#allocation2 + $0x2a] ss:$2 sm:$0xff]  ;;  %v1359_v62 = vadd.f32 %v7635_v17, %v8506_v1  ;;  %v1798_v3 = vmax.f32 %v1348_v54, 0.0 }
 0x119   : > { %v1350_v24 = vpop.f32.mrf.mxu0  ;;  %v2357_v47 = vpack.c.bf16 %v2299_v41, %v2297_v32 }
 0x11a   : > { %2438 = vrot.lane.b32.xlu1 %v2277_v21, %s10400_s21  ;;  %2390 = vrot.lane.b32.xlu0 %v8569_v22, %s8170_s22  ;;  %v1351_v5 = vadd.f32 %v8506_v1, %v1350_v24  ;;  %v1801_v11 = vmax.f32 %v1359_v62, 0.0 }
 0x11b   : > { %v7638_v27 = vpop.f32.mrf.mxu0  ;;  %7733 = vmatmul.mubr.msk.bf16.gmra.mxu0 %vm1040_vm0, %v7994_v16 }
 0x11c   : > { %v1372_v28 = vadd.f32 %v7638_v27, %v8506_v1  ;;  %7736 = vmatprep.mubr.msk.bf16.mxu0 %vm1040_vm0, %v7995_v23  ;;  %v1799_v16 = vmax.f32 %v1351_v5, 0.0 }
 0x11d   : > { %v1363_v30 = vpop.f32.mrf.mxu0 }
 0x11e   : > { %v1804_v35 = vmax.f32 %v1372_v28, 0.0  ;;  %v1364_v36 = vadd.f32 %v8506_v1, %v1363_v30  ;;  %2550 = vrot.lane.b32.xlu1 %v2277_v21, %s8170_s22  ;;  %2548 = vrot.lane.b32.xlu0 %v2276_v9, %s8170_s22 }
 0x11f   : > { %v7639_v40 = vpop.f32.mrf.mxu0 }
 0x120   : > { %v1916_v44 = vmax.f32 %v1796_v33, %v1804_v35  ;;  %v1802_v45 = vmax.f32 %v1364_v36, 0.0  ;;  %v1375_v46 = vadd.f32 %v7639_v40, %v8506_v1 }
 0x121   : > { %v1366_v49 = vpop.f32.mrf.mxu0 }
 0x122   : > { %1998 = vst.msk [vmem:[#allocation2 + $0x68] sm:$0xff] %vm1987_vm2, %v1916_v44  ;;  %v1914_v51 = vmax.f32 %v1794_v38, %v1802_v45  ;;  %v1805_v52 = vmax.f32 %v1375_v46, 0.0  ;;  %v1367_v53 = vadd.f32 %v8506_v1, %v1366_v49  ;;  %2598 = vrot.lane.b32.xlu1 %v2357_v47, %s10400_s21  ;;  %2596 = vrot.lane.b32.xlu0 %v2356_v42, %s10400_s21 }
 0x123   : > { %v7642_v55 = vpop.f32.mrf.mxu0  ;;  %7737 = vmatmul.mubr.msk.bf16.gmra.mxu0 %vm1040_vm0, %v7996_v43 }
 0x124   : > { %1996 = vst.msk [vmem:[#allocation2 + $0x58] sm:$0xff] %vm1987_vm2, %v1914_v51  ;;  %v1917_v57 = vmax.f32 %v1797_v50, %v1805_v52  ;;  %v1803_v58 = vmax.f32 %v1367_v53, 0.0  ;;  %v1388_v59 = vadd.f32 %v7642_v55, %v8506_v1 }
 0x125   : > { %v1379_v61 = vpop.f32.mrf.mxu0 }
 0x126   : > { %1999 = vst.msk [vmem:[#allocation2 + $0x70] sm:$0xff] %vm1987_vm2, %v1917_v57  ;;  %v1915_v63 = vmax.f32 %v1795_v56, %v1803_v58  ;;  %v1808_v0 = vmax.f32 %v1388_v59, 0.0  ;;  %v1380_v2 = vadd.f32 %v8506_v1, %v1379_v61 }
 0x127   : > { %v7643_v4 = vpop.f32.mrf.mxu0 }
 0x128   : > { %1997 = vst.msk [vmem:[#allocation2 + $0x60] sm:$0xff] %vm1987_vm2, %v1915_v63  ;;  %v1920_v6 = vmax.f32 %v1800_v60, %v1808_v0  ;;  %v1806_v7 = vmax.f32 %v1380_v2, 0.0  ;;  %v1391_v8 = vadd.f32 %v7643_v4, %v8506_v1 }
 0x129   : > { %v1382_v9 = vpop.f32.mrf.mxu0 }
 0x12a   : > { %2002 = vst.msk [vmem:[#allocation2 + $0x88] sm:$0xff] %vm1987_vm2, %v1920_v6  ;;  %v1918_v12 = vmax.f32 %v1798_v3, %v1806_v7  ;;  %v1809_v13 = vmax.f32 %v1391_v8, 0.0  ;;  %v1383_v14 = vadd.f32 %v8506_v1, %v1382_v9 }
 0x12b   : > { %v7646_v15 = vpop.f32.mrf.mxu0 }
 0x12c   : > { %2000 = vst.msk [vmem:[#allocation2 + $0x78] sm:$0xff] %vm1987_vm2, %v1918_v12  ;;  %v1921_v17 = vmax.f32 %v1801_v11, %v1809_v13  ;;  %v1807_v18 = vmax.f32 %v1383_v14, 0.0  ;;  %v1404_v40 = vadd.f32 %v7646_v15, %v8506_v1 }
 0x12d   : > { %v1395_v19 = vpop.f32.mrf.mxu0  ;;  %v2143_v24 = vld [vmem:[#allocation2 + $0x68] ss:$2 sm:$0xff]  ;;  %v2223_v29 = vld [vmem:[#allocation2 + $0x69] ss:$2 sm:$0xff] }
 0x12e   : > { %2003 = vst.msk [vmem:[#allocation2 + $0x90] sm:$0xff] %vm1987_vm2, %v1921_v17  ;;  %v1919_v20 = vmax.f32 %v1799_v16, %v1807_v18  ;;  %v1396_v44 = vadd.f32 %v8506_v1, %v1395_v19  ;;  %v1812_v49 = vmax.f32 %v1404_v40, 0.0 }
 0x12f   : > { %v7647_v21 = vpop.f32.mrf.mxu0  ;;  %v2141_v23 = vld [vmem:[#allocation2 + $0x58] ss:$2 sm:$0xff]  ;;  %v2221_v27 = vld [vmem:[#allocation2 + $0x59] ss:$2 sm:$0xff] }
 0x130   : > { %2001 = vst.msk [vmem:[#allocation2 + $0x80] sm:$0xff] %vm1987_vm2, %v1919_v20  ;;  %v8607_v25 = vpack.c.bf16 %v2143_v24, %v2141_v23  ;;  %v2278_v30 = vpack.c.bf16 %v2223_v29, %v2221_v27  ;;  %v2301_v43 = vld [vmem:[#allocation2 + $0x5a] ss:$2 sm:$0xff]  ;;  %v1407_v50 = vadd.f32 %v7647_v21, %v8506_v1  ;;  %v1810_v55 = vmax.f32 %v1396_v44, 0.0 }
 0x131   : > { %v1398_v26 = vpop.f32.mrf.mxu0 }
 0x132   : > { %2392 = vrot.lane.b32.xlu0 %v8607_v25, %s8170_s22  ;;  %v1399_v53 = vadd.f32 %v8506_v1, %v1398_v26  ;;  %v1813_v62 = vmax.f32 %v1407_v50, 0.0 }
 0x133   : > { %v7650_v28 = vpop.f32.mrf.mxu0  ;;  %v2303_v39 = vld [vmem:[#allocation2 + $0x6a] ss:$2 sm:$0xff] }
 0x134   : > { %v2358_v47 = vpack.c.bf16 %v2303_v39, %v2301_v43  ;;  %v1420_v59 = vadd.f32 %v7650_v28, %v8506_v1  ;;  %v1811_v3 = vmax.f32 %v1399_v53, 0.0 }
 0x135   : > { %v1411_v32 = vpop.f32.mrf.mxu0  ;;  %v2147_v35 = vld [vmem:[#allocation2 + $0x88] ss:$2 sm:$0xff]  ;;  %v2227_v42 = vld [vmem:[#allocation2 + $0x89] ss:$2 sm:$0xff] }
 0x136   : > { %2440 = vrot.lane.b32.xlu0 %v2278_v30, %s10400_s21  ;;  %v1412_v4 = vadd.f32 %v8506_v1, %v1411_v32  ;;  %v2307_v6 = vld [vmem:[#allocation2 + $0x8a] ss:$2 sm:$0xff]  ;;  %v1816_v12 = vmax.f32 %v1420_v59, 0.0 }
 0x137   : > { %v7651_v33 = vpop.f32.mrf.mxu0  ;;  %v2145_v34 = vld [vmem:[#allocation2 + $0x78] ss:$2 sm:$0xff]  ;;  %v2225_v38 = vld [vmem:[#allocation2 + $0x79] ss:$2 sm:$0xff] }
 0x138   : > { %v8612_v36 = vpack.c.bf16 %v2147_v35, %v2145_v34  ;;  %v2279_v46 = vpack.c.bf16 %v2227_v42, %v2225_v38  ;;  %v2305_v61 = vld [vmem:[#allocation2 + $0x7a] ss:$2 sm:$0xff]  ;;  %v1423_v14 = vadd.f32 %v7651_v33, %v8506_v1  ;;  %v1814_v18 = vmax.f32 %v1412_v4, 0.0 }
 0x139   : > { %v1414_v37 = vpop.f32.mrf.mxu0  ;;  %v2359_v11 = vpack.c.bf16 %v2307_v6, %v2305_v61 }
 0x13a   : > { %2394 = vrot.lane.b32.xlu1 %v8612_v36, %s8170_s22  ;;  %2552 = vrot.lane.b32.xlu0 %v2278_v30, %s8170_s22  ;;  %v1415_v20 = vadd.f32 %v8506_v1, %v1414_v37  ;;  %v1817_v27 = vmax.f32 %v1423_v14, 0.0 }
 0x13b   : > { %v7654_v41 = vpop.f32.mrf.mxu0 }
 0x13c   : > { %v1436_v45 = vadd.f32 %v7654_v41, %v8506_v1  ;;  %v1815_v33 = vmax.f32 %v1415_v20, 0.0 }
 0x13d   : > { %v1427_v48 = vpop.f32.mrf.mxu0 }
 0x13e   : > { %v1820_v51 = vmax.f32 %v1436_v45, 0.0  ;;  %v1428_v52 = vadd.f32 %v8506_v1, %v1427_v48  ;;  %2442 = vrot.lane.b32.xlu1 %v2279_v46, %s10400_s21  ;;  %2600 = vrot.lane.b32.xlu0 %v2358_v47, %s10400_s21 }
 0x13f   : > { %v7655_v54 = vpop.f32.mrf.mxu0 }
 0x140   : > { %v1924_v56 = vmax.f32 %v1812_v49, %v1820_v51  ;;  %v1818_v57 = vmax.f32 %v1428_v52, 0.0  ;;  %v1439_v58 = vadd.f32 %v7655_v54, %v8506_v1 }
 0x141   : > { %v1430_v60 = vpop.f32.mrf.mxu0 }
 0x142   : > { %2006 = vst.msk [vmem:[#allocation2 + $0xb8] sm:$0xff] %vm1987_vm2, %v1924_v56  ;;  %v1922_v63 = vmax.f32 %v1810_v55, %v1818_v57  ;;  %v1821_v0 = vmax.f32 %v1439_v58, 0.0  ;;  %v1431_v2 = vadd.f32 %v8506_v1, %v1430_v60  ;;  %2554 = vrot.lane.b32.xlu1 %v2279_v46, %s8170_s22 }
 0x143   : > { %v7658_v5 = vpop.f32.mrf.mxu0 }
 0x144   : > { %2004 = vst.msk [vmem:[#allocation2 + $0xa8] sm:$0xff] %vm1987_vm2, %v1922_v63  ;;  %v1925_v7 = vmax.f32 %v1813_v62, %v1821_v0  ;;  %v1819_v8 = vmax.f32 %v1431_v2, 0.0  ;;  %v1452_v9 = vadd.f32 %v7658_v5, %v8506_v1 }
 0x145   : > { %v1443_v13 = vpop.f32.mrf.mxu0 }
 0x146   : > { %2007 = vst.msk [vmem:[#allocation2 + $0xc0] sm:$0xff] %vm1987_vm2, %v1925_v7  ;;  %v1923_v15 = vmax.f32 %v1811_v3, %v1819_v8  ;;  %v1824_v16 = vmax.f32 %v1452_v9, 0.0  ;;  %v1444_v17 = vadd.f32 %v8506_v1, %v1443_v13  ;;  %2602 = vrot.lane.b32.xlu1 %v2359_v11, %s10400_s21 }
 0x147   : > { %v7659_v19 = vpop.f32.mrf.mxu0 }
 0x148   : > { %2005 = vst.msk [vmem:[#allocation2 + $0xb0] sm:$0xff] %vm1987_vm2, %v1923_v15  ;;  %v1928_v21 = vmax.f32 %v1816_v12, %v1824_v16  ;;  %v1822_v23 = vmax.f32 %v1444_v17, 0.0  ;;  %v1455_v24 = vadd.f32 %v7659_v19, %v8506_v1 }
 0x149   : > { %v1446_v26 = vpop.f32.mrf.mxu0 }
 0x14a   : > { %2010 = vst.msk [vmem:[#allocation2 + $0xd8] sm:$0xff] %vm1987_vm2, %v1928_v21  ;;  %v1926_v28 = vmax.f32 %v1814_v18, %v1822_v23  ;;  %v1825_v29 = vmax.f32 %v1455_v24, 0.0  ;;  %v1447_v30 = vadd.f32 %v8506_v1, %v1446_v26 }
 0x14b   : > { %v7662_v32 = vpop.f32.mrf.mxu0 }
 0x14c   : > { %2008 = vst.msk [vmem:[#allocation2 + $0xc8] sm:$0xff] %vm1987_vm2, %v1926_v28  ;;  %v1929_v34 = vmax.f32 %v1817_v27, %v1825_v29  ;;  %v1823_v35 = vmax.f32 %v1447_v30, 0.0  ;;  %v1468_v56 = vadd.f32 %v7662_v32, %v8506_v1 }
 0x14d   : > { %v1459_v37 = vpop.f32.mrf.mxu0  ;;  %v2151_v41 = vld [vmem:[#allocation2 + $0xb8] ss:$2 sm:$0xff]  ;;  %v2231_v46 = vld [vmem:[#allocation2 + $0xb9] ss:$2 sm:$0xff] }
 0x14e   : > { %2011 = vst.msk [vmem:[#allocation2 + $0xe0] sm:$0xff] %vm1987_vm2, %v1929_v34  ;;  %v1927_v38 = vmax.f32 %v1815_v33, %v1823_v35  ;;  %v1460_v60 = vadd.f32 %v8506_v1, %v1459_v37  ;;  %v1828_v2 = vmax.f32 %v1468_v56, 0.0 }
 0x14f   : > { %v7663_v39 = vpop.f32.mrf.mxu0  ;;  %v2149_v40 = vld [vmem:[#allocation2 + $0xa8] ss:$2 sm:$0xff]  ;;  %v2229_v44 = vld [vmem:[#allocation2 + $0xa9] ss:$2 sm:$0xff] }
 0x150   : > { %2009 = vst.msk [vmem:[#allocation2 + $0xd0] sm:$0xff] %vm1987_vm2, %v1927_v38  ;;  %v8645_v42 = vpack.c.bf16 %v2151_v41, %v2149_v40  ;;  %v2280_v47 = vpack.c.bf16 %v2231_v46, %v2229_v44  ;;  %v2309_v59 = vld [vmem:[#allocation2 + $0xaa] ss:$2 sm:$0xff]  ;;  %v1471_v3 = vadd.f32 %v7663_v39, %v8506_v1  ;;  %v1826_v8 = vmax.f32 %v1460_v60, 0.0 }
 0x151   : > { %v1462_v43 = vpop.f32.mrf.mxu0 }
 0x152   : > { %2396 = vrot.lane.b32.xlu0 %v8645_v42, %s8170_s22  ;;  %v1463_v6 = vadd.f32 %v8506_v1, %v1462_v43  ;;  %v1829_v16 = vmax.f32 %v1471_v3, 0.0 }
 0x153   : > { %v7666_v45 = vpop.f32.mrf.mxu0  ;;  %v2311_v55 = vld [vmem:[#allocation2 + $0xba] ss:$2 sm:$0xff] }
 0x154   : > { %v2360_v63 = vpack.c.bf16 %v2311_v55, %v2309_v59  ;;  %v1484_v13 = vadd.f32 %v7666_v45, %v8506_v1  ;;  %v1827_v20 = vmax.f32 %v1463_v6, 0.0 }
 0x155   : > { %v1475_v48 = vpop.f32.mrf.mxu0  ;;  %v2155_v51 = vld [vmem:[#allocation2 + $0xd8] ss:$2 sm:$0xff]  ;;  %v2235_v58 = vld [vmem:[#allocation2 + $0xd9] ss:$2 sm:$0xff] }
 0x156   : > { %2444 = vrot.lane.b32.xlu0 %v2280_v47, %s10400_s21  ;;  %v1476_v21 = vadd.f32 %v8506_v1, %v1475_v48  ;;  %v2315_v24 = vld [vmem:[#allocation2 + $0xda] ss:$2 sm:$0xff]  ;;  %v1832_v30 = vmax.f32 %v1484_v13, 0.0 }
 0x157   : > { %v7667_v49 = vpop.f32.mrf.mxu0  ;;  %v2153_v50 = vld [vmem:[#allocation2 + $0xc8] ss:$2 sm:$0xff]  ;;  %v2233_v54 = vld [vmem:[#allocation2 + $0xc9] ss:$2 sm:$0xff] }
 0x158   : > { %v8650_v52 = vpack.c.bf16 %v2155_v51, %v2153_v50  ;;  %v2281_v62 = vpack.c.bf16 %v2235_v58, %v2233_v54  ;;  %v2313_v15 = vld [vmem:[#allocation2 + $0xca] ss:$2 sm:$0xff]  ;;  %v1487_v33 = vadd.f32 %v7667_v49, %v8506_v1  ;;  %v1830_v38 = vmax.f32 %v1476_v21, 0.0 }
 0x159   : > { %v1478_v53 = vpop.f32.mrf.mxu0  ;;  %v2361_v29 = vpack.c.bf16 %v2315_v24, %v2313_v15 }
 0x15a   : > { %2398 = vrot.lane.b32.xlu1 %v8650_v52, %s8170_s22  ;;  %2556 = vrot.lane.b32.xlu0 %v2280_v47, %s8170_s22  ;;  %v1479_v40 = vadd.f32 %v8506_v1, %v1478_v53  ;;  %v1833_v46 = vmax.f32 %v1487_v33, 0.0 }
 0x15b   : > { %v7670_v57 = vpop.f32.mrf.mxu0 }
 0x15c   : > { %v1500_v61 = vadd.f32 %v7670_v57, %v8506_v1  ;;  %v1831_v51 = vmax.f32 %v1479_v40, 0.0 }
 0x15d   : > { %v1491_v0 = vpop.f32.mrf.mxu0 }
 0x15e   : > { %v1836_v4 = vmax.f32 %v1500_v61, 0.0  ;;  %v1492_v5 = vadd.f32 %v8506_v1, %v1491_v0  ;;  %2446 = vrot.lane.b32.xlu1 %v2281_v62, %s10400_s21  ;;  %2604 = vrot.lane.b32.xlu0 %v2360_v63, %s10400_s21 }
 0x15f   : > { %v7671_v7 = vpop.f32.mrf.mxu0 }
 0x160   : > { %v1932_v9 = vmax.f32 %v1828_v2, %v1836_v4  ;;  %v1834_v11 = vmax.f32 %v1492_v5, 0.0  ;;  %v1503_v12 = vadd.f32 %v7671_v7, %v8506_v1 }
 0x161   : > { %v1494_v14 = vpop.f32.mrf.mxu0 }
 0x162   : > { %2014 = vst.msk [vmem:[#allocation2 + $0x108] sm:$0xff] %vm1987_vm2, %v1932_v9  ;;  %v1930_v17 = vmax.f32 %v1826_v8, %v1834_v11  ;;  %v1837_v18 = vmax.f32 %v1503_v12, 0.0  ;;  %v1495_v19 = vadd.f32 %v8506_v1, %v1494_v14  ;;  %2558 = vrot.lane.b32.xlu1 %v2281_v62, %s8170_s22 }
 0x163   : > { %v7674_v23 = vpop.f32.mrf.mxu0 }
 0x164   : > { %2012 = vst.msk [vmem:[#allocation2 + $0xf8] sm:$0xff] %vm1987_vm2, %v1930_v17  ;;  %v1933_v26 = vmax.f32 %v1829_v16, %v1837_v18  ;;  %v1835_v27 = vmax.f32 %v1495_v19, 0.0  ;;  %v1516_v28 = vadd.f32 %v7674_v23, %v8506_v1 }
 0x165   : > { %v1507_v32 = vpop.f32.mrf.mxu0 }
 0x166   : > { %2015 = vst.msk [vmem:[#allocation2 + $0x110] sm:$0xff] %vm1987_vm2, %v1933_v26  ;;  %v1931_v34 = vmax.f32 %v1827_v20, %v1835_v27  ;;  %v1840_v35 = vmax.f32 %v1516_v28, 0.0  ;;  %v1508_v37 = vadd.f32 %v8506_v1, %v1507_v32  ;;  %2606 = vrot.lane.b32.xlu1 %v2361_v29, %s10400_s21 }
 0x167   : > { %v7675_v39 = vpop.f32.mrf.mxu0 }
 0x168   : > { %2013 = vst.msk [vmem:[#allocation2 + $0x100] sm:$0xff] %vm1987_vm2, %v1931_v34  ;;  %v1936_v41 = vmax.f32 %v1832_v30, %v1840_v35  ;;  %v1838_v43 = vmax.f32 %v1508_v37, 0.0  ;;  %v1519_v44 = vadd.f32 %v7675_v39, %v8506_v1  ;;  %v2055_v34 = vld [vmem:[#allocation2 + $0x17] ss:$2 sm:$0xff]  ;;  %v2053_v35 = vld [vmem:[#allocation2 + $0x7] ss:$2 sm:$0xff] }
 0x169   : > { %v1510_v45 = vpop.f32.mrf.mxu0 }
 0x16a   : > { %2018 = vst.msk [vmem:[#allocation2 + $0x128] sm:$0xff] %vm1987_vm2, %v1936_v41  ;;  %v1934_v47 = vmax.f32 %v1830_v38, %v1838_v43  ;;  %v1841_v48 = vmax.f32 %v1519_v44, 0.0  ;;  %v1511_v49 = vadd.f32 %v8506_v1, %v1510_v45 }
 0x16b   : > { %v7678_v50 = vpop.f32.mrf.mxu0 }
 0x16c   : > { %2016 = vst.msk [vmem:[#allocation2 + $0x118] sm:$0xff] %vm1987_vm2, %v1934_v47  ;;  %v1937_v54 = vmax.f32 %v1833_v46, %v1841_v48  ;;  %v1839_v53 = vmax.f32 %v1511_v49, 0.0  ;;  %v1532_v12 = vadd.f32 %v7678_v50, %v8506_v1  ;;  %v2116_v48 = vpack.c.bf16 %v2055_v34, %v2053_v35 }
 0x16d   : > { %v1523_v55 = vpop.f32.mrf.mxu0  ;;  %v2159_v59 = vld [vmem:[#allocation2 + $0x108] ss:$2 sm:$0xff]  ;;  %v2239_v0 = vld [vmem:[#allocation2 + $0x109] ss:$2 sm:$0xff] }
 0x16e   : > { %2019 = vst.msk [vmem:[#allocation2 + $0x130] sm:$0xff] %vm1987_vm2, %v1937_v54  ;;  %v1935_v56 = vmax.f32 %v1831_v51, %v1839_v53  ;;  %v1524_v16 = vadd.f32 %v8506_v1, %v1523_v55  ;;  %v1844_v21 = vmax.f32 %v1532_v12, 0.0  ;;  %v2057_v12 = vld [vmem:[#allocation2 + $0x27] ss:$2 sm:$0xff] }
 0x16f   : > { %v7679_v57 = vpop.f32.mrf.mxu0  ;;  %v2157_v58 = vld [vmem:[#allocation2 + $0xf8] ss:$2 sm:$0xff]  ;;  %v2237_v62 = vld [vmem:[#allocation2 + $0xf9] ss:$2 sm:$0xff] }
 0x170   : > { %2017 = vst.msk [vmem:[#allocation2 + $0x120] sm:$0xff] %vm1987_vm2, %v1935_v56  ;;  %v8683_v60 = vpack.c.bf16 %v2159_v59, %v2157_v58  ;;  %v2282_v2 = vpack.c.bf16 %v2239_v0, %v2237_v62  ;;  %v2317_v15 = vld [vmem:[#allocation2 + $0xfa] ss:$2 sm:$0xff]  ;;  %v1535_v23 = vadd.f32 %v7679_v57, %v8506_v1  ;;  %v1842_v29 = vmax.f32 %v1524_v16, 0.0 }
 0x171   : > { %v1526_v61 = vpop.f32.mrf.mxu0 }
 0x172   : > { %2400 = vrot.lane.b32.xlu0 %v8683_v60, %s8170_s22  ;;  %v1527_v27 = vadd.f32 %v8506_v1, %v1526_v61  ;;  %v1845_v40 = vmax.f32 %v1535_v23, 0.0 }
 0x173   : > { %v7682_v63 = vpop.f32.mrf.mxu0  ;;  %v2319_v11 = vld [vmem:[#allocation2 + $0x10a] ss:$2 sm:$0xff] }
 0x174   : > { %v2362_v19 = vpack.c.bf16 %v2319_v11, %v2317_v15  ;;  %v1548_v37 = vadd.f32 %v7682_v63, %v8506_v1  ;;  %v1843_v45 = vmax.f32 %v1527_v27, 0.0 }
 0x175   : > { %v1539_v3 = vpop.f32.mrf.mxu0  ;;  %v2163_v6 = vld [vmem:[#allocation2 + $0x128] ss:$2 sm:$0xff]  ;;  %v2243_v14 = vld [vmem:[#allocation2 + $0x129] ss:$2 sm:$0xff] }
 0x176   : > { %2448 = vrot.lane.b32.xlu0 %v2282_v2, %s10400_s21  ;;  %v1540_v46 = vadd.f32 %v8506_v1, %v1539_v3  ;;  %v2323_v49 = vld [vmem:[#allocation2 + $0x12a] ss:$2 sm:$0xff]  ;;  %v1848_v57 = vmax.f32 %v1548_v37, 0.0 }
 0x177   : > { %v7683_v4 = vpop.f32.mrf.mxu0  ;;  %v2161_v5 = vld [vmem:[#allocation2 + $0x118] ss:$2 sm:$0xff]  ;;  %v2241_v9 = vld [vmem:[#allocation2 + $0x119] ss:$2 sm:$0xff] }
 0x178   : > { %v8688_v7 = vpack.c.bf16 %v2163_v6, %v2161_v5  ;;  %v2283_v18 = vpack.c.bf16 %v2243_v14, %v2241_v9  ;;  %v2321_v39 = vld [vmem:[#allocation2 + $0x11a] ss:$2 sm:$0xff]  ;;  %v1551_v58 = vadd.f32 %v7683_v4, %v8506_v1  ;;  %v1846_v3 = vmax.f32 %v1540_v46, 0.0 }
 0x179   : > { %v8690_v8 = vpop.f32.mrf.mxu0  ;;  %v2363_v56 = vpack.c.bf16 %v2323_v49, %v2321_v39 }
 0x17a   : > { %2402 = vrot.lane.b32.xlu1 %v8688_v7, %s8170_s22  ;;  %2560 = vrot.lane.b32.xlu0 %v2282_v2, %s8170_s22  ;;  %v1543_v4 = vadd.f32 %v8506_v1, %v8690_v8  ;;  %v1849_v15 = vmax.f32 %v1551_v58, 0.0 }
 0x17b   : > { %v7686_v13 = vpop.f32.mrf.mxu0 }
 0x17c   : > { %v1564_v17 = vadd.f32 %v7686_v13, %v8506_v1  ;;  %v2059_v13 = vld [vmem:[#allocation2 + $0x37] ss:$2 sm:$0xff] }
 0x17d   : > { %v1555_v20 = vpop.f32.mrf.mxu0 }
 0x17e   : > { %v1852_v24 = vmax.f32 %v1564_v17, 0.0  ;;  %v1556_v26 = vadd.f32 %v8506_v1, %v1555_v20  ;;  %2450 = vrot.lane.b32.xlu1 %v2283_v18, %s10400_s21  ;;  %2608 = vrot.lane.b32.xlu0 %v2362_v19, %s10400_s21  ;;  %v2117_v20 = vpack.c.bf16 %v2059_v13, %v2057_v12 }
 0x17f   : > { %v7687_v28 = vpop.f32.mrf.mxu0 }
 0x180   : > { %v1940_v30 = vmax.f32 %v1844_v21, %v1852_v24  ;;  %v1850_v32 = vmax.f32 %v1556_v26, 0.0  ;;  %v1567_v33 = vadd.f32 %v7687_v28, %v8506_v1  ;;  %v1847_v21 = vmax.f32 %v1543_v4, 0.0 }
 0x181   : > { %v1558_v38 = vpop.f32.mrf.mxu0 }
 0x182   : > { %2022 = vst.msk [vmem:[#allocation2 + $0x158] sm:$0xff] %vm1987_vm2, %v1940_v30  ;;  %v1938_v41 = vmax.f32 %v1842_v29, %v1850_v32  ;;  %v1853_v43 = vmax.f32 %v1567_v33, 0.0  ;;  %v1559_v44 = vadd.f32 %v8506_v1, %v1558_v38  ;;  %2562 = vrot.lane.b32.xlu1 %v2283_v18, %s8170_s22 }
 0x183   : > { %v7690_v47 = vpop.f32.mrf.mxu0 }
 0x184   : > { %2020 = vst.msk [vmem:[#allocation2 + $0x148] sm:$0xff] %vm1987_vm2, %v1938_v41  ;;  %v1941_v50 = vmax.f32 %v1845_v40, %v1853_v43  ;;  %v1851_v51 = vmax.f32 %v1559_v44, 0.0  ;;  %v1580_v54 = vadd.f32 %v7690_v47, %v8506_v1  ;;  %v2437_v53 = vpop.permute.xlu1 %2436  ;;  %v2389_v55 = vpop.permute.xlu0 %2388 }
 0x185   : > { %v2470_v59 = vsel %vm1987_vm2, %v2116_v48, %v2389_v55  ;;  %v1571_v61 = vpop.f32.mrf.mxu0 }
 0x186   : > { %2023 = vst.msk [vmem:[#allocation2 + $0x160] sm:$0xff] %vm1987_vm2, %v1941_v50  ;;  %v1939_v62 = vmax.f32 %v1843_v45, %v1851_v51  ;;  %v1856_v63 = vmax.f32 %v1580_v54, 0.0  ;;  %v1572_v0 = vadd.f32 %v8506_v1, %v1571_v61  ;;  %2610 = vrot.lane.b32.xlu1 %v2363_v56, %s10400_s21  ;;  %v2517_v2 = vsel %vm1040_vm0, %v2470_v59, %v2437_v53 }
 0x187   : > { %v7691_v5 = vpop.f32.mrf.mxu0  ;;  %7752 = vmatprep.mubr.msk.bf16.mxu1 %vm2763_vm3, %v2517_v2 }
 0x188   : > { %2021 = vst.msk [vmem:[#allocation2 + $0x150] sm:$0xff] %vm1987_vm2, %v1939_v62  ;;  %v1944_v6 = vmax.f32 %v1848_v57, %v1856_v63  ;;  %v1854_v9 = vmax.f32 %v1572_v0, 0.0  ;;  %v1583_v11 = vadd.f32 %v7691_v5, %v8506_v1  ;;  %v8752_v63 = vld [vmem:[%s10413_s2] ss:$0 sm:$0xff] }
 0x189   : > { %v1574_v14 = vpop.f32.mrf.mxu0 }
 0x18a   : > { %2026 = vst.msk [vmem:[#allocation2 + $0x178] sm:$0xff] %vm1987_vm2, %v1944_v6  ;;  %v1942_v16 = vmax.f32 %v1846_v3, %v1854_v9  ;;  %v1857_v17 = vmax.f32 %v1583_v11, 0.0  ;;  %v1575_v18 = vadd.f32 %v8506_v1, %v1574_v14 }
 0x18b   : > { %v7694_v19 = vpop.f32.mrf.mxu0 }
 0x18c   : > { %2024 = vst.msk [vmem:[#allocation2 + $0x168] sm:$0xff] %vm1987_vm2, %v1942_v16  ;;  %v1945_v8 = vmax.f32 %v1849_v15, %v1857_v17  ;;  %v1855_v23 = vmax.f32 %v1575_v18, 0.0  ;;  %v2439_v24 = vpop.permute.xlu1 %2438  ;;  %v2391_v26 = vpop.permute.xlu0 %2390  ;;  %v1596_v58 = vadd.f32 %v7694_v19, %v8506_v1 }
 0x18d   : > { %v2473_v27 = vsel %vm1987_vm2, %v2117_v20, %v2391_v26  ;;  %v1587_v28 = vpop.f32.mrf.mxu0  ;;  %v2167_v34 = vld [vmem:[#allocation2 + $0x158] ss:$2 sm:$0xff]  ;;  %v2247_v43 = vld [vmem:[#allocation2 + $0x159] ss:$2 sm:$0xff] }
 0x18e   : > { %2027 = vst.msk [vmem:[#allocation2 + $0x180] sm:$0xff] %vm1987_vm2, %v1945_v8  ;;  %v1943_v29 = vmax.f32 %v1847_v21, %v1855_v23  ;;  %v2519_v30 = vsel %vm1040_vm0, %v2473_v27, %v2439_v24  ;;  %v1588_v0 = vadd.f32 %v8752_v63, %v1587_v28  ;;  %v1860_v4 = vmax.f32 %v1596_v58, 0.0  ;;  %v2061_v26 = vld [vmem:[#allocation2 + $0x57] ss:$2 sm:$0xff]  ;;  %v2063_v27 = vld [vmem:[#allocation2 + $0x67] ss:$2 sm:$0xff] }
 0x18f   : > { %v7695_v32 = vpop.f32.mrf.mxu0  ;;  %7753 = vmatmul.mubr.msk.bf16.vlgmr.msra.gmra.mxu1 %vm2763_vm3, %v2519_v30  ;;  %v2165_v33 = vld [vmem:[#allocation2 + $0x148] ss:$2 sm:$0xff]  ;;  %v2245_v40 = vld [vmem:[#allocation2 + $0x149] ss:$2 sm:$0xff] }
 0x190   : > { %2025 = vst.msk [vmem:[#allocation2 + $0x170] sm:$0xff] %vm1987_vm2, %v1943_v29  ;;  %v2551_v35 = vpop.permute.xlu1 %2550  ;;  %v2549_v37 = vpop.permute.xlu0 %2548  ;;  %v8730_v38 = vpack.c.bf16 %v2167_v34, %v2165_v33  ;;  %v2284_v48 = vpack.c.bf16 %v2247_v43, %v2245_v40  ;;  %v2325_v62 = vld [vmem:[#allocation2 + $0x14a] ss:$2 sm:$0xff]  ;;  %v1599_v6 = vadd.f32 %v8752_v63, %v7695_v32  ;;  %v1858_v14 = vmax.f32 %v1588_v0, 0.0 }
 0x191   : > { %v1590_v39 = vpop.f32.mrf.mxu0  ;;  %v2633_v44 = vsel %vm1987_vm2, %v8569_v22, %v2551_v35  ;;  %v2630_v45 = vsel %vm1987_vm2, %v8560_v10, %v2549_v37 }
 0x192   : > { %2404 = vrot.lane.b32.xlu0 %v8730_v38, %s8170_s22  ;;  %v1591_v12 = vadd.f32 %v8752_v63, %v1590_v39  ;;  %v1861_v21 = vmax.f32 %v1599_v6, 0.0 }
 0x193   : > { %v7698_v41 = vpop.f32.mrf.mxu0  ;;  %v2327_v57 = vld [vmem:[#allocation2 + $0x15a] ss:$2 sm:$0xff] }
 0x194   : > { %v2599_v46 = vpop.permute.xlu1 %2598  ;;  %v2597_v47 = vpop.permute.xlu0 %2596  ;;  %v2364_v5 = vpack.c.bf16 %v2327_v57, %v2325_v62  ;;  %v1612_v18 = vadd.f32 %v8752_v63, %v7698_v41  ;;  %v1859_v28 = vmax.f32 %v1591_v12, 0.0  ;;  %v2118_v41 = vpack.c.bf16 %v2063_v27, %v2061_v26 }
 0x195   : > { %v2679_v49 = vsel %vm1040_vm0, %v2633_v44, %v2599_v46  ;;  %v2677_v50 = vsel %vm1040_vm0, %v2630_v45, %v2597_v47  ;;  %v1603_v51 = vpop.f32.mrf.mxu0  ;;  %v2171_v22 = vld [vmem:[#allocation2 + $0x178] ss:$2 sm:$0xff]  ;;  %v2251_v61 = vld [vmem:[#allocation2 + $0x179] ss:$2 sm:$0xff] }
 0x196   : > { %2452 = vrot.lane.b32.xlu0 %v2284_v48, %s10400_s21  ;;  %7756 = vmatprep.mubr.msk.bf16.mxu1 %vm2763_vm3, %v2677_v50  ;;  %v1604_v29 = vadd.f32 %v8752_v63, %v1603_v51  ;;  %v2331_v32 = vld [vmem:[#allocation2 + $0x17a] ss:$2 sm:$0xff]  ;;  %v1864_v40 = vmax.f32 %v1612_v18, 0.0 }
 0x197   : > { %v7699_v54 = vpop.f32.mrf.mxu0  ;;  %7757 = vmatmul.mubr.msk.bf16.gmra.mxu1 %vm2763_vm3, %v2679_v49  ;;  %v2169_v53 = vld [vmem:[#allocation2 + $0x168] ss:$2 sm:$0xff]  ;;  %v2249_v56 = vld [vmem:[#allocation2 + $0x169] ss:$2 sm:$0xff] }
 0x198   : > { %v8743_v55 = vpack.c.bf16 %v2171_v22, %v2169_v53  ;;  %v2285_v3 = vpack.c.bf16 %v2251_v61, %v2249_v56  ;;  %v2329_v20 = vld [vmem:[#allocation2 + $0x16a] ss:$2 sm:$0xff]  ;;  %v1615_v44 = vadd.f32 %v8752_v63, %v7699_v54 }
 0x199   : > { %v1606_v10 = vpop.f32.mrf.mxu0  ;;  %v2365_v39 = vpack.c.bf16 %v2331_v32, %v2329_v20 }
 0x19a   : > { %2406 = vrot.lane.b32.xlu1 %v8743_v55, %s8170_s22  ;;  %2564 = vrot.lane.b32.xlu0 %v2284_v48, %s8170_s22  ;;  %v1862_v48 = vmax.f32 %v1604_v29, 0.0  ;;  %v1607_v49 = vadd.f32 %v8752_v63, %v1606_v10 }
 0x19b   : > { %v7702_v59 = vpop.f32.mrf.mxu0 }
 0x19c   : > { %v1628_v2 = vadd.f32 %v8752_v63, %v7702_v59  ;;  %v1865_v59 = vmax.f32 %v1615_v44, 0.0 }
 0x19d   : > { %v1619_v1 = vpop.f32.mrf.mxu0 }
 0x19e   : > { %v1868_v9 = vmax.f32 %v1628_v2, 0.0  ;;  %v1620_v11 = vadd.f32 %v8752_v63, %v1619_v1  ;;  %2454 = vrot.lane.b32.xlu1 %v2285_v3, %s10400_s21  ;;  %2612 = vrot.lane.b32.xlu0 %v2364_v5, %s10400_s21  ;;  %v2065_v2 = vld [vmem:[#allocation2 + $0x77] ss:$2 sm:$0xff]  ;;  %v1863_v5 = vmax.f32 %v1607_v49, 0.0 }
 0x19f   : > { %v7703_v13 = vpop.f32.mrf.mxu0 }
 0x1a0   : > { %v1948_v15 = vmax.f32 %v1860_v4, %v1868_v9  ;;  %v1866_v16 = vmax.f32 %v1620_v11, 0.0  ;;  %v1631_v17 = vadd.f32 %v8752_v63, %v7703_v13 }
 0x1a1   : > { %v1622_v19 = vpop.f32.mrf.mxu0 }
 0x1a2   : > { %2030 = vst.msk [vmem:[#allocation2 + $0x1a8] sm:$0xff] %vm1987_vm2, %v1948_v15  ;;  %v1946_v8 = vmax.f32 %v1858_v14, %v1866_v16  ;;  %v1869_v23 = vmax.f32 %v1631_v17, 0.0  ;;  %v1623_v24 = vadd.f32 %v8752_v63, %v1622_v19  ;;  %2566 = vrot.lane.b32.xlu1 %v2285_v3, %s8170_s22  ;;  %v2067_v3 = vld [vmem:[#allocation2 + $0x87] ss:$2 sm:$0xff] }
 0x1a3   : > { %v7706_v30 = vpop.f32.mrf.mxu0  ;;  %v2119_v13 = vpack.c.bf16 %v2067_v3, %v2065_v2 }
 0x1a4   : > { %2028 = vst.msk [vmem:[#allocation2 + $0x198] sm:$0xff] %vm1987_vm2, %v1946_v8  ;;  %v1949_v33 = vmax.f32 %v1861_v21, %v1869_v23  ;;  %v1867_v34 = vmax.f32 %v1623_v24, 0.0  ;;  %v1644_v35 = vadd.f32 %v8752_v63, %v7706_v30  ;;  %v2393_v37 = vpop.permute.xlu0 %2392 }
 0x1a5   : > { %v1635_v43 = vpop.f32.mrf.mxu0  ;;  %v2476_v53 = vsel %vm1987_vm2, %v2118_v41, %v2393_v37 }
 0x1a6   : > { %2031 = vst.msk [vmem:[#allocation2 + $0x1b0] sm:$0xff] %vm1987_vm2, %v1949_v33  ;;  %v1947_v45 = vmax.f32 %v1859_v28, %v1867_v34  ;;  %v1872_v46 = vmax.f32 %v1644_v35, 0.0  ;;  %v1636_v47 = vadd.f32 %v8752_v63, %v1635_v43  ;;  %2614 = vrot.lane.b32.xlu1 %v2365_v39, %s10400_s21 }
 0x1a7   : > { %v7707_v50 = vpop.f32.mrf.mxu0 }
 0x1a8   : > { %2029 = vst.msk [vmem:[#allocation2 + $0x1a0] sm:$0xff] %vm1987_vm2, %v1947_v45  ;;  %v1952_v51 = vmax.f32 %v1864_v40, %v1872_v46  ;;  %v1870_v22 = vmax.f32 %v1636_v47, 0.0  ;;  %v1647_v54 = vadd.f32 %v8752_v63, %v7707_v50  ;;  %v2441_v56 = vpop.permute.xlu0 %2440 }
 0x1a9   : > { %v2521_v57 = vsel %vm1040_vm0, %v2476_v53, %v2441_v56  ;;  %v1638_v58 = vpop.f32.mrf.mxu0 }
 0x1aa   : > { %2034 = vst.msk [vmem:[#allocation2 + $0x1c8] sm:$0xff] %vm1987_vm2, %v1952_v51  ;;  %v1950_v61 = vmax.f32 %v1862_v48, %v1870_v22  ;;  %v1873_v62 = vmax.f32 %v1647_v54, 0.0  ;;  %v1639_v10 = vadd.f32 %v8752_v63, %v1638_v58  ;;  %7760 = vmatprep.mubr.msk.bf16.mxu1 %vm2763_vm3, %v2521_v57 }
 0x1ab   : > { %v7710_v0 = vpop.f32.mrf.mxu0 }
 0x1ac   : > { %2032 = vst.msk [vmem:[#allocation2 + $0x1b8] sm:$0xff] %vm1987_vm2, %v1950_v61  ;;  %v1953_v1 = vmax.f32 %v1865_v59, %v1873_v62  ;;  %v1871_v4 = vmax.f32 %v1639_v10, 0.0  ;;  %v2395_v6 = vpop.permute.xlu1 %2394  ;;  %v2553_v9 = vpop.permute.xlu0 %2552  ;;  %v1660_v45 = vadd.f32 %v8752_v63, %v7710_v0 }
 0x1ad   : > { %v1651_v11 = vpop.f32.mrf.mxu0  ;;  %v2175_v16 = vld [vmem:[#allocation2 + $0x1a8] ss:$2 sm:$0xff]  ;;  %v2479_v17 = vsel %vm1987_vm2, %v2119_v13, %v2395_v6  ;;  %v2636_v18 = vsel %vm1987_vm2, %v8607_v25, %v2553_v9  ;;  %v2255_v28 = vld [vmem:[#allocation2 + $0x1a9] ss:$2 sm:$0xff] }
 0x1ae   : > { %2035 = vst.msk [vmem:[#allocation2 + $0x1d0] sm:$0xff] %vm1987_vm2, %v1953_v1  ;;  %v1951_v12 = vmax.f32 %v1863_v5, %v1871_v4  ;;  %v1652_v48 = vadd.f32 %v8752_v63, %v1651_v11  ;;  %v1876_v22 = vmax.f32 %v1660_v45, 0.0  ;;  %v2069_v11 = vld [vmem:[#allocation2 + $0xa7] ss:$2 sm:$0xff] }
 0x1af   : > { %v7711_v14 = vpop.f32.mrf.mxu0  ;;  %v2173_v15 = vld [vmem:[#allocation2 + $0x198] ss:$2 sm:$0xff]  ;;  %v2253_v26 = vld [vmem:[#allocation2 + $0x199] ss:$2 sm:$0xff] }
 0x1b0   : > { %2033 = vst.msk [vmem:[#allocation2 + $0x1c0] sm:$0xff] %vm1987_vm2, %v1951_v12  ;;  %v2443_v19 = vpop.permute.xlu1 %2442  ;;  %v2601_v20 = vpop.permute.xlu0 %2600  ;;  %v8787_v21 = vpack.c.bf16 %v2175_v16, %v2173_v15  ;;  %v2286_v29 = vpack.c.bf16 %v2255_v28, %v2253_v26  ;;  %v1663_v54 = vadd.f32 %v8752_v63, %v7711_v14  ;;  %v1874_v61 = vmax.f32 %v1652_v48, 0.0  ;;  %v2071_v12 = vld [vmem:[#allocation2 + $0xb7] ss:$2 sm:$0xff] }
 0x1b1   : > { %v2523_v8 = vsel %vm1040_vm0, %v2479_v17, %v2443_v19  ;;  %v2681_v23 = vsel %vm1040_vm0, %v2636_v18, %v2601_v20  ;;  %v1654_v24 = vpop.f32.mrf.mxu0 }
 0x1b2   : > { %2408 = vrot.lane.b32.xlu0 %v8787_v21, %s8170_s22  ;;  %7761 = vmatmul.mubr.msk.bf16.gmra.mxu1 %vm2763_vm3, %v2523_v8  ;;  %v1655_v58 = vadd.f32 %v8752_v63, %v1654_v24  ;;  %v1877_v1 = vmax.f32 %v1663_v54, 0.0  ;;  %v2120_v24 = vpack.c.bf16 %v2071_v12, %v2069_v11 }
 0x1b3   : > { %v7714_v27 = vpop.f32.mrf.mxu0  ;;  %7764 = vmatprep.mubr.msk.bf16.mxu1 %vm2763_vm3, %v2681_v23  ;;  %v2335_v44 = vld [vmem:[#allocation2 + $0x1aa] ss:$2 sm:$0xff] }
 0x1b4   : > { %v2555_v25 = vpop.permute.xlu1 %2554  ;;  %v1676_v2 = vadd.f32 %v8752_v63, %v7714_v27  ;;  %v1875_v13 = vmax.f32 %v1655_v58, 0.0 }
 0x1b5   : > { %v1667_v30 = vpop.f32.mrf.mxu0  ;;  %v2179_v34 = vld [vmem:[#allocation2 + $0x1c8] ss:$2 sm:$0xff]  ;;  %v2639_v35 = vsel %vm1987_vm2, %v8612_v36, %v2555_v25  ;;  %v2259_v47 = vld [vmem:[#allocation2 + $0x1c9] ss:$2 sm:$0xff] }
 0x1b6   : > { %2456 = vrot.lane.b32.xlu0 %v2286_v29, %s10400_s21  ;;  %v2333_v36 = vld [vmem:[#allocation2 + $0x19a] ss:$2 sm:$0xff]  ;;  %v1668_v14 = vadd.f32 %v8752_v63, %v1667_v30  ;;  %v2339_v16 = vld [vmem:[#allocation2 + $0x1ca] ss:$2 sm:$0xff]  ;;  %v1880_v23 = vmax.f32 %v1676_v2, 0.0 }
 0x1b7   : > { %v7715_v32 = vpop.f32.mrf.mxu0  ;;  %v2177_v33 = vld [vmem:[#allocation2 + $0x1b8] ss:$2 sm:$0xff]  ;;  %v2257_v43 = vld [vmem:[#allocation2 + $0x1b9] ss:$2 sm:$0xff]  ;;  %v2366_v51 = vpack.c.bf16 %v2335_v44, %v2333_v36 }
 0x1b8   : > { %v2603_v37 = vpop.permute.xlu1 %2602  ;;  %v8798_v39 = vpack.c.bf16 %v2179_v34, %v2177_v33  ;;  %v2287_v50 = vpack.c.bf16 %v2259_v47, %v2257_v43  ;;  %v2337_v5 = vld [vmem:[#allocation2 + $0x1ba] ss:$2 sm:$0xff]  ;;  %v1679_v27 = vadd.f32 %v8752_v63, %v7715_v32  ;;  %v1878_v30 = vmax.f32 %v1668_v14, 0.0 }
 0x1b9   : > { %v2683_v40 = vsel %vm1040_vm0, %v2639_v35, %v2603_v37  ;;  %v1670_v41 = vpop.f32.mrf.mxu0  ;;  %v2367_v8 = vpack.c.bf16 %v2339_v16, %v2337_v5 }
 0x1ba   : > { %2410 = vrot.lane.b32.xlu1 %v8798_v39, %s8170_s22  ;;  %2568 = vrot.lane.b32.xlu0 %v2286_v29, %s8170_s22  ;;  %v1671_v33 = vadd.f32 %v8752_v63, %v1670_v41 }
 0x1bb   : > { %7765 = vmatmul.mubr.msk.bf16.gmra.mxu1 %vm2763_vm3, %v2683_v40  ;;  %v7718_v46 = vpop.f32.mrf.mxu0 }
 0x1bc   : > { %v1692_v49 = vadd.f32 %v8752_v63, %v7718_v46  ;;  %v1881_v46 = vmax.f32 %v1679_v27, 0.0 }
 0x1bd   : > { %v1683_v53 = vpop.f32.mrf.mxu0 }
 0x1be   : > { %v1884_v56 = vmax.f32 %v1692_v49, 0.0  ;;  %v1684_v57 = vadd.f32 %v8752_v63, %v1683_v53  ;;  %2458 = vrot.lane.b32.xlu1 %v2287_v50, %s10400_s21  ;;  %2616 = vrot.lane.b32.xlu0 %v2366_v51, %s10400_s21  ;;  %v2073_v49 = vld [vmem:[#allocation2 + $0xc7] ss:$2 sm:$0xff]  ;;  %v1879_v51 = vmax.f32 %v1671_v33, 0.0 }
 0x1bf   : > { %v7719_v59 = vpop.f32.mrf.mxu0 }
 0x1c0   : > { %v1956_v62 = vmax.f32 %v1876_v22, %v1884_v56  ;;  %v1882_v10 = vmax.f32 %v1684_v57, 0.0  ;;  %v1695_v0 = vadd.f32 %v8752_v63, %v7719_v59 }
 0x1c1   : > { %v1686_v3 = vpop.f32.mrf.mxu0 }
 0x1c2   : > { %2038 = vst.msk [vmem:[#allocation2 + $0x1f8] sm:$0xff] %vm1987_vm2, %v1956_v62  ;;  %v1954_v4 = vmax.f32 %v1874_v61, %v1882_v10  ;;  %v1885_v6 = vmax.f32 %v1695_v0, 0.0  ;;  %v1687_v9 = vadd.f32 %v8752_v63, %v1686_v3  ;;  %2570 = vrot.lane.b32.xlu1 %v2287_v50, %s8170_s22  ;;  %v2075_v50 = vld [vmem:[#allocation2 + $0xd7] ss:$2 sm:$0xff] }
 0x1c3   : > { %v7722_v15 = vpop.f32.mrf.mxu0  ;;  %v2121_v59 = vpack.c.bf16 %v2075_v50, %v2073_v49 }
 0x1c4   : > { %2036 = vst.msk [vmem:[#allocation2 + $0x1e8] sm:$0xff] %vm1987_vm2, %v1954_v4  ;;  %v1957_v17 = vmax.f32 %v1877_v1, %v1885_v6  ;;  %v1883_v18 = vmax.f32 %v1687_v9, 0.0  ;;  %v1708_v19 = vadd.f32 %v8752_v63, %v7722_v15  ;;  %v2397_v20 = vpop.permute.xlu0 %2396 }
 0x1c5   : > { %v1699_v26 = vpop.f32.mrf.mxu0  ;;  %v2482_v37 = vsel %vm1987_vm2, %v2120_v24, %v2397_v20 }
 0x1c6   : > { %2039 = vst.msk [vmem:[#allocation2 + $0x200] sm:$0xff] %vm1987_vm2, %v1957_v17  ;;  %v1955_v28 = vmax.f32 %v1875_v13, %v1883_v18  ;;  %v1888_v25 = vmax.f32 %v1708_v19, 0.0  ;;  %v1700_v29 = vadd.f32 %v8752_v63, %v1699_v26  ;;  %2618 = vrot.lane.b32.xlu1 %v2367_v8, %s10400_s21 }
 0x1c7   : > { %v7723_v34 = vpop.f32.mrf.mxu0 }
 0x1c8   : > { %2037 = vst.msk [vmem:[#allocation2 + $0x1f0] sm:$0xff] %vm1987_vm2, %v1955_v28  ;;  %v1960_v35 = vmax.f32 %v1880_v23, %v1888_v25  ;;  %v1886_v40 = vmax.f32 %v1700_v29, 0.0  ;;  %v1711_v32 = vadd.f32 %v8752_v63, %v7723_v34  ;;  %v2445_v43 = vpop.permute.xlu0 %2444 }
 0x1c9   : > { %v2525_v44 = vsel %vm1040_vm0, %v2482_v37, %v2445_v43  ;;  %v1702_v45 = vpop.f32.mrf.mxu0 }
 0x1ca   : > { %2042 = vst.msk [vmem:[#allocation2 + $0x218] sm:$0xff] %vm1987_vm2, %v1960_v35  ;;  %v1958_v47 = vmax.f32 %v1878_v30, %v1886_v40  ;;  %v1889_v36 = vmax.f32 %v1711_v32, 0.0  ;;  %v1703_v41 = vadd.f32 %v8752_v63, %v1702_v45  ;;  %7768 = vmatprep.mubr.msk.bf16.mxu1 %vm2763_vm3, %v2525_v44 }
 0x1cb   : > { %v7726_v48 = vpop.f32.mrf.mxu0 }
 0x1cc   : > { %2040 = vst.msk [vmem:[#allocation2 + $0x208] sm:$0xff] %vm1987_vm2, %v1958_v47  ;;  %v1961_v53 = vmax.f32 %v1881_v46, %v1889_v36  ;;  %v1887_v22 = vmax.f32 %v1703_v41, 0.0  ;;  %v2399_v54 = vpop.permute.xlu1 %2398  ;;  %v2557_v56 = vpop.permute.xlu0 %2556  ;;  %v1724_v28 = vadd.f32 %v8752_v63, %v7726_v48 }
 0x1cd   : > { %v1715_v57 = vpop.f32.mrf.mxu0  ;;  %v2183_v10 = vld [vmem:[#allocation2 + $0x1f8] ss:$2 sm:$0xff]  ;;  %v2485_v0 = vsel %vm1987_vm2, %v2121_v59, %v2399_v54  ;;  %v2642_v2 = vsel %vm1987_vm2, %v8645_v42, %v2557_v56  ;;  %v2263_v13 = vld [vmem:[#allocation2 + $0x1f9] ss:$2 sm:$0xff] }
 0x1ce   : > { %2043 = vst.msk [vmem:[#allocation2 + $0x220] sm:$0xff] %vm1987_vm2, %v1961_v53  ;;  %v1959_v58 = vmax.f32 %v1879_v51, %v1887_v22  ;;  %v1716_v30 = vadd.f32 %v8752_v63, %v1715_v57  ;;  %v1892_v40 = vmax.f32 %v1724_v28, 0.0  ;;  %v2077_v57 = vld [vmem:[#allocation2 + $0xf7] ss:$2 sm:$0xff] }
 0x1cf   : > { %v7727_v61 = vpop.f32.mrf.mxu0  ;;  %v2181_v62 = vld [vmem:[#allocation2 + $0x1e8] ss:$2 sm:$0xff]  ;;  %v2261_v11 = vld [vmem:[#allocation2 + $0x1e9] ss:$2 sm:$0xff] }
 0x1d0   : > { %2041 = vst.msk [vmem:[#allocation2 + $0x210] sm:$0xff] %vm1987_vm2, %v1959_v58  ;;  %v2447_v3 = vpop.permute.xlu1 %2446  ;;  %v2605_v5 = vpop.permute.xlu0 %2604  ;;  %v8839_v1 = vpack.c.bf16 %v2183_v10, %v2181_v62  ;;  %v2288_v14 = vpack.c.bf16 %v2263_v13, %v2261_v11  ;;  %v1727_v32 = vadd.f32 %v8752_v63, %v7727_v61  ;;  %v1890_v47 = vmax.f32 %v1716_v30, 0.0  ;;  %v2079_v58 = vld [vmem:[#allocation2 + $0x107] ss:$2 sm:$0xff]  ;;  %v2081_v30 = vld [vmem:[#allocation2 + $0x117] ss:$2 sm:$0xff] }
 0x1d1   : > { %v2527_v4 = vsel %vm1040_vm0, %v2485_v0, %v2447_v3  ;;  %v2685_v6 = vsel %vm1040_vm0, %v2642_v2, %v2605_v5  ;;  %v1718_v9 = vpop.f32.mrf.mxu0 }
 0x1d2   : > { %2412 = vrot.lane.b32.xlu0 %v8839_v1, %s8170_s22  ;;  %7769 = vmatmul.mubr.msk.bf16.gmra.mxu1 %vm2763_vm3, %v2527_v4  ;;  %v1719_v45 = vadd.f32 %v8752_v63, %v1718_v9  ;;  %v1893_v53 = vmax.f32 %v1727_v32, 0.0  ;;  %v2122_v9 = vpack.c.bf16 %v2079_v58, %v2077_v57 }
 0x1d3   : > { %v7730_v12 = vpop.f32.mrf.mxu0  ;;  %7772 = vmatprep.mubr.msk.bf16.mxu1 %vm2763_vm3, %v2685_v6  ;;  %v2343_v27 = vld [vmem:[#allocation2 + $0x1fa] ss:$2 sm:$0xff] }
 0x1d4   : > { %v2559_v42 = vpop.permute.xlu1 %2558  ;;  %v1740_v49 = vadd.f32 %v8752_v63, %v7730_v12  ;;  %v1891_v59 = vmax.f32 %v1719_v45, 0.0 }
 0x1d5   : > { %v1731_v15 = vpop.f32.mrf.mxu0  ;;  %v2187_v18 = vld [vmem:[#allocation2 + $0x218] ss:$2 sm:$0xff]  ;;  %v2645_v19 = vsel %vm1987_vm2, %v8650_v52, %v2559_v42  ;;  %v2267_v29 = vld [vmem:[#allocation2 + $0x219] ss:$2 sm:$0xff] }
 0x1d6   : > { %2460 = vrot.lane.b32.xlu0 %v2288_v14, %s10400_s21  ;;  %v2341_v52 = vld [vmem:[#allocation2 + $0x1ea] ss:$2 sm:$0xff]  ;;  %v1732_v61 = vadd.f32 %v8752_v63, %v1731_v15  ;;  %v2347_v10 = vld [vmem:[#allocation2 + $0x21a] ss:$2 sm:$0xff]  ;;  %v1896_v6 = vmax.f32 %v1740_v49, 0.0 }
 0x1d7   : > { %v7731_v16 = vpop.f32.mrf.mxu0  ;;  %v2185_v17 = vld [vmem:[#allocation2 + $0x208] ss:$2 sm:$0xff]  ;;  %v2265_v26 = vld [vmem:[#allocation2 + $0x209] ss:$2 sm:$0xff]  ;;  %v2368_v35 = vpack.c.bf16 %v2343_v27, %v2341_v52 }
 0x1d8   : > { %v2607_v20 = vpop.permute.xlu1 %2606  ;;  %v8850_v8 = vpack.c.bf16 %v2187_v18, %v2185_v17  ;;  %v2289_v34 = vpack.c.bf16 %v2267_v29, %v2265_v26  ;;  %v2345_v51 = vld [vmem:[#allocation2 + $0x20a] ss:$2 sm:$0xff]  ;;  %v1743_v12 = vadd.f32 %v8752_v63, %v7731_v16  ;;  %v1894_v15 = vmax.f32 %v1732_v61, 0.0 }
 0x1d9   : > { %v2687_v23 = vsel %vm1040_vm0, %v2645_v19, %v2607_v20  ;;  %v1734_v24 = vpop.f32.mrf.mxu0  ;;  %v2369_v4 = vpack.c.bf16 %v2347_v10, %v2345_v51 }
 0x1da   : > { %2414 = vrot.lane.b32.xlu1 %v8850_v8, %s8170_s22  ;;  %2572 = vrot.lane.b32.xlu0 %v2288_v14, %s8170_s22  ;;  %v1735_v17 = vadd.f32 %v8752_v63, %v1734_v24 }
 0x1db   : > { %7773 = vmatmul.mubr.msk.bf16.gmra.mxu1 %vm2763_vm3, %v2687_v23  ;;  %v7734_v25 = vpop.f32.mrf.mxu0 }
 0x1dc   : > { %v1756_v33 = vadd.f32 %v8752_v63, %v7734_v25  ;;  %v1897_v25 = vmax.f32 %v1743_v12, 0.0 }
 0x1dd   : > { %v1747_v37 = vpop.f32.mrf.mxu0 }
 0x1de   : > { %v1900_v43 = vmax.f32 %v1756_v33, 0.0  ;;  %v1748_v44 = vadd.f32 %v8752_v63, %v1747_v37  ;;  %2462 = vrot.lane.b32.xlu1 %v2289_v34, %s10400_s21  ;;  %2620 = vrot.lane.b32.xlu0 %v2368_v35, %s10400_s21  ;;  %v2083_v33 = vld [vmem:[#allocation2 + $0x127] ss:$2 sm:$0xff] }
 0x1df   : > { %v7735_v46 = vpop.f32.mrf.mxu0 }
 0x1e0   : > { %v1964_v36 = vmax.f32 %v1892_v40, %v1900_v43  ;;  %v1898_v41 = vmax.f32 %v1748_v44, 0.0  ;;  %v1759_v48 = vadd.f32 %v8752_v63, %v7735_v46  ;;  %v2123_v44 = vpack.c.bf16 %v2083_v33, %v2081_v30 }
 0x1e1   : > { %v1750_v50 = vpop.f32.mrf.mxu0 }
 0x1e2   : > { %2046 = vst.msk [vmem:[#allocation2 + $0x248] sm:$0xff] %vm1987_vm2, %v1964_v36  ;;  %v1962_v22 = vmax.f32 %v1890_v47, %v1898_v41  ;;  %v1901_v54 = vmax.f32 %v1759_v48, 0.0  ;;  %v1751_v56 = vadd.f32 %v8752_v63, %v1750_v50  ;;  %2574 = vrot.lane.b32.xlu1 %v2289_v34, %s8170_s22  ;;  %v1895_v34 = vmax.f32 %v1735_v17, 0.0  ;;  %v2089_v17 = vld [vmem:[#allocation2 + $0x167] ss:$2 sm:$0xff] }
 0x1e3   : > { %v7738_v62 = vpop.f32.mrf.mxu0 }
 0x1e4   : > { %2044 = vst.msk [vmem:[#allocation2 + $0x238] sm:$0xff] %vm1987_vm2, %v1962_v22  ;;  %v1965_v0 = vmax.f32 %v1893_v53, %v1901_v54  ;;  %v1899_v2 = vmax.f32 %v1751_v56, 0.0  ;;  %v1772_v3 = vadd.f32 %v8752_v63, %v7738_v62  ;;  %v2401_v5 = vpop.permute.xlu0 %2400 }
 0x1e5   : > { %v1763_v11 = vpop.f32.mrf.mxu0  ;;  %v2488_v20 = vsel %vm1987_vm2, %v2122_v9, %v2401_v5 }
 0x1e6   : > { %2047 = vst.msk [vmem:[#allocation2 + $0x250] sm:$0xff] %vm1987_vm2, %v1965_v0  ;;  %v1963_v13 = vmax.f32 %v1891_v59, %v1899_v2  ;;  %v1904_v42 = vmax.f32 %v1772_v3, 0.0  ;;  %v1764_v14 = vadd.f32 %v8752_v63, %v1763_v11  ;;  %2622 = vrot.lane.b32.xlu1 %v2369_v4, %s10400_s21  ;;  %v2085_v4 = vld [vmem:[#allocation2 + $0x147] ss:$2 sm:$0xff] }
 0x1e7   : > { %v7739_v18 = vpop.f32.mrf.mxu0 }
 0x1e8   : > { %2045 = vst.msk [vmem:[#allocation2 + $0x240] sm:$0xff] %vm1987_vm2, %v1963_v13  ;;  %v1968_v19 = vmax.f32 %v1896_v6, %v1904_v42  ;;  %v1902_v23 = vmax.f32 %v1764_v14, 0.0  ;;  %v1775_v16 = vadd.f32 %v8752_v63, %v7739_v18  ;;  %v2449_v26 = vpop.permute.xlu0 %2448  ;;  %v2087_v6 = vld [vmem:[#allocation2 + $0x157] ss:$2 sm:$0xff] }
 0x1e9   : > { %v2529_v27 = vsel %vm1040_vm0, %v2488_v20, %v2449_v26  ;;  %v1766_v28 = vpop.f32.mrf.mxu0  ;;  %v2124_v13 = vpack.c.bf16 %v2087_v6, %v2085_v4  ;;  %v2091_v18 = vld [vmem:[#allocation2 + $0x177] ss:$2 sm:$0xff] }
 0x1ea   : > { %2050 = vst.msk [vmem:[#allocation2 + $0x268] sm:$0xff] %vm1987_vm2, %v1968_v19  ;;  %v1966_v29 = vmax.f32 %v1894_v15, %v1902_v23  ;;  %v1905_v52 = vmax.f32 %v1775_v16, 0.0  ;;  %v1767_v24 = vadd.f32 %v8752_v63, %v1766_v28  ;;  %7776 = vmatprep.mubr.msk.bf16.mxu1 %vm2763_vm3, %v2529_v27  ;;  %v2125_v23 = vpack.c.bf16 %v2091_v18, %v2089_v17  ;;  %v8959_v17 = vld [vmem:[%s10380_s4] ss:$0 sm:$0xff] }
 0x1ec   : > { %2048 = vst.msk [vmem:[#allocation2 + $0x258] sm:$0xff] %vm1987_vm2, %v1966_v29  ;;  %v1969_v35 = vmax.f32 %v1897_v25, %v1905_v52  ;;  %v1903_v37 = vmax.f32 %v1767_v24, 0.0  ;;  %v2403_v40 = vpop.permute.xlu1 %2402  ;;  %v2561_v32 = vpop.permute.xlu0 %2560 }
 0x1ed   : > { %v2191_v46 = vld [vmem:[#allocation2 + $0x248] ss:$2 sm:$0xff]  ;;  %v2491_v63 = vsel %vm1987_vm2, %v2123_v44, %v2403_v40  ;;  %v2648_v47 = vsel %vm1987_vm2, %v8683_v60, %v2561_v32  ;;  %v2271_v53 = vld [vmem:[#allocation2 + $0x249] ss:$2 sm:$0xff] }
 0x1ee   : > { %2051 = vst.msk [vmem:[#allocation2 + $0x270] sm:$0xff] %vm1987_vm2, %v1969_v35  ;;  %v1967_v43 = vmax.f32 %v1895_v34, %v1903_v37  ;;  %v2095_v34 = vld [vmem:[#allocation2 + $0x1a7] ss:$2 sm:$0xff]  ;;  %v2097_v44 = vld [vmem:[#allocation2 + $0x1b7] ss:$2 sm:$0xff] }
 0x1ef   : > { %v2189_v45 = vld [vmem:[#allocation2 + $0x238] ss:$2 sm:$0xff]  ;;  %v2269_v51 = vld [vmem:[#allocation2 + $0x239] ss:$2 sm:$0xff] }
 0x1f0   : > { %2049 = vst.msk [vmem:[#allocation2 + $0x260] sm:$0xff] %vm1987_vm2, %v1967_v43  ;;  %v2451_v36 = vpop.permute.xlu1 %2450  ;;  %v2609_v41 = vpop.permute.xlu0 %2608  ;;  %v8891_v48 = vpack.c.bf16 %v2191_v46, %v2189_v45  ;;  %v2290_v54 = vpack.c.bf16 %v2271_v53, %v2269_v51  ;;  %v2349_v2 = vld [vmem:[#allocation2 + $0x23a] ss:$2 sm:$0xff]  ;;  %v2099_v45 = vld [vmem:[#allocation2 + $0x1c7] ss:$2 sm:$0xff] }
 0x1f1   : > { %v2531_v49 = vsel %vm1040_vm0, %v2491_v63, %v2451_v36  ;;  %v2689_v50 = vsel %vm1040_vm0, %v2648_v47, %v2609_v41  ;;  %v2127_v63 = vpack.c.bf16 %v2099_v45, %v2097_v44 }
 0x1f2   : > { %2416 = vrot.lane.b32.xlu0 %v8891_v48, %s8170_s22  ;;  %7777 = vmatmul.mubr.msk.bf16.gmra.mxu1 %vm2763_vm3, %v2531_v49 }
 0x1f3   : > { %7780 = vmatprep.mubr.msk.bf16.mxu1 %vm2763_vm3, %v2689_v50  ;;  %v2351_v10 = vld [vmem:[#allocation2 + $0x24a] ss:$2 sm:$0xff] }
 0x1f4   : > { %v2563_v22 = vpop.permute.xlu1 %2562  ;;  %v2370_v5 = vpack.c.bf16 %v2351_v10, %v2349_v2  ;;  %v8003_v10 = vld [vmem:[%s10381_s5 + $0x28] sm:$0xff]   ;;  %v2107_v2 = vld [vmem:[#allocation2 + $0x217] ss:$2 sm:$0xff] }
 0x1f5   : > { %v2195_v56 = vld [vmem:[#allocation2 + $0x268] ss:$2 sm:$0xff]  ;;  %v2651_v57 = vsel %vm1987_vm2, %v8688_v7, %v2563_v22  ;;  %v2275_v0 = vld [vmem:[#allocation2 + $0x269] ss:$2 sm:$0xff]  ;;  %7816 = vmatprep.subr.bf16.mxu1 %v8003_v10 }
 0x1f6   : > { %2464 = vrot.lane.b32.xlu0 %v2290_v54, %s10400_s21  ;;  %v2355_v9 = vld [vmem:[#allocation2 + $0x26a] ss:$2 sm:$0xff]  ;;  %7817 = vmatpush3.bf16.msra.mxu1 %v8003_v10 }
 0x1f7   : > { %v2193_v60 = vld [vmem:[#allocation2 + $0x258] ss:$2 sm:$0xff]  ;;  %v2273_v62 = vld [vmem:[#allocation2 + $0x259] ss:$2 sm:$0xff] }
 0x1f8   : > { %v2611_v58 = vpop.permute.xlu1 %2610  ;;  %v8902_v59 = vpack.c.bf16 %v2195_v56, %v2193_v60  ;;  %v2291_v3 = vpack.c.bf16 %v2275_v0, %v2273_v62  ;;  %v2353_v7 = vld [vmem:[#allocation2 + $0x25a] ss:$2 sm:$0xff]  ;;  %v2103_v56 = vld [vmem:[#allocation2 + $0x1f7] ss:$2 sm:$0xff] }
 0x1f9   : > { %v2691_v61 = vsel %vm1040_vm0, %v2651_v57, %v2611_v58  ;;  %v2371_v12 = vpack.c.bf16 %v2355_v9, %v2353_v7 }
 0x1fa   : > { %2418 = vrot.lane.b32.xlu1 %v8902_v59, %s8170_s22  ;;  %2576 = vrot.lane.b32.xlu0 %v2290_v54, %s8170_s22 }
 0x1fb   : > { %7781 = vmatmul.mubr.msk.bf16.gmra.mxu1 %vm2763_vm3, %v2691_v61 }
 0x1fe   : > { %2466 = vrot.lane.b32.xlu1 %v2291_v3, %s10400_s21  ;;  %2624 = vrot.lane.b32.xlu0 %v2370_v5, %s10400_s21 }
 0x202   : > { %2578 = vrot.lane.b32.xlu1 %v2291_v3, %s8170_s22 }
 0x204   : > { %v2405_v11 = vpop.permute.xlu0 %2404 }
 0x205   : > { %v2494_v42 = vsel %vm1987_vm2, %v2124_v13, %v2405_v11 }
 0x206   : > { %2626 = vrot.lane.b32.xlu1 %v2371_v12, %s10400_s21 }
 0x208   : > { %v2453_v14 = vpop.permute.xlu0 %2452 }
 0x209   : > { %v2533_v15 = vsel %vm1040_vm0, %v2494_v42, %v2453_v14 }
 0x20a   : > { %7784 = vmatprep.mubr.msk.bf16.mxu1 %vm2763_vm3, %v2533_v15  ;;  %v8004_v15 = vld [vmem:[%s10381_s5 + $0x20] sm:$0xff]  }
 0x20b   : > { %7818 = vmatprep.subr.bf16.mxu1 %v8004_v15 }
 0x20c   : > { %v2407_v19 = vpop.permute.xlu1 %2406  ;;  %v2565_v20 = vpop.permute.xlu0 %2564  ;;  %7819 = vmatpush3.bf16.msra.mxu1 %v8004_v15 }
 0x20d   : > { %v2497_v16 = vsel %vm1987_vm2, %v2125_v23, %v2407_v19  ;;  %v2654_v26 = vsel %vm1987_vm2, %v8730_v38, %v2565_v20  ;;  %v2093_v38 = vld [vmem:[#allocation2 + $0x197] ss:$2 sm:$0xff] }
 0x20e   : > { %v2126_v37 = vpack.c.bf16 %v2095_v34, %v2093_v38  ;;  %v8005_v23 = vld [vmem:[%s10381_s5 + $0x18] sm:$0xff]  }
 0x20f   : > { %7820 = vmatprep.subr.bf16.mxu1 %v8005_v23 }
 0x210   : > { %v2455_v27 = vpop.permute.xlu1 %2454  ;;  %v2613_v28 = vpop.permute.xlu0 %2612  ;;  %7821 = vmatpush3.bf16.msra.mxu1 %v8005_v23 }
 0x211   : > { %v2535_v25 = vsel %vm1040_vm0, %v2497_v16, %v2455_v27  ;;  %v2693_v29 = vsel %vm1040_vm0, %v2654_v26, %v2613_v28 }
 0x212   : > { %7785 = vmatmul.mubr.msk.bf16.gmra.mxu1 %vm2763_vm3, %v2535_v25 }
 0x213   : > { %7788 = vmatprep.mubr.msk.bf16.mxu1 %vm2763_vm3, %v2693_v29 }
 0x214   : > { %v2567_v52 = vpop.permute.xlu1 %2566 }
 0x215   : > { %v2657_v24 = vsel %vm1987_vm2, %v8743_v55, %v2567_v52 }
 0x218   : > { %v2615_v30 = vpop.permute.xlu1 %2614 }
 0x219   : > { %v2695_v33 = vsel %vm1040_vm0, %v2657_v24, %v2615_v30 }
 0x21a   : > { %7789 = vmatmul.mubr.msk.bf16.gmra.mxu1 %vm2763_vm3, %v2695_v33 }
 0x224   : > { %v2409_v35 = vpop.permute.xlu0 %2408 }
 0x225   : > { %v2500_v40 = vsel %vm1987_vm2, %v2126_v37, %v2409_v35 }
 0x228   : > { %v2457_v32 = vpop.permute.xlu0 %2456 }
 0x229   : > { %v2537_v43 = vsel %vm1040_vm0, %v2500_v40, %v2457_v32 }
 0x22a   : > { %7792 = vmatprep.mubr.msk.bf16.mxu1 %vm2763_vm3, %v2537_v43 }
 0x22c   : > { %v2411_v46 = vpop.permute.xlu1 %2410  ;;  %v2569_v55 = vpop.permute.xlu0 %2568 }
 0x22d   : > { %v2503_v47 = vsel %vm1987_vm2, %v2127_v63, %v2411_v46  ;;  %v2660_v36 = vsel %vm1987_vm2, %v8787_v21, %v2569_v55  ;;  %v2101_v21 = vld [vmem:[#allocation2 + $0x1e7] ss:$2 sm:$0xff] }
 0x22e   : > { %v2128_v58 = vpack.c.bf16 %v2103_v56, %v2101_v21 }
 0x230   : > { %v2459_v41 = vpop.permute.xlu1 %2458  ;;  %v2617_v49 = vpop.permute.xlu0 %2616 }
 0x231   : > { %v2539_v50 = vsel %vm1040_vm0, %v2503_v47, %v2459_v41  ;;  %v2697_v51 = vsel %vm1040_vm0, %v2660_v36, %v2617_v49  ;;  %v8007_v47 = vld [vmem:[%s10381_s5 + $0x8] sm:$0xff]  }
 0x232   : > { %7793 = vmatmul.mubr.msk.bf16.gmra.mxu1 %vm2763_vm3, %v2539_v50 }
 0x233   : > { %7796 = vmatprep.mubr.msk.bf16.mxu1 %vm2763_vm3, %v2697_v51  ;;  %v8008_v51 = vld [vmem:[%s10381_s5] sm:$0xff]  }
 0x234   : > { %v2571_v53 = vpop.permute.xlu1 %2570 }
 0x235   : > { %v2663_v22 = vsel %vm1987_vm2, %v8798_v39, %v2571_v53  ;;  %v2105_v39 = vld [vmem:[#allocation2 + $0x207] ss:$2 sm:$0xff]  ;;  %v2109_v53 = vld [vmem:[#allocation2 + $0x237] ss:$2 sm:$0xff] }
 0x236   : > { %v2129_v7 = vpack.c.bf16 %v2107_v2, %v2105_v39 }
 0x238   : > { %v2619_v54 = vpop.permute.xlu1 %2618 }
 0x239   : > { %v2699_v60 = vsel %vm1040_vm0, %v2663_v22, %v2619_v54  ;;  %v2111_v22 = vld [vmem:[#allocation2 + $0x247] ss:$2 sm:$0xff] }
 0x23a   : > { %7797 = vmatmul.mubr.msk.bf16.gmra.mxu1 %vm2763_vm3, %v2699_v60  ;;  %v2130_v60 = vpack.c.bf16 %v2111_v22, %v2109_v53 }
 0x244   : > { %v2413_v57 = vpop.permute.xlu0 %2412 }
 0x245   : > { %v2506_v61 = vsel %vm1987_vm2, %v2128_v58, %v2413_v57  ;;  %v2113_v58 = vld [vmem:[#allocation2 + $0x257] ss:$2 sm:$0xff] }
 0x248   : > { %v2461_v62 = vpop.permute.xlu0 %2460 }
 0x249   : > { %v2541_v0 = vsel %vm1040_vm0, %v2506_v61, %v2461_v62  ;;  %v2115_v61 = vld [vmem:[#allocation2 + $0x267] ss:$2 sm:$0xff] }
 0x24a   : > { %7800 = vmatprep.mubr.msk.bf16.mxu1 %vm2763_vm3, %v2541_v0 }
 0x24c   : > { %v2415_v3 = vpop.permute.xlu1 %2414  ;;  %v2573_v5 = vpop.permute.xlu0 %2572 }
 0x24d   : > { %v2509_v6 = vsel %vm1987_vm2, %v2129_v7, %v2415_v3  ;;  %v2666_v9 = vsel %vm1987_vm2, %v8839_v1, %v2573_v5 }
 0x24f   : > { %v7754_v4 = vpop.f32.mrf.mxu1 }
 0x250   : > { %v2463_v11 = vpop.permute.xlu1 %2462  ;;  %v2621_v12 = vpop.permute.xlu0 %2620  ;;  %v2871_v20 = vadd.f32 %v7754_v4, %v8959_v17 }
 0x251   : > { %v2543_v13 = vsel %vm1040_vm0, %v2509_v6, %v2463_v11  ;;  %v2701_v42 = vsel %vm1040_vm0, %v2666_v9, %v2621_v12  ;;  %v2862_v14 = vpop.f32.mrf.mxu1  ;;  %v2131_v6 = vpack.c.bf16 %v2115_v61, %v2113_v58 }
 0x252   : > { %7801 = vmatmul.mubr.msk.bf16.gmra.mxu1 %vm2763_vm3, %v2543_v13  ;;  %v2863_v16 = vadd.f32 %v8959_v17, %v2862_v14  ;;  %v3119_v24 = vmax.f32 %v2871_v20, 0.0 }
 0x253   : > { %v7755_v18 = vpop.f32.mrf.mxu1  ;;  %7804 = vmatprep.mubr.msk.bf16.mxu1 %vm2763_vm3, %v2701_v42 }
 0x254   : > { %v2575_v1 = vpop.permute.xlu1 %2574  ;;  %v2874_v30 = vadd.f32 %v7755_v18, %v8959_v17  ;;  %v3117_v34 = vmax.f32 %v2863_v16, 0.0 }
 0x255   : > { %v2865_v19 = vpop.f32.mrf.mxu1  ;;  %v2669_v27 = vsel %vm1987_vm2, %v8850_v8, %v2575_v1  ;;  %v8006_v8 = vld [vmem:[%s10381_s5 + $0x10] sm:$0xff]  }
 0x256   : > { %v2866_v37 = vadd.f32 %v8959_v17, %v2865_v19  ;;  %7822 = vmatprep.subr.bf16.mxu1 %v8006_v8  ;;  %v3120_v45 = vmax.f32 %v2874_v30, 0.0 }
 0x257   : > { %v7758_v26 = vpop.f32.mrf.mxu1  ;;  %7823 = vmatpush3.bf16.msra.mxu1 %v8006_v8 }
 0x258   : > { %v2887_v28 = vadd.f32 %v7758_v26, %v8959_v17  ;;  %v2623_v25 = vpop.permute.xlu1 %2622  ;;  %v3118_v36 = vmax.f32 %v2866_v37, 0.0  ;;  %7824 = vmatprep.subr.bf16.mxu1 %v8007_v47 }
 0x259   : > { %v2703_v29 = vsel %vm1040_vm0, %v2669_v27, %v2623_v25  ;;  %v2878_v52 = vpop.f32.mrf.mxu1 }
 0x25a   : > { %v3123_v33 = vmax.f32 %v2887_v28, 0.0  ;;  %v2879_v38 = vadd.f32 %v8959_v17, %v2878_v52  ;;  %7805 = vmatmul.mubr.msk.bf16.gmra.mxu1 %vm2763_vm3, %v2703_v29 }
 0x25b   : > { %v7759_v35 = vpop.f32.mrf.mxu1  ;;  %7825 = vmatpush3.bf16.msra.mxu1 %v8007_v47 }
 0x25c   : > { %v3183_v40 = vmax.f32 %v3119_v24, %v3123_v33  ;;  %v3121_v32 = vmax.f32 %v2879_v38, 0.0  ;;  %v2890_v43 = vadd.f32 %v7759_v35, %v8959_v17  ;;  %7826 = vmatprep.subr.bf16.mxu1 %v8008_v51 }
 0x25d   : > { %v2881_v44 = vpop.f32.mrf.mxu1 }
 0x25e   : > { %3231 = vst.msk [vmem:[#allocation3 + $0x18] sm:$0xff] %vm1987_vm2, %v3183_v40  ;;  %v3181_v46 = vmax.f32 %v3117_v34, %v3121_v32  ;;  %v3124_v55 = vmax.f32 %v2890_v43, 0.0  ;;  %v2882_v63 = vadd.f32 %v8959_v17, %v2881_v44 }
 0x25f   : > { %7827 = vmatpush3.bf16.msra.mxu1 %v8008_v51 }
 0x260   : > { %3229 = vst.msk [vmem:[#allocation3 + $0x8] sm:$0xff] %vm1987_vm2, %v3181_v46  ;;  %v3184_v41 = vmax.f32 %v3120_v45, %v3124_v55  ;;  %v3122_v49 = vmax.f32 %v2882_v63, 0.0 }
 0x262   : > { %3232 = vst.msk [vmem:[#allocation3 + $0x20] sm:$0xff] %vm1987_vm2, %v3184_v41  ;;  %v3182_v50 = vmax.f32 %v3118_v36, %v3122_v49 }
 0x264   : > { %3230 = vst.msk [vmem:[#allocation3 + $0x10] sm:$0xff] %vm1987_vm2, %v3182_v50  ;;  %v2417_v54 = vpop.permute.xlu0 %2416 }
 0x265   : > { %v2512_v21 = vsel %vm1987_vm2, %v2130_v60, %v2417_v54 }
 0x268   : > { %v2465_v56 = vpop.permute.xlu0 %2464 }
 0x269   : > { %v2545_v57 = vsel %vm1040_vm0, %v2512_v21, %v2465_v56  ;;  %v3344_v62 = vld [vmem:[#allocation3 + $0x19] ss:$2 sm:$0xff]  ;;  %v3304_v39 = vld [vmem:[#allocation3 + $0x18] ss:$2 sm:$0xff] }
 0x26a   : > { %7808 = vmatprep.mubr.msk.bf16.mxu1 %vm2763_vm3, %v2545_v57  ;;  %v3384_v9 = vld [vmem:[#allocation3 + $0x1a] ss:$2 sm:$0xff] }
 0x26b   : > { %v3342_v10 = vld [vmem:[#allocation3 + $0x9] ss:$2 sm:$0xff]  ;;  %v3302_v0 = vld [vmem:[#allocation3 + $0x8] ss:$2 sm:$0xff] }
 0x26c   : > { %v2419_v2 = vpop.permute.xlu1 %2418  ;;  %v2577_v3 = vpop.permute.xlu0 %2576  ;;  %v3373_v5 = vpack.c.bf16 %v3344_v62, %v3342_v10  ;;  %v8993_v7 = vpack.c.bf16 %v3304_v39, %v3302_v0  ;;  %v3382_v4 = vld [vmem:[#allocation3 + $0xa] ss:$2 sm:$0xff] }
 0x26d   : > { %v2515_v11 = vsel %vm1987_vm2, %v2131_v6, %v2419_v2  ;;  %v2672_v12 = vsel %vm1987_vm2, %v8891_v48, %v2577_v3  ;;  %v3413_v14 = vpack.c.bf16 %v3384_v9, %v3382_v4 }
 0x26e   : > { %3453 = vrot.lane.b32.xlu1 %v3373_v5, %s10400_s21  ;;  %3429 = vrot.lane.b32.xlu0 %v8993_v7, %s8170_s22 }
 0x270   : > { %v2467_v13 = vpop.permute.xlu1 %2466  ;;  %v2625_v42 = vpop.permute.xlu0 %2624 }
 0x271   : > { %v2547_v15 = vsel %vm1040_vm0, %v2515_v11, %v2467_v13  ;;  %v2705_v18 = vsel %vm1040_vm0, %v2672_v12, %v2625_v42 }
 0x272   : > { %v7762_v1 = vpop.f32.mrf.mxu1  ;;  %7809 = vmatmul.mubr.msk.bf16.gmra.mxu1 %vm2763_vm3, %v2547_v15  ;;  %3533 = vrot.lane.b32.xlu1 %v3413_v14, %s10400_s21 }
 0x273   : > { %3509 = vrot.lane.b32.xlu0 %v3373_v5, %s8170_s22  ;;  %7812 = vmatprep.mubr.msk.bf16.mxu1 %vm2763_vm3, %v2705_v18  ;;  %v2903_v28 = vadd.f32 %v7762_v1, %v8959_v17 }
 0x274   : > { %v2579_v19 = vpop.permute.xlu1 %2578  ;;  %v2894_v20 = vpop.f32.mrf.mxu1 }
 0x275   : > { %v2675_v48 = vsel %vm1987_vm2, %v8902_v59, %v2579_v19  ;;  %v2895_v25 = vadd.f32 %v8959_v17, %v2894_v20  ;;  %v3127_v30 = vmax.f32 %v2903_v28, 0.0 }
 0x276   : > { %v7763_v23 = vpop.f32.mrf.mxu1 }
 0x277   : > { %v2906_v33 = vadd.f32 %v7763_v23, %v8959_v17  ;;  %v3125_v8 = vmax.f32 %v2895_v25, 0.0 }
 0x278   : > { %v2627_v16 = vpop.permute.xlu1 %2626  ;;  %v2897_v26 = vpop.f32.mrf.mxu1 }
 0x279   : > { %v2707_v27 = vsel %vm1040_vm0, %v2675_v48, %v2627_v16  ;;  %v2898_v35 = vadd.f32 %v8959_v17, %v2897_v26  ;;  %v3128_v44 = vmax.f32 %v2906_v33, 0.0 }
 0x27a   : > { %7813 = vmatmul.mubr.msk.bf16.gmra.mxu1 %vm2763_vm3, %v2707_v27 }
 0x27b   : > { %v7766_v29 = vpop.f32.mrf.mxu1  ;;  %v3126_v63 = vmax.f32 %v2898_v35, 0.0 }
 0x27c   : > { %v2919_v52 = vadd.f32 %v7766_v29, %v8959_v17 }
 0x27d   : > { %v2910_v24 = vpop.f32.mrf.mxu1 }
 0x27e   : > { %v3131_v38 = vmax.f32 %v2919_v52, 0.0  ;;  %v2911_v59 = vadd.f32 %v8959_v17, %v2910_v24 }
 0x27f   : > { %v7767_v34 = vpop.f32.mrf.mxu1 }
 0x280   : > { %v3187_v37 = vmax.f32 %v3127_v30, %v3131_v38  ;;  %v3129_v40 = vmax.f32 %v2911_v59, 0.0  ;;  %v2922_v32 = vadd.f32 %v7767_v34, %v8959_v17 }
 0x281   : > { %v2913_v43 = vpop.f32.mrf.mxu1 }
 0x282   : > { %3235 = vst.msk [vmem:[#allocation3 + $0x48] sm:$0xff] %vm1987_vm2, %v3187_v37  ;;  %v3185_v45 = vmax.f32 %v3125_v8, %v3129_v40  ;;  %v3132_v46 = vmax.f32 %v2922_v32, 0.0  ;;  %v2914_v55 = vadd.f32 %v8959_v17, %v2913_v43 }
 0x284   : > { %3233 = vst.msk [vmem:[#allocation3 + $0x38] sm:$0xff] %vm1987_vm2, %v3185_v45  ;;  %v3188_v47 = vmax.f32 %v3128_v44, %v3132_v46  ;;  %v3130_v36 = vmax.f32 %v2914_v55, 0.0 }
 0x286   : > { %3236 = vst.msk [vmem:[#allocation3 + $0x50] sm:$0xff] %vm1987_vm2, %v3188_v47  ;;  %v3186_v41 = vmax.f32 %v3126_v63, %v3130_v36 }
 0x288   : > { %3234 = vst.msk [vmem:[#allocation3 + $0x40] sm:$0xff] %vm1987_vm2, %v3186_v41 }
 0x28d   : > { %v3348_v49 = vld [vmem:[#allocation3 + $0x49] ss:$2 sm:$0xff]  ;;  %v3308_v53 = vld [vmem:[#allocation3 + $0x48] ss:$2 sm:$0xff] }
 0x28e   : > { %v3388_v56 = vld [vmem:[#allocation3 + $0x4a] ss:$2 sm:$0xff] }
 0x28f   : > { %v3346_v50 = vld [vmem:[#allocation3 + $0x39] ss:$2 sm:$0xff]  ;;  %v3306_v51 = vld [vmem:[#allocation3 + $0x38] ss:$2 sm:$0xff] }
 0x290   : > { %v3374_v22 = vpack.c.bf16 %v3348_v49, %v3346_v50  ;;  %v9023_v54 = vpack.c.bf16 %v3308_v53, %v3306_v51  ;;  %v3386_v60 = vld [vmem:[#allocation3 + $0x3a] ss:$2 sm:$0xff] }
 0x291   : > { %v3414_v58 = vpack.c.bf16 %v3388_v56, %v3386_v60 }
 0x292   : > { %3455 = vrot.lane.b32.xlu1 %v3374_v22, %s10400_s21  ;;  %3431 = vrot.lane.b32.xlu0 %v9023_v54, %s8170_s22  ;;  %v7770_v21 = vpop.f32.mrf.mxu1 }
 0x293   : > { %v2935_v10 = vadd.f32 %v7770_v21, %v8959_v17 }
 0x294   : > { %v2926_v57 = vpop.f32.mrf.mxu1 }
 0x295   : > { %v2927_v0 = vadd.f32 %v8959_v17, %v2926_v57  ;;  %v3135_v5 = vmax.f32 %v2935_v10, 0.0 }
 0x296   : > { %3535 = vrot.lane.b32.xlu1 %v3414_v58, %s10400_s21  ;;  %3511 = vrot.lane.b32.xlu0 %v3374_v22, %s8170_s22  ;;  %v7771_v61 = vpop.f32.mrf.mxu1 }
 0x297   : > { %v2938_v4 = vadd.f32 %v7771_v61, %v8959_v17  ;;  %v3133_v11 = vmax.f32 %v2927_v0, 0.0 }
 0x298   : > { %v2929_v62 = vpop.f32.mrf.mxu1 }
 0x299   : > { %v2930_v13 = vadd.f32 %v8959_v17, %v2929_v62  ;;  %v3136_v1 = vmax.f32 %v2938_v4, 0.0 }
 0x29b   : > { %v7774_v39 = vpop.f32.mrf.mxu1  ;;  %v3134_v48 = vmax.f32 %v2930_v13, 0.0 }
 0x29c   : > { %v2951_v2 = vadd.f32 %v7774_v39, %v8959_v17 }
 0x29d   : > { %v2942_v3 = vpop.f32.mrf.mxu1 }
 0x29e   : > { %v3139_v6 = vmax.f32 %v2951_v2, 0.0  ;;  %v2943_v9 = vadd.f32 %v8959_v17, %v2942_v3 }
 0x29f   : > { %v7775_v12 = vpop.f32.mrf.mxu1 }
 0x2a0   : > { %v3191_v42 = vmax.f32 %v3135_v5, %v3139_v6  ;;  %v3137_v14 = vmax.f32 %v2943_v9, 0.0  ;;  %v2954_v15 = vadd.f32 %v7775_v12, %v8959_v17 }
 0x2a1   : > { %v2945_v18 = vpop.f32.mrf.mxu1 }
 0x2a2   : > { %3239 = vst.msk [vmem:[#allocation3 + $0x78] sm:$0xff] %vm1987_vm2, %v3191_v42  ;;  %v3189_v19 = vmax.f32 %v3133_v11, %v3137_v14  ;;  %v3140_v20 = vmax.f32 %v2954_v15, 0.0  ;;  %v2946_v23 = vadd.f32 %v8959_v17, %v2945_v18 }
 0x2a4   : > { %3237 = vst.msk [vmem:[#allocation3 + $0x68] sm:$0xff] %vm1987_vm2, %v3189_v19  ;;  %v3192_v16 = vmax.f32 %v3136_v1, %v3140_v20  ;;  %v3138_v26 = vmax.f32 %v2946_v23, 0.0 }
 0x2a6   : > { %3240 = vst.msk [vmem:[#allocation3 + $0x80] sm:$0xff] %vm1987_vm2, %v3192_v16  ;;  %v3190_v27 = vmax.f32 %v3134_v48, %v3138_v26 }
 0x2a8   : > { %3238 = vst.msk [vmem:[#allocation3 + $0x70] sm:$0xff] %vm1987_vm2, %v3190_v27  ;;  %v3264_v27 = vld [vmem:[#allocation3 + $0x17] ss:$2 sm:$0xff] }
 0x2ad   : > { %v3352_v28 = vld [vmem:[#allocation3 + $0x79] ss:$2 sm:$0xff]  ;;  %v3312_v52 = vld [vmem:[#allocation3 + $0x78] ss:$2 sm:$0xff] }
 0x2ae   : > { %v3392_v59 = vld [vmem:[#allocation3 + $0x7a] ss:$2 sm:$0xff] }
 0x2af   : > { %v3350_v25 = vld [vmem:[#allocation3 + $0x69] ss:$2 sm:$0xff]  ;;  %v3310_v29 = vld [vmem:[#allocation3 + $0x68] ss:$2 sm:$0xff] }
 0x2b0   : > { %v3375_v24 = vpack.c.bf16 %v3352_v28, %v3350_v25  ;;  %v9042_v30 = vpack.c.bf16 %v3312_v52, %v3310_v29  ;;  %v3390_v33 = vld [vmem:[#allocation3 + $0x6a] ss:$2 sm:$0xff]  ;;  %v3262_v28 = vld [vmem:[#allocation3 + $0x7] ss:$2 sm:$0xff] }
 0x2b1   : > { %v3415_v34 = vpack.c.bf16 %v3392_v59, %v3390_v33 }
 0x2b2   : > { %3457 = vrot.lane.b32.xlu1 %v3375_v24, %s10400_s21  ;;  %3433 = vrot.lane.b32.xlu0 %v9042_v30, %s8170_s22  ;;  %v7778_v38 = vpop.f32.mrf.mxu1 }
 0x2b3   : > { %v2967_v40 = vadd.f32 %v7778_v38, %v8959_v17 }
 0x2b4   : > { %v2958_v8 = vpop.f32.mrf.mxu1 }
 0x2b5   : > { %v2959_v32 = vadd.f32 %v8959_v17, %v2958_v8  ;;  %v3143_v46 = vmax.f32 %v2967_v40, 0.0 }
 0x2b6   : > { %3537 = vrot.lane.b32.xlu1 %v3415_v34, %s10400_s21  ;;  %3513 = vrot.lane.b32.xlu0 %v3375_v24, %s8170_s22  ;;  %v7779_v35 = vpop.f32.mrf.mxu1  ;;  %v3293_v34 = vpack.c.bf16 %v3264_v27, %v3262_v28 }
 0x2b7   : > { %v2970_v55 = vadd.f32 %v7779_v35, %v8959_v17  ;;  %v3141_v36 = vmax.f32 %v2959_v32, 0.0 }
 0x2b8   : > { %v2961_v37 = vpop.f32.mrf.mxu1 }
 0x2b9   : > { %v2962_v49 = vadd.f32 %v8959_v17, %v2961_v37  ;;  %v3144_v60 = vmax.f32 %v2970_v55, 0.0 }
 0x2bb   : > { %v7782_v43 = vpop.f32.mrf.mxu1  ;;  %v3142_v58 = vmax.f32 %v2962_v49, 0.0 }
 0x2bc   : > { %v2983_v44 = vadd.f32 %v7782_v43, %v8959_v17 }
 0x2bd   : > { %v2974_v45 = vpop.f32.mrf.mxu1 }
 0x2be   : > { %v3147_v63 = vmax.f32 %v2983_v44, 0.0  ;;  %v2975_v47 = vadd.f32 %v8959_v17, %v2974_v45 }
 0x2bf   : > { %v7783_v41 = vpop.f32.mrf.mxu1 }
 0x2c0   : > { %v3195_v50 = vmax.f32 %v3143_v46, %v3147_v63  ;;  %v3145_v51 = vmax.f32 %v2975_v47, 0.0  ;;  %v2986_v53 = vadd.f32 %v7783_v41, %v8959_v17 }
 0x2c1   : > { %v2977_v22 = vpop.f32.mrf.mxu1 }
 0x2c2   : > { %3243 = vst.msk [vmem:[#allocation3 + $0xa8] sm:$0xff] %vm1987_vm2, %v3195_v50  ;;  %v3193_v21 = vmax.f32 %v3141_v36, %v3145_v51  ;;  %v3148_v56 = vmax.f32 %v2986_v53, 0.0  ;;  %v2978_v57 = vadd.f32 %v8959_v17, %v2977_v22 }
 0x2c4   : > { %3241 = vst.msk [vmem:[#allocation3 + $0x98] sm:$0xff] %vm1987_vm2, %v3193_v21  ;;  %v3196_v61 = vmax.f32 %v3144_v60, %v3148_v56  ;;  %v3146_v62 = vmax.f32 %v2978_v57, 0.0 }
 0x2c6   : > { %3244 = vst.msk [vmem:[#allocation3 + $0xb0] sm:$0xff] %vm1987_vm2, %v3196_v61  ;;  %v3194_v10 = vmax.f32 %v3142_v58, %v3146_v62 }
 0x2c8   : > { %3242 = vst.msk [vmem:[#allocation3 + $0xa0] sm:$0xff] %vm1987_vm2, %v3194_v10 }
 0x2cd   : > { %v3356_v0 = vld [vmem:[#allocation3 + $0xa9] ss:$2 sm:$0xff]  ;;  %v3316_v3 = vld [vmem:[#allocation3 + $0xa8] ss:$2 sm:$0xff] }
 0x2ce   : > { %v3396_v11 = vld [vmem:[#allocation3 + $0xaa] ss:$2 sm:$0xff] }
 0x2cf   : > { %v3354_v39 = vld [vmem:[#allocation3 + $0x99] ss:$2 sm:$0xff]  ;;  %v3314_v2 = vld [vmem:[#allocation3 + $0x98] ss:$2 sm:$0xff] }
 0x2d0   : > { %v3376_v5 = vpack.c.bf16 %v3356_v0, %v3354_v39  ;;  %v9061_v4 = vpack.c.bf16 %v3316_v3, %v3314_v2  ;;  %v3394_v6 = vld [vmem:[#allocation3 + $0x9a] ss:$2 sm:$0xff] }
 0x2d1   : > { %v3416_v13 = vpack.c.bf16 %v3396_v11, %v3394_v6 }
 0x2d2   : > { %3459 = vrot.lane.b32.xlu1 %v3376_v5, %s10400_s21  ;;  %3435 = vrot.lane.b32.xlu0 %v9061_v4, %s8170_s22  ;;  %v7786_v9 = vpop.f32.mrf.mxu1 }
 0x2d3   : > { %v2999_v15 = vadd.f32 %v7786_v9, %v8959_v17 }
 0x2d4   : > { %v2990_v12 = vpop.f32.mrf.mxu1 }
 0x2d5   : > { %v2991_v18 = vadd.f32 %v8959_v17, %v2990_v12  ;;  %v3151_v23 = vmax.f32 %v2999_v15, 0.0 }
 0x2d6   : > { %3539 = vrot.lane.b32.xlu1 %v3416_v13, %s10400_s21  ;;  %3515 = vrot.lane.b32.xlu0 %v3376_v5, %s8170_s22  ;;  %v7787_v42 = vpop.f32.mrf.mxu1 }
 0x2d7   : > { %v3002_v48 = vadd.f32 %v7787_v42, %v8959_v17  ;;  %v3149_v25 = vmax.f32 %v2991_v18, 0.0 }
 0x2d8   : > { %v2993_v14 = vpop.f32.mrf.mxu1 }
 0x2d9   : > { %v2994_v52 = vadd.f32 %v8959_v17, %v2993_v14  ;;  %v3152_v35 = vmax.f32 %v3002_v48, 0.0  ;;  %v3268_v48 = vld [vmem:[#allocation3 + $0x47] ss:$2 sm:$0xff] }
 0x2da   : > { %v7790_v1 = vpop.f32.mrf.mxu1 }
 0x2db   : > { %v3015_v19 = vadd.f32 %v7790_v1, %v8959_v17  ;;  %v3150_v45 = vmax.f32 %v2994_v52, 0.0 }
 0x2dc   : > { %v3006_v20 = vpop.f32.mrf.mxu1 }
 0x2dd   : > { %v3155_v16 = vmax.f32 %v3015_v19, 0.0  ;;  %v3007_v26 = vadd.f32 %v8959_v17, %v3006_v20 }
 0x2de   : > { %v7791_v29 = vpop.f32.mrf.mxu1 }
 0x2df   : > { %v3199_v24 = vmax.f32 %v3151_v23, %v3155_v16  ;;  %v3153_v33 = vmax.f32 %v3007_v26, 0.0  ;;  %v3018_v38 = vadd.f32 %v7791_v29, %v8959_v17  ;;  %v3266_v23 = vld [vmem:[#allocation3 + $0x37] ss:$2 sm:$0xff] }
 0x2e0   : > { %v3009_v59 = vpop.f32.mrf.mxu1  ;;  %v3454_v8 = vpop.permute.xlu1 %3453 }
 0x2e1   : > { %3247 = vst.msk [vmem:[#allocation3 + $0xd8] sm:$0xff] %vm1987_vm2, %v3199_v24  ;;  %v3197_v37 = vmax.f32 %v3149_v25, %v3153_v33  ;;  %v3156_v40 = vmax.f32 %v3018_v38, 0.0  ;;  %v3010_v32 = vadd.f32 %v8959_v17, %v3009_v59  ;;  %v3430_v43 = vpop.permute.xlu0 %3429  ;;  %v3294_v24 = vpack.c.bf16 %v3268_v48, %v3266_v23 }
 0x2e2   : > { %v3471_v44 = vsel %vm1987_vm2, %v3293_v34, %v3430_v43 }
 0x2e3   : > { %3245 = vst.msk [vmem:[#allocation3 + $0xc8] sm:$0xff] %vm1987_vm2, %v3197_v37  ;;  %v3200_v46 = vmax.f32 %v3152_v35, %v3156_v40  ;;  %v3154_v55 = vmax.f32 %v3010_v32, 0.0  ;;  %v3494_v63 = vsel %vm1040_vm0, %v3471_v44, %v3454_v8 }
 0x2e4   : > { %7828 = vmatprep.mubr.msk.bf16.mxu1 %vm2763_vm3, %v3494_v63  ;;  %v3534_v47 = vpop.permute.xlu1 %3533 }
 0x2e5   : > { %3248 = vst.msk [vmem:[#allocation3 + $0xe0] sm:$0xff] %vm1987_vm2, %v3200_v46  ;;  %v3198_v36 = vmax.f32 %v3150_v45, %v3154_v55  ;;  %v3510_v41 = vpop.permute.xlu0 %3509 }
 0x2e6   : > { %v3551_v49 = vsel %vm1987_vm2, %v8993_v7, %v3510_v41 }
 0x2e7   : > { %3246 = vst.msk [vmem:[#allocation3 + $0xd0] sm:$0xff] %vm1987_vm2, %v3198_v36  ;;  %v3574_v50 = vsel %vm1040_vm0, %v3551_v49, %v3534_v47 }
 0x2e8   : > { %7829 = vmatmul.mubr.msk.bf16.vlgmr.msra.gmra.mxu1 %vm2763_vm3, %v3574_v50 }
 0x2ec   : > { %v3360_v51 = vld [vmem:[#allocation3 + $0xd9] ss:$2 sm:$0xff]  ;;  %v3320_v60 = vld [vmem:[#allocation3 + $0xd8] ss:$2 sm:$0xff] }
 0x2ed   : > { %v3400_v58 = vld [vmem:[#allocation3 + $0xda] ss:$2 sm:$0xff] }
 0x2ee   : > { %v3358_v53 = vld [vmem:[#allocation3 + $0xc9] ss:$2 sm:$0xff]  ;;  %v3318_v22 = vld [vmem:[#allocation3 + $0xc8] ss:$2 sm:$0xff] }
 0x2ef   : > { %v3377_v21 = vpack.c.bf16 %v3360_v51, %v3358_v53  ;;  %v9087_v56 = vpack.c.bf16 %v3320_v60, %v3318_v22  ;;  %v3398_v57 = vld [vmem:[#allocation3 + $0xca] ss:$2 sm:$0xff] }
 0x2f0   : > { %v3417_v61 = vpack.c.bf16 %v3400_v58, %v3398_v57 }
 0x2f1   : > { %3461 = vrot.lane.b32.xlu1 %v3377_v21, %s10400_s21  ;;  %3437 = vrot.lane.b32.xlu0 %v9087_v56, %s8170_s22 }
 0x2f2   : > { %v7794_v7 = vpop.f32.mrf.mxu1 }
 0x2f3   : > { %v3031_v39 = vadd.f32 %v7794_v7, %v8959_v17 }
 0x2f4   : > { %v3022_v62 = vpop.f32.mrf.mxu1 }
 0x2f5   : > { %3541 = vrot.lane.b32.xlu1 %v3417_v61, %s10400_s21  ;;  %3517 = vrot.lane.b32.xlu0 %v3377_v21, %s8170_s22  ;;  %v3023_v2 = vadd.f32 %v8959_v17, %v3022_v62  ;;  %v3159_v9 = vmax.f32 %v3031_v39, 0.0 }
 0x2f6   : > { %v7795_v10 = vpop.f32.mrf.mxu1 }
 0x2f7   : > { %v3034_v11 = vadd.f32 %v7795_v10, %v8959_v17  ;;  %v3157_v42 = vmax.f32 %v3023_v2, 0.0 }
 0x2f8   : > { %v3025_v0 = vpop.f32.mrf.mxu1 }
 0x2f9   : > { %v3026_v15 = vadd.f32 %v8959_v17, %v3025_v0  ;;  %v3160_v16 = vmax.f32 %v3034_v11, 0.0  ;;  %v3272_v11 = vld [vmem:[#allocation3 + $0x77] ss:$2 sm:$0xff] }
 0x2fa   : > { %v7798_v3 = vpop.f32.mrf.mxu1 }
 0x2fb   : > { %v3047_v5 = vadd.f32 %v7798_v3, %v8959_v17  ;;  %v3158_v25 = vmax.f32 %v3026_v15, 0.0 }
 0x2fc   : > { %v3038_v6 = vpop.f32.mrf.mxu1 }
 0x2fd   : > { %v3163_v12 = vmax.f32 %v3047_v5, 0.0  ;;  %v3039_v13 = vadd.f32 %v8959_v17, %v3038_v6 }
 0x2fe   : > { %v7799_v14 = vpop.f32.mrf.mxu1 }
 0x2ff   : > { %v3203_v18 = vmax.f32 %v3159_v9, %v3163_v12  ;;  %v3161_v1 = vmax.f32 %v3039_v13, 0.0  ;;  %v3050_v19 = vadd.f32 %v7799_v14, %v8959_v17  ;;  %v3270_v9 = vld [vmem:[#allocation3 + $0x67] ss:$2 sm:$0xff] }
 0x300   : > { %v3041_v20 = vpop.f32.mrf.mxu1 }
 0x301   : > { %3251 = vst.msk [vmem:[#allocation3 + $0x108] sm:$0xff] %vm1987_vm2, %v3203_v18  ;;  %v3201_v26 = vmax.f32 %v3157_v42, %v3161_v1  ;;  %v3164_v27 = vmax.f32 %v3050_v19, 0.0  ;;  %v3042_v28 = vadd.f32 %v8959_v17, %v3041_v20  ;;  %v3295_v19 = vpack.c.bf16 %v3272_v11, %v3270_v9 }
 0x303   : > { %3249 = vst.msk [vmem:[#allocation3 + $0xf8] sm:$0xff] %vm1987_vm2, %v3201_v26  ;;  %v3204_v29 = vmax.f32 %v3160_v16, %v3164_v27  ;;  %v3162_v52 = vmax.f32 %v3042_v28, 0.0 }
 0x304   : > { %v3456_v33 = vpop.permute.xlu1 %3455  ;;  %v3432_v38 = vpop.permute.xlu0 %3431 }
 0x305   : > { %3252 = vst.msk [vmem:[#allocation3 + $0x110] sm:$0xff] %vm1987_vm2, %v3204_v29  ;;  %v3202_v59 = vmax.f32 %v3158_v25, %v3162_v52  ;;  %v3474_v8 = vsel %vm1987_vm2, %v3294_v24, %v3432_v38 }
 0x306   : > { %v3496_v34 = vsel %vm1040_vm0, %v3474_v8, %v3456_v33 }
 0x307   : > { %3250 = vst.msk [vmem:[#allocation3 + $0x100] sm:$0xff] %vm1987_vm2, %v3202_v59  ;;  %7832 = vmatprep.mubr.msk.bf16.mxu1 %vm2763_vm3, %v3496_v34 }
 0x308   : > { %v3536_v35 = vpop.permute.xlu1 %3535  ;;  %v3512_v37 = vpop.permute.xlu0 %3511 }
 0x309   : > { %v3554_v40 = vsel %vm1987_vm2, %v9023_v54, %v3512_v37 }
 0x30a   : > { %v3576_v32 = vsel %vm1040_vm0, %v3554_v40, %v3536_v35 }
 0x30b   : > { %7833 = vmatmul.mubr.msk.bf16.gmra.mxu1 %vm2763_vm3, %v3576_v32 }
 0x30c   : > { %v3364_v43 = vld [vmem:[#allocation3 + $0x109] ss:$2 sm:$0xff]  ;;  %v3324_v46 = vld [vmem:[#allocation3 + $0x108] ss:$2 sm:$0xff] }
 0x30d   : > { %v3404_v41 = vld [vmem:[#allocation3 + $0x10a] ss:$2 sm:$0xff] }
 0x30e   : > { %v3362_v44 = vld [vmem:[#allocation3 + $0xf9] ss:$2 sm:$0xff]  ;;  %v3322_v45 = vld [vmem:[#allocation3 + $0xf8] ss:$2 sm:$0xff] }
 0x30f   : > { %v3378_v55 = vpack.c.bf16 %v3364_v43, %v3362_v44  ;;  %v9113_v63 = vpack.c.bf16 %v3324_v46, %v3322_v45  ;;  %v3402_v47 = vld [vmem:[#allocation3 + $0xfa] ss:$2 sm:$0xff] }
 0x310   : > { %v3418_v54 = vpack.c.bf16 %v3404_v41, %v3402_v47 }
 0x311   : > { %3463 = vrot.lane.b32.xlu1 %v3378_v55, %s10400_s21  ;;  %3439 = vrot.lane.b32.xlu0 %v9113_v63, %s8170_s22 }
 0x312   : > { %v7802_v36 = vpop.f32.mrf.mxu1 }
 0x313   : > { %v3063_v53 = vadd.f32 %v7802_v36, %v8959_v17 }
 0x314   : > { %v3054_v49 = vpop.f32.mrf.mxu1 }
 0x315   : > { %3543 = vrot.lane.b32.xlu1 %v3418_v54, %s10400_s21  ;;  %3519 = vrot.lane.b32.xlu0 %v3378_v55, %s8170_s22  ;;  %v3055_v22 = vadd.f32 %v8959_v17, %v3054_v49  ;;  %v3167_v7 = vmax.f32 %v3063_v53, 0.0 }
 0x316   : > { %v7803_v50 = vpop.f32.mrf.mxu1 }
 0x317   : > { %v3066_v58 = vadd.f32 %v7803_v50, %v8959_v17  ;;  %v3165_v10 = vmax.f32 %v3055_v22, 0.0 }
 0x318   : > { %v3057_v51 = vpop.f32.mrf.mxu1 }
 0x319   : > { %v3058_v39 = vadd.f32 %v8959_v17, %v3057_v51  ;;  %v3168_v12 = vmax.f32 %v3066_v58, 0.0  ;;  %v3276_v58 = vld [vmem:[#allocation3 + $0xa7] ss:$2 sm:$0xff] }
 0x31a   : > { %v7806_v60 = vpop.f32.mrf.mxu1 }
 0x31b   : > { %v3079_v21 = vadd.f32 %v7806_v60, %v8959_v17  ;;  %v3166_v15 = vmax.f32 %v3058_v39, 0.0 }
 0x31c   : > { %v3070_v57 = vpop.f32.mrf.mxu1 }
 0x31d   : > { %v3171_v61 = vmax.f32 %v3079_v21, 0.0  ;;  %v3071_v62 = vadd.f32 %v8959_v17, %v3070_v57 }
 0x31e   : > { %v7807_v0 = vpop.f32.mrf.mxu1 }
 0x31f   : > { %v3207_v2 = vmax.f32 %v3167_v7, %v3171_v61  ;;  %v3169_v3 = vmax.f32 %v3071_v62, 0.0  ;;  %v3082_v5 = vadd.f32 %v7807_v0, %v8959_v17  ;;  %v3274_v7 = vld [vmem:[#allocation3 + $0x97] ss:$2 sm:$0xff] }
 0x320   : > { %v3073_v6 = vpop.f32.mrf.mxu1 }
 0x321   : > { %3255 = vst.msk [vmem:[#allocation3 + $0x138] sm:$0xff] %vm1987_vm2, %v3207_v2  ;;  %v3205_v13 = vmax.f32 %v3165_v10, %v3169_v3  ;;  %v3172_v42 = vmax.f32 %v3082_v5, 0.0  ;;  %v3074_v14 = vadd.f32 %v8959_v17, %v3073_v6  ;;  %v3296_v5 = vpack.c.bf16 %v3276_v58, %v3274_v7 }
 0x323   : > { %3253 = vst.msk [vmem:[#allocation3 + $0x128] sm:$0xff] %vm1987_vm2, %v3205_v13  ;;  %v3208_v18 = vmax.f32 %v3168_v12, %v3172_v42  ;;  %v3170_v1 = vmax.f32 %v3074_v14, 0.0 }
 0x324   : > { %v3458_v20 = vpop.permute.xlu1 %3457  ;;  %v3434_v23 = vpop.permute.xlu0 %3433 }
 0x325   : > { %3256 = vst.msk [vmem:[#allocation3 + $0x140] sm:$0xff] %vm1987_vm2, %v3208_v18  ;;  %v3206_v48 = vmax.f32 %v3166_v15, %v3170_v1  ;;  %v3477_v16 = vsel %vm1987_vm2, %v3295_v19, %v3434_v23 }
 0x326   : > { %v3498_v26 = vsel %vm1040_vm0, %v3477_v16, %v3458_v20 }
 0x327   : > { %3254 = vst.msk [vmem:[#allocation3 + $0x130] sm:$0xff] %vm1987_vm2, %v3206_v48  ;;  %7836 = vmatprep.mubr.msk.bf16.mxu1 %vm2763_vm3, %v3498_v26 }
 0x328   : > { %v3538_v27 = vpop.permute.xlu1 %3537  ;;  %v3514_v28 = vpop.permute.xlu0 %3513 }
 0x329   : > { %v3557_v25 = vsel %vm1987_vm2, %v9042_v30, %v3514_v28  ;;  %v3280_v28 = vld [vmem:[#allocation3 + $0xd7] ss:$2 sm:$0xff] }
 0x32a   : > { %v3578_v29 = vsel %vm1040_vm0, %v3557_v25, %v3538_v27 }
 0x32b   : > { %7837 = vmatmul.mubr.msk.bf16.gmra.mxu1 %vm2763_vm3, %v3578_v29 }
 0x32c   : > { %v3368_v52 = vld [vmem:[#allocation3 + $0x139] ss:$2 sm:$0xff]  ;;  %v3328_v38 = vld [vmem:[#allocation3 + $0x138] ss:$2 sm:$0xff] }
 0x32d   : > { %v3408_v37 = vld [vmem:[#allocation3 + $0x13a] ss:$2 sm:$0xff] }
 0x32e   : > { %v3366_v24 = vld [vmem:[#allocation3 + $0x129] ss:$2 sm:$0xff]  ;;  %v3326_v33 = vld [vmem:[#allocation3 + $0x128] ss:$2 sm:$0xff] }
 0x32f   : > { %v3379_v59 = vpack.c.bf16 %v3368_v52, %v3366_v24  ;;  %v9139_v8 = vpack.c.bf16 %v3328_v38, %v3326_v33  ;;  %v3406_v34 = vld [vmem:[#allocation3 + $0x12a] ss:$2 sm:$0xff] }
 0x330   : > { %v3419_v30 = vpack.c.bf16 %v3408_v37, %v3406_v34  ;;  %v3282_v37 = vld [vmem:[#allocation3 + $0xf7] ss:$2 sm:$0xff] }
 0x331   : > { %3465 = vrot.lane.b32.xlu1 %v3379_v59, %s10400_s21  ;;  %3441 = vrot.lane.b32.xlu0 %v9139_v8, %s8170_s22 }
 0x332   : > { %v7810_v35 = vpop.f32.mrf.mxu1 }
 0x333   : > { %v3095_v44 = vadd.f32 %v7810_v35, %v8959_v17 }
 0x334   : > { %v3086_v40 = vpop.f32.mrf.mxu1 }
 0x335   : > { %3545 = vrot.lane.b32.xlu1 %v3419_v30, %s10400_s21  ;;  %3521 = vrot.lane.b32.xlu0 %v3379_v59, %s8170_s22  ;;  %v3087_v45 = vadd.f32 %v8959_v17, %v3086_v40  ;;  %v3175_v36 = vmax.f32 %v3095_v44, 0.0  ;;  %v3284_v30 = vld [vmem:[#allocation3 + $0x107] ss:$2 sm:$0xff] }
 0x336   : > { %v7811_v32 = vpop.f32.mrf.mxu1  ;;  %v3298_v40 = vpack.c.bf16 %v3284_v30, %v3282_v37 }
 0x337   : > { %v3098_v41 = vadd.f32 %v7811_v32, %v8959_v17  ;;  %v3173_v50 = vmax.f32 %v3087_v45, 0.0  ;;  %v8009_v32 = vld [vmem:[%s10383_s7 + $0x38] sm:$0xff]   ;;  %v8171_v45 = vmov 0  }
 0x338   : > { %v3089_v43 = vpop.f32.mrf.mxu1  ;;  %4310 = vmatprep.subr.bf16.mxu1 %v8171_v45  ;;  %4879 = vmatprep.subr.bf16.mxu0 %v8171_v45 }
 0x339   : > { %v3090_v53 = vadd.f32 %v8959_v17, %v3089_v43  ;;  %v3176_v61 = vmax.f32 %v3098_v41, 0.0  ;;  %4311 = vmatpush1.bf16.msra.mxu1 %v8009_v32 }
 0x33a   : > { %v7814_v46 = vpop.f32.mrf.mxu1  ;;  %4312 = vmatprep.subr.bf16.mxu1 %v8171_v45 }
 0x33b   : > { %v3111_v55 = vadd.f32 %v7814_v46, %v8959_v17  ;;  %v3174_v39 = vmax.f32 %v3090_v53, 0.0  ;;  %v8015_v53 = vld [vmem:[%s10383_s7 + $0x8] sm:$0xff]  }
 0x33c   : > { %v3102_v47 = vpop.f32.mrf.mxu1 }
 0x33d   : > { %v3179_v54 = vmax.f32 %v3111_v55, 0.0  ;;  %v3103_v49 = vadd.f32 %v8959_v17, %v3102_v47 }
 0x33e   : > { %v7815_v51 = vpop.f32.mrf.mxu1 }
 0x33f   : > { %v3211_v22 = vmax.f32 %v3175_v36, %v3179_v54  ;;  %v3177_v60 = vmax.f32 %v3103_v49, 0.0  ;;  %v3114_v21 = vadd.f32 %v7815_v51, %v8959_v17  ;;  %v8010_v54 = vld [vmem:[%s10383_s7 + $0x30] sm:$0xff]   ;;  %v8011_v49 = vld [vmem:[%s10383_s7 + $0x28] sm:$0xff]  }
 0x340   : > { %v3105_v57 = vpop.f32.mrf.mxu1  ;;  %4313 = vmatpush1.bf16.msra.mxu1 %v8010_v54  ;;  %v8014_v51 = vld [vmem:[%s10383_s7 + $0x10] sm:$0xff]  }
 0x341   : > { %3259 = vst.msk [vmem:[#allocation3 + $0x168] sm:$0xff] %vm1987_vm2, %v3211_v22  ;;  %v3209_v62 = vmax.f32 %v3173_v50, %v3177_v60  ;;  %v3180_v10 = vmax.f32 %v3114_v21, 0.0  ;;  %v3106_v0 = vadd.f32 %v8959_v17, %v3105_v57  ;;  %4314 = vmatprep.subr.bf16.mxu1 %v8171_v45  ;;  %v8013_v50 = vld [vmem:[%s10383_s7 + $0x18] sm:$0xff]   ;;  %v3286_v22 = vld [vmem:[#allocation3 + $0x127] ss:$2 sm:$0xff] }
 0x342   : > { %v3288_v60 = vld [vmem:[#allocation3 + $0x137] ss:$2 sm:$0xff] }
 0x343   : > { %3257 = vst.msk [vmem:[#allocation3 + $0x158] sm:$0xff] %vm1987_vm2, %v3209_v62  ;;  %v3212_v2 = vmax.f32 %v3176_v61, %v3180_v10  ;;  %v3178_v3 = vmax.f32 %v3106_v0, 0.0  ;;  %v3299_v21 = vpack.c.bf16 %v3288_v60, %v3286_v22  ;;  %v8016_v57 = vld [vmem:[%s10383_s7] sm:$0xff]   ;;  %v8017_v62 = vld [vmem:[%s10383_s7 + $0x58] sm:$0xff]  }
 0x344   : > { %v3460_v6 = vpop.permute.xlu1 %3459  ;;  %v3436_v9 = vpop.permute.xlu0 %3435  ;;  %4315 = vmatpush1.bf16.msra.mxu1 %v8011_v49  ;;  %v9293_v0 = vld [vmem:[%s10382_s6] ss:$0 sm:$0xff] }
 0x345   : > { %3260 = vst.msk [vmem:[#allocation3 + $0x170] sm:$0xff] %vm1987_vm2, %v3212_v2  ;;  %v3210_v11 = vmax.f32 %v3174_v39, %v3178_v3  ;;  %v3480_v12 = vsel %vm1987_vm2, %v3296_v5, %v3436_v9  ;;  %4316 = vmatprep.subr.bf16.mxu1 %v8171_v45 }
 0x346   : > { %v3500_v13 = vsel %vm1040_vm0, %v3480_v12, %v3460_v6  ;;  %v8018_v12 = vld [vmem:[%s10383_s7 + $0x50] sm:$0xff]  }
 0x347   : > { %3258 = vst.msk [vmem:[#allocation3 + $0x160] sm:$0xff] %vm1987_vm2, %v3210_v11  ;;  %7840 = vmatprep.mubr.msk.bf16.mxu1 %vm2763_vm3, %v3500_v13 }
 0x348   : > { %v3540_v17 = vpop.permute.xlu1 %3539  ;;  %v3516_v42 = vpop.permute.xlu0 %3515 }
 0x349   : > { %v3560_v14 = vsel %vm1987_vm2, %v9061_v4, %v3516_v42  ;;  %v3278_v4 = vld [vmem:[#allocation3 + $0xc7] ss:$2 sm:$0xff] }
 0x34a   : > { %v3580_v15 = vsel %vm1040_vm0, %v3560_v14, %v3540_v17  ;;  %v3297_v25 = vpack.c.bf16 %v3280_v28, %v3278_v4 }
 0x34b   : > { %7841 = vmatmul.mubr.msk.bf16.gmra.mxu1 %vm2763_vm3, %v3580_v15 }
 0x34c   : > { %v3372_v18 = vld [vmem:[#allocation3 + $0x169] ss:$2 sm:$0xff]  ;;  %v3332_v20 = vld [vmem:[#allocation3 + $0x168] ss:$2 sm:$0xff] }
 0x34d   : > { %v3412_v26 = vld [vmem:[#allocation3 + $0x16a] ss:$2 sm:$0xff] }
 0x34e   : > { %v3370_v1 = vld [vmem:[#allocation3 + $0x159] ss:$2 sm:$0xff]  ;;  %v3330_v19 = vld [vmem:[#allocation3 + $0x158] ss:$2 sm:$0xff] }
 0x34f   : > { %v3380_v23 = vpack.c.bf16 %v3372_v18, %v3370_v1  ;;  %v9229_v48 = vpack.c.bf16 %v3332_v20, %v3330_v19  ;;  %v3410_v16 = vld [vmem:[#allocation3 + $0x15a] ss:$2 sm:$0xff] }
 0x350   : > { %v3420_v27 = vpack.c.bf16 %v3412_v26, %v3410_v16  ;;  %v8019_v18 = vld [vmem:[%s10383_s7 + $0x48] sm:$0xff]   ;;  %v8020_v16 = vld [vmem:[%s10383_s7 + $0x40] sm:$0xff]  }
 0x351   : > { %3467 = vrot.lane.b32.xlu1 %v3380_v23, %s10400_s21  ;;  %3443 = vrot.lane.b32.xlu0 %v9229_v48, %s8170_s22 }
 0x355   : > { %3547 = vrot.lane.b32.xlu1 %v3420_v27, %s10400_s21  ;;  %3523 = vrot.lane.b32.xlu0 %v3380_v23, %s8170_s22 }
 0x363   : > { %v3462_v29 = vpop.permute.xlu1 %3461  ;;  %v3438_v52 = vpop.permute.xlu0 %3437 }
 0x364   : > { %v3483_v24 = vsel %vm1987_vm2, %v3297_v25, %v3438_v52  ;;  %v3292_v52 = vld [vmem:[#allocation3 + $0x167] ss:$2 sm:$0xff] }
 0x365   : > { %v3502_v33 = vsel %vm1040_vm0, %v3483_v24, %v3462_v29  ;;  %v3290_v29 = vld [vmem:[#allocation3 + $0x157] ss:$2 sm:$0xff] }
 0x366   : > { %7844 = vmatprep.mubr.msk.bf16.mxu1 %vm2763_vm3, %v3502_v33  ;;  %v3300_v33 = vpack.c.bf16 %v3292_v52, %v3290_v29 }
 0x367   : > { %v3542_v38 = vpop.permute.xlu1 %3541  ;;  %v3518_v59 = vpop.permute.xlu0 %3517 }
 0x368   : > { %v3563_v34 = vsel %vm1987_vm2, %v9087_v56, %v3518_v59 }
 0x369   : > { %v3582_v35 = vsel %vm1040_vm0, %v3563_v34, %v3542_v38 }
 0x36a   : > { %7845 = vmatmul.mubr.msk.bf16.gmra.mxu1 %vm2763_vm3, %v3582_v35 }
 0x383   : > { %v3464_v43 = vpop.permute.xlu1 %3463  ;;  %v3440_v44 = vpop.permute.xlu0 %3439 }
 0x384   : > { %v3486_v56 = vsel %vm1987_vm2, %v3298_v40, %v3440_v44 }
 0x385   : > { %v3504_v46 = vsel %vm1040_vm0, %v3486_v56, %v3464_v43 }
 0x386   : > { %7848 = vmatprep.mubr.msk.bf16.mxu1 %vm2763_vm3, %v3504_v46 }
 0x387   : > { %v3544_v55 = vpop.permute.xlu1 %3543  ;;  %v3520_v47 = vpop.permute.xlu0 %3519 }
 0x388   : > { %v3566_v36 = vsel %vm1987_vm2, %v9113_v63, %v3520_v47  ;;  %v8012_v63 = vld [vmem:[%s10383_s7 + $0x20] sm:$0xff]  }
 0x389   : > { %v3584_v41 = vsel %vm1040_vm0, %v3566_v36, %v3544_v55  ;;  %4317 = vmatpush1.bf16.msra.mxu1 %v8012_v63 }
 0x38a   : > { %7849 = vmatmul.mubr.msk.bf16.gmra.mxu1 %vm2763_vm3, %v3584_v41  ;;  %4318 = vmatprep.subr.bf16.mxu1 %v8171_v45 }
 0x38d   : > { %4319 = vmatpush1.bf16.msra.mxu1 %v8013_v50 }
 0x38e   : > { %4320 = vmatprep.subr.bf16.mxu1 %v8171_v45 }
 0x391   : > { %4321 = vmatpush1.bf16.msra.mxu1 %v8014_v51 }
 0x392   : > { %4322 = vmatprep.subr.bf16.mxu1 %v8171_v45 }
 0x395   : > { %4323 = vmatpush1.bf16.msra.mxu1 %v8015_v53 }
 0x396   : > { %4324 = vmatprep.subr.bf16.mxu1 %v8171_v45 }
 0x399   : > { %4325 = vmatpush1.bf16.msra.mxu1 %v8016_v57 }
 0x39a   : > { %4334 = vmatprep.subr.bf16.mxu1 %v8171_v45 }
 0x39d   : > { %4335 = vmatpush2.bf16.msra.mxu1 %v8017_v62 }
 0x39e   : > { %4336 = vmatprep.subr.bf16.mxu1 %v8171_v45 }
 0x3a1   : > { %4337 = vmatpush2.bf16.msra.mxu1 %v8018_v12 }
 0x3a2   : > { %4338 = vmatprep.subr.bf16.mxu1 %v8171_v45 }
 0x3a3   : > { %v3466_v7 = vpop.permute.xlu1 %3465  ;;  %v3442_v58 = vpop.permute.xlu0 %3441 }
 0x3a4   : > { %v3489_v61 = vsel %vm1987_vm2, %v3299_v21, %v3442_v58 }
 0x3a5   : > { %v3506_v10 = vsel %vm1040_vm0, %v3489_v61, %v3466_v7  ;;  %4339 = vmatpush2.bf16.msra.mxu1 %v8019_v18 }
 0x3a6   : > { %7852 = vmatprep.mubr.msk.bf16.mxu1 %vm2763_vm3, %v3506_v10  ;;  %4340 = vmatprep.subr.bf16.mxu1 %v8171_v45 }
 0x3a7   : > { %v3546_v39 = vpop.permute.xlu1 %3545  ;;  %v3522_v2 = vpop.permute.xlu0 %3521 }
 0x3a8   : > { %v3569_v3 = vsel %vm1987_vm2, %v9139_v8, %v3522_v2  ;;  %v7830_v5 = vpop.f32.mrf.mxu1 }
 0x3a9   : > { %v3719_v6 = vadd.f32 %v7830_v5, %v9293_v0  ;;  %v3586_v9 = vsel %vm1040_vm0, %v3569_v3, %v3546_v39  ;;  %4341 = vmatpush2.bf16.msra.mxu1 %v8020_v16 }
 0x3aa   : > { %v3710_v11 = vpop.f32.mrf.mxu1  ;;  %7853 = vmatmul.mubr.msk.bf16.gmra.mxu1 %vm2763_vm3, %v3586_v9 }
 0x3ab   : > { %v3711_v13 = vadd.f32 %v9293_v0, %v3710_v11  ;;  %v3839_v8 = vmax.f32 %v3719_v6, 0.0 }
 0x3ac   : > { %v7831_v17 = vpop.f32.mrf.mxu1 }
 0x3ad   : > { %v3837_v42 = vmax.f32 %v3711_v13, 0.0  ;;  %v3722_v14 = vadd.f32 %v7831_v17, %v9293_v0 }
 0x3ae   : > { %v3713_v15 = vpop.f32.mrf.mxu1 }
 0x3af   : > { %v3869_v1 = vmax.f32 %v3837_v42, %v3839_v8  ;;  %v3714_v19 = vadd.f32 %v9293_v0, %v3713_v15  ;;  %v3840_v20 = vmax.f32 %v3722_v14, 0.0 }
 0x3b1   : > { %3902 = vst.msk [vmem:[#allocation4 + $0x8] sm:$0xff] %vm1040_vm0, %v3869_v1  ;;  %v3838_v23 = vmax.f32 %v3714_v19, 0.0 }
 0x3b3   : > { %v3870_v26 = vmax.f32 %v3838_v23, %v3840_v20 }
 0x3b5   : > { %3903 = vst.msk [vmem:[#allocation4 + $0x10] sm:$0xff] %vm1040_vm0, %v3870_v26 }
 0x3bc   : > { %v3967_v27 = vld [vmem:[#allocation4 + $0x9] ss:$2 sm:$0xff]  ;;  %v3943_v4 = vld [vmem:[#allocation4 + $0x8] ss:$2 sm:$0xff] }
 0x3bd   : > { %v3982_v28 = vpack.c.bf16 %v3967_v27, %v3967_v27  ;;  %v9317_v25 = vpack.c.bf16 %v3943_v4, %v3943_v4  ;;  %v3991_v24 = vld [vmem:[#allocation4 + $0xa] ss:$2 sm:$0xff] }
 0x3be   : > { %v4006_v38 = vpack.c.bf16 %v3991_v24, %v3991_v24 }
 0x3bf   : > { %4070 = vrot.lane.b32.xlu0 %v3982_v28, %s10400_s21  ;;  %4022 = vrot.lane.b32.xlu1 %v9317_v25, %s10400_s21 }
 0x3c0   : > { %v4127_v30 = vrot.slane %v4006_v38, 4 }
 0x3c2   : > { %v4148_v56 = vsel %vm4142_vm5, %v3982_v28, %v4127_v30 }
 0x3c3   : > { %v3468_v59 = vpop.permute.xlu1 %3467  ;;  %v3444_v34 = vpop.permute.xlu0 %3443 }
 0x3c4   : > { %v3492_v35 = vsel %vm1987_vm2, %v3300_v33, %v3444_v34 }
 0x3c5   : > { %v3508_v37 = vsel %vm1040_vm0, %v3492_v35, %v3468_v59 }
 0x3c6   : > { %7856 = vmatprep.mubr.msk.bf16.mxu1 %vm2763_vm3, %v3508_v37 }
 0x3c7   : > { %v3548_v40 = vpop.permute.xlu1 %3547  ;;  %v3524_v32 = vpop.permute.xlu0 %3523 }
 0x3c8   : > { %v3572_v43 = vsel %vm1987_vm2, %v9229_v48, %v3524_v32 }
 0x3c9   : > { %v3588_v44 = vsel %vm1040_vm0, %v3572_v43, %v3548_v40 }
 0x3ca   : > { %7857 = vmatmul.mubr.msk.bf16.gmra.mxu1 %vm2763_vm3, %v3588_v44 }
 0x3cb   : > { %v7834_v46 = vpop.f32.mrf.mxu1  ;;  %7139 = vmatprep.mubr.msk.bf16.mxu1 %vm1040_vm0, %v4148_v56 }
 0x3cc   : > { %v3735_v55 = vadd.f32 %v7834_v46, %v9293_v0 }
 0x3cd   : > { %v3726_v47 = vpop.f32.mrf.mxu1 }
 0x3ce   : > { %v3727_v36 = vadd.f32 %v9293_v0, %v3726_v47  ;;  %v3843_v54 = vmax.f32 %v3735_v55, 0.0 }
 0x3cf   : > { %v7835_v41 = vpop.f32.mrf.mxu1 }
 0x3d0   : > { %v3841_v49 = vmax.f32 %v3727_v36, 0.0  ;;  %v3738_v63 = vadd.f32 %v7835_v41, %v9293_v0  ;;  %v3919_v41 = vld [vmem:[#allocation4 + $0x7] ss:$2 sm:$0xff] }
 0x3d1   : > { %v3729_v48 = vpop.f32.mrf.mxu1 }
 0x3d2   : > { %v3871_v50 = vmax.f32 %v3841_v49, %v3843_v54  ;;  %v3730_v51 = vadd.f32 %v9293_v0, %v3729_v48  ;;  %v3844_v53 = vmax.f32 %v3738_v63, 0.0 }
 0x3d4   : > { %3904 = vst.msk [vmem:[#allocation4 + $0x28] sm:$0xff] %vm1040_vm0, %v3871_v50  ;;  %v3842_v22 = vmax.f32 %v3730_v51, 0.0 }
 0x3d6   : > { %v3872_v60 = vmax.f32 %v3842_v22, %v3844_v53  ;;  %v3934_v53 = vpack.c.bf16 %v3919_v41, %v3919_v41 }
 0x3d8   : > { %3905 = vst.msk [vmem:[#allocation4 + $0x30] sm:$0xff] %vm1040_vm0, %v3872_v60 }
 0x3df   : > { %v3969_v21 = vld [vmem:[#allocation4 + $0x29] ss:$2 sm:$0xff]  ;;  %v3945_v57 = vld [vmem:[#allocation4 + $0x28] ss:$2 sm:$0xff] }
 0x3e0   : > { %v9337_v7 = vpack.c.bf16 %v3969_v21, %v3969_v21  ;;  %v9339_v58 = vpack.c.bf16 %v3945_v57, %v3945_v57  ;;  %v3993_v32 = vld [vmem:[#allocation4 + $0x2a] ss:$2 sm:$0xff] }
 0x3e1   : > { %v4007_v46 = vpack.c.bf16 %v3993_v32, %v3993_v32 }
 0x3e2   : > { %4072 = vrot.lane.b32.xlu0 %v9337_v7, %s10400_s21  ;;  %4024 = vrot.lane.b32.xlu1 %v9339_v58, %s10400_s21 }
 0x3e3   : > { %v4129_v22 = vrot.slane %v4007_v46, 4 }
 0x3eb   : > { %v7838_v61 = vpop.f32.mrf.mxu1 }
 0x3ec   : > { %v3751_v62 = vadd.f32 %v7838_v61, %v9293_v0 }
 0x3ed   : > { %v3742_v10 = vpop.f32.mrf.mxu1 }
 0x3ee   : > { %v3743_v39 = vadd.f32 %v9293_v0, %v3742_v10  ;;  %v3847_v3 = vmax.f32 %v3751_v62, 0.0 }
 0x3ef   : > { %v7839_v2 = vpop.f32.mrf.mxu1 }
 0x3f0   : > { %v3845_v5 = vmax.f32 %v3743_v39, 0.0  ;;  %v3754_v6 = vadd.f32 %v7839_v2, %v9293_v0  ;;  %v4154_v39 = vsel %vm4142_vm5, %v9337_v7, %v4129_v22 }
 0x3f1   : > { %v3745_v9 = vpop.f32.mrf.mxu1 }
 0x3f2   : > { %v3873_v11 = vmax.f32 %v3845_v5, %v3847_v3  ;;  %v3746_v12 = vadd.f32 %v9293_v0, %v3745_v9  ;;  %v3848_v13 = vmax.f32 %v3754_v6, 0.0 }
 0x3f4   : > { %3906 = vst.msk [vmem:[#allocation4 + $0x48] sm:$0xff] %vm1040_vm0, %v3873_v11  ;;  %v3846_v17 = vmax.f32 %v3746_v12, 0.0 }
 0x3f6   : > { %v3874_v8 = vmax.f32 %v3846_v17, %v3848_v13 }
 0x3f8   : > { %3907 = vst.msk [vmem:[#allocation4 + $0x50] sm:$0xff] %vm1040_vm0, %v3874_v8 }
 0x3ff   : > { %v3971_v42 = vld [vmem:[#allocation4 + $0x49] ss:$2 sm:$0xff]  ;;  %v3947_v14 = vld [vmem:[#allocation4 + $0x48] ss:$2 sm:$0xff] }
 0x400   : > { %v9351_v15 = vpack.c.bf16 %v3971_v42, %v3971_v42  ;;  %v9353_v18 = vpack.c.bf16 %v3947_v14, %v3947_v14  ;;  %v3995_v13 = vld [vmem:[#allocation4 + $0x4a] ss:$2 sm:$0xff] }
 0x402   : > { %4074 = vrot.lane.b32.xlu0 %v9351_v15, %s10400_s21  ;;  %4026 = vrot.lane.b32.xlu1 %v9353_v18, %s10400_s21 }
 0x40b   : > { %v7842_v1 = vpop.f32.mrf.mxu1 }
 0x40c   : > { %v3767_v19 = vadd.f32 %v7842_v1, %v9293_v0 }
 0x40d   : > { %v3758_v20 = vpop.f32.mrf.mxu1 }
 0x40e   : > { %v3759_v23 = vadd.f32 %v9293_v0, %v3758_v20  ;;  %v3851_v26 = vmax.f32 %v3767_v19, 0.0  ;;  %v4008_v20 = vpack.c.bf16 %v3995_v13, %v3995_v13 }
 0x40f   : > { %v7843_v16 = vpop.f32.mrf.mxu1 }
 0x410   : > { %v3849_v27 = vmax.f32 %v3759_v23, 0.0  ;;  %v3770_v4 = vadd.f32 %v7843_v16, %v9293_v0  ;;  %v3921_v23 = vld [vmem:[#allocation4 + $0x27] ss:$2 sm:$0xff] }
 0x411   : > { %v3761_v28 = vpop.f32.mrf.mxu1 }
 0x412   : > { %v3875_v29 = vmax.f32 %v3849_v27, %v3851_v26  ;;  %v3762_v52 = vadd.f32 %v9293_v0, %v3761_v28  ;;  %v3852_v24 = vmax.f32 %v3770_v4, 0.0 }
 0x414   : > { %3908 = vst.msk [vmem:[#allocation4 + $0x68] sm:$0xff] %vm1040_vm0, %v3875_v29  ;;  %v3850_v33 = vmax.f32 %v3762_v52, 0.0  ;;  %v3935_v52 = vpack.c.bf16 %v3921_v23, %v3921_v23 }
 0x416   : > { %v3876_v38 = vmax.f32 %v3850_v33, %v3852_v24  ;;  %v4131_v24 = vrot.slane %v4008_v20, 4 }
 0x418   : > { %3909 = vst.msk [vmem:[#allocation4 + $0x70] sm:$0xff] %vm1040_vm0, %v3876_v38 }
 0x41f   : > { %v3973_v59 = vld [vmem:[#allocation4 + $0x69] ss:$2 sm:$0xff]  ;;  %v3949_v34 = vld [vmem:[#allocation4 + $0x68] ss:$2 sm:$0xff] }
 0x420   : > { %v9365_v35 = vpack.c.bf16 %v3973_v59, %v3973_v59  ;;  %v9367_v37 = vpack.c.bf16 %v3949_v34, %v3949_v34  ;;  %v4160_v34 = vsel %vm4142_vm5, %v9351_v15, %v4131_v24 }
 0x422   : > { %4076 = vrot.lane.b32.xlu0 %v9365_v35, %s10400_s21  ;;  %4028 = vrot.lane.b32.xlu1 %v9367_v37, %s10400_s21 }
 0x42a   : > { %v7846_v30 = vpop.f32.mrf.mxu1 }
 0x42b   : > { %v3783_v40 = vadd.f32 %v7846_v30, %v9293_v0 }
 0x42c   : > { %v3774_v43 = vpop.f32.mrf.mxu1 }
 0x42d   : > { %v3775_v44 = vadd.f32 %v9293_v0, %v3774_v43  ;;  %v3855_v55 = vmax.f32 %v3783_v40, 0.0 }
 0x42e   : > { %v7847_v56 = vpop.f32.mrf.mxu1 }
 0x42f   : > { %v3853_v47 = vmax.f32 %v3775_v44, 0.0  ;;  %v3786_v36 = vadd.f32 %v7847_v56, %v9293_v0 }
 0x430   : > { %v3777_v54 = vpop.f32.mrf.mxu1 }
 0x431   : > { %v3877_v49 = vmax.f32 %v3853_v47, %v3855_v55  ;;  %v3778_v63 = vadd.f32 %v9293_v0, %v3777_v54  ;;  %v4071_v48 = vpop.permute.xlu0 %4070  ;;  %v4023_v50 = vpop.permute.xlu1 %4022  ;;  %v3856_v60 = vmax.f32 %v3786_v36, 0.0  ;;  %v3997_v55 = vld [vmem:[#allocation4 + $0x6a] ss:$2 sm:$0xff] }
 0x432   : > { %v4088_v51 = vsel %vm1040_vm0, %v9317_v25, %v4071_v48  ;;  %v4040_v61 = vsel %vm1040_vm0, %v3934_v53, %v4023_v50  ;;  %v4009_v48 = vpack.c.bf16 %v3997_v55, %v3997_v55  ;;  %v3923_v50 = vld [vmem:[#allocation4 + $0x47] ss:$2 sm:$0xff] }
 0x433   : > { %3910 = vst.msk [vmem:[#allocation4 + $0x88] sm:$0xff] %vm1040_vm0, %v3877_v49  ;;  %v3854_v21 = vmax.f32 %v3778_v63, 0.0  ;;  %v4126_v57 = vrot.slane %v4088_v51, 4 }
 0x435   : > { %v3878_v62 = vmax.f32 %v3854_v21, %v3856_v60  ;;  %v4144_v10 = vsel %vm4142_vm5, %v4040_v61, %v4126_v57  ;;  %v3936_v61 = vpack.c.bf16 %v3923_v50, %v3923_v50 }
 0x436   : > { %4343 = vmatmul.mubr.bf16.vlgmr.msra.gmra.mxu1 %v4144_v10 }
 0x437   : > { %3911 = vst.msk [vmem:[#allocation4 + $0x90] sm:$0xff] %vm1040_vm0, %v3878_v62  ;;  %7140 = vmatprep.mubr.msk.bf16.mxu1 %vm1040_vm0, %v4154_v39  ;;  %v4133_v62 = vrot.slane %v4009_v48, 4 }
 0x43e   : > { %v3975_v25 = vld [vmem:[#allocation4 + $0x89] ss:$2 sm:$0xff]  ;;  %v3951_v2 = vld [vmem:[#allocation4 + $0x88] ss:$2 sm:$0xff] }
 0x43f   : > { %v9386_v3 = vpack.c.bf16 %v3975_v25, %v3975_v25  ;;  %v9388_v5 = vpack.c.bf16 %v3951_v2, %v3951_v2  ;;  %v4166_v2 = vsel %vm4142_vm5, %v9365_v35, %v4133_v62 }
 0x441   : > { %4078 = vrot.lane.b32.xlu0 %v9386_v3, %s10400_s21  ;;  %4030 = vrot.lane.b32.xlu1 %v9388_v5, %s10400_s21 }
 0x44a   : > { %v7850_v6 = vpop.f32.mrf.mxu1 }
 0x44b   : > { %v3799_v9 = vadd.f32 %v7850_v6, %v9293_v0 }
 0x44c   : > { %v3790_v7 = vpop.f32.mrf.mxu1 }
 0x44d   : > { %v3791_v11 = vadd.f32 %v9293_v0, %v3790_v7  ;;  %v3859_v17 = vmax.f32 %v3799_v9, 0.0 }
 0x44e   : > { %v7851_v12 = vpop.f32.mrf.mxu1 }
 0x44f   : > { %v3857_v8 = vmax.f32 %v3791_v11, 0.0  ;;  %v3802_v42 = vadd.f32 %v7851_v12, %v9293_v0 }
 0x450   : > { %v3793_v14 = vpop.f32.mrf.mxu1 }
 0x451   : > { %v3879_v1 = vmax.f32 %v3857_v8, %v3859_v17  ;;  %v3794_v19 = vadd.f32 %v9293_v0, %v3793_v14  ;;  %v3860_v16 = vmax.f32 %v3802_v42, 0.0  ;;  %v3999_v8 = vld [vmem:[#allocation4 + $0x8a] ss:$2 sm:$0xff] }
 0x453   : > { %3912 = vst.msk [vmem:[#allocation4 + $0xa8] sm:$0xff] %vm1040_vm0, %v3879_v1  ;;  %v3858_v26 = vmax.f32 %v3794_v19, 0.0 }
 0x454   : > { %v4073_v27 = vpop.permute.xlu0 %4072  ;;  %v4025_v4 = vpop.permute.xlu1 %4024 }
 0x455   : > { %v3880_v28 = vmax.f32 %v3858_v26, %v3860_v16  ;;  %v4091_v29 = vsel %vm1040_vm0, %v9339_v58, %v4073_v27  ;;  %v4043_v38 = vsel %vm1040_vm0, %v3935_v52, %v4025_v4  ;;  %v4010_v16 = vpack.c.bf16 %v3999_v8, %v3999_v8  ;;  %v3925_v26 = vld [vmem:[#allocation4 + $0x67] ss:$2 sm:$0xff]  ;;  %v9482_v8 = vld [vmem:[%s10384_s8] ss:$0 sm:$0xff] }
 0x456   : > { %v4128_v33 = vrot.slane %v4091_v29, 4 }
 0x457   : > { %3913 = vst.msk [vmem:[#allocation4 + $0xb0] sm:$0xff] %vm1040_vm0, %v3880_v28 }
 0x458   : > { %v4150_v59 = vsel %vm4142_vm5, %v4043_v38, %v4128_v33  ;;  %v3937_v33 = vpack.c.bf16 %v3925_v26, %v3925_v26  ;;  %v4135_v38 = vrot.slane %v4010_v16, 4  ;;  %v8023_v16 = vld [vmem:[%s10385_s9 + $0x28] sm:$0xff]  }
 0x459   : > { %4351 = vmatmul.mubr.bf16.gmra.mxu1 %v4150_v59 }
 0x45a   : > { %7141 = vmatprep.mubr.msk.bf16.mxu1 %vm1040_vm0, %v4160_v34 }
 0x45e   : > { %v3977_v30 = vld [vmem:[#allocation4 + $0xa9] ss:$2 sm:$0xff]  ;;  %v3953_v40 = vld [vmem:[#allocation4 + $0xa8] ss:$2 sm:$0xff] }
 0x45f   : > { %v9407_v32 = vpack.c.bf16 %v3977_v30, %v3977_v30  ;;  %v9409_v58 = vpack.c.bf16 %v3953_v40, %v3953_v40  ;;  %v4172_v30 = vsel %vm4142_vm5, %v9386_v3, %v4135_v38  ;;  %v8026_v38 = vld [vmem:[%s10385_s9 + $0x10] sm:$0xff]  }
 0x461   : > { %4080 = vrot.lane.b32.xlu0 %v9407_v32, %s10400_s21  ;;  %4032 = vrot.lane.b32.xlu1 %v9409_v58, %s10400_s21 }
 0x46a   : > { %v7854_v43 = vpop.f32.mrf.mxu1 }
 0x46b   : > { %v3815_v44 = vadd.f32 %v7854_v43, %v9293_v0 }
 0x46c   : > { %v3806_v56 = vpop.f32.mrf.mxu1 }
 0x46d   : > { %v3807_v15 = vadd.f32 %v9293_v0, %v3806_v56  ;;  %v3863_v47 = vmax.f32 %v3815_v44, 0.0 }
 0x46e   : > { %v7855_v46 = vpop.f32.mrf.mxu1 }
 0x46f   : > { %v3861_v36 = vmax.f32 %v3807_v15, 0.0  ;;  %v3818_v41 = vadd.f32 %v7855_v46, %v9293_v0  ;;  %v3927_v46 = vld [vmem:[#allocation4 + $0x87] ss:$2 sm:$0xff] }
 0x470   : > { %v3809_v54 = vpop.f32.mrf.mxu1 }
 0x471   : > { %v3881_v49 = vmax.f32 %v3861_v36, %v3863_v47  ;;  %v3810_v63 = vadd.f32 %v9293_v0, %v3809_v54  ;;  %v3864_v51 = vmax.f32 %v3818_v41, 0.0  ;;  %v3938_v36 = vpack.c.bf16 %v3927_v46, %v3927_v46 }
 0x473   : > { %3914 = vst.msk [vmem:[#allocation4 + $0xc8] sm:$0xff] %vm1040_vm0, %v3881_v49  ;;  %v3862_v53 = vmax.f32 %v3810_v63, 0.0 }
 0x474   : > { %v4075_v22 = vpop.permute.xlu0 %4074  ;;  %v4027_v60 = vpop.permute.xlu1 %4026 }
 0x475   : > { %v3882_v21 = vmax.f32 %v3862_v53, %v3864_v51  ;;  %v4094_v57 = vsel %vm1040_vm0, %v9353_v18, %v4075_v22  ;;  %v4046_v39 = vsel %vm1040_vm0, %v3936_v61, %v4027_v60  ;;  %v8021_v51 = vld [vmem:[%s10385_s9 + $0x38] sm:$0xff]  }
 0x476   : > { %v4130_v10 = vrot.slane %v4094_v57, 4  ;;  %4880 = vmatpush1.bf16.msra.mxu0 %v8021_v51 }
 0x477   : > { %3915 = vst.msk [vmem:[#allocation4 + $0xd0] sm:$0xff] %vm1040_vm0, %v3882_v21  ;;  %4881 = vmatprep.subr.bf16.mxu0 %v8171_v45 }
 0x478   : > { %v4156_v25 = vsel %vm4142_vm5, %v4046_v39, %v4130_v10 }
 0x479   : > { %4359 = vmatmul.mubr.bf16.gmra.mxu1 %v4156_v25  ;;  %v8022_v25 = vld [vmem:[%s10385_s9 + $0x30] sm:$0xff]  }
 0x47a   : > { %7142 = vmatprep.mubr.msk.bf16.mxu1 %vm1040_vm0, %v4166_v2  ;;  %4882 = vmatpush1.bf16.msra.mxu0 %v8022_v25 }
 0x47b   : > { %4883 = vmatprep.subr.bf16.mxu0 %v8171_v45 }
 0x47e   : > { %v3979_v6 = vld [vmem:[#allocation4 + $0xc9] ss:$2 sm:$0xff]  ;;  %v3955_v9 = vld [vmem:[#allocation4 + $0xc8] ss:$2 sm:$0xff]  ;;  %4884 = vmatpush1.bf16.msra.mxu0 %v8023_v16 }
 0x47f   : > { %v9428_v7 = vpack.c.bf16 %v3979_v6, %v3979_v6  ;;  %v9430_v18 = vpack.c.bf16 %v3955_v9, %v3955_v9  ;;  %v4003_v50 = vld [vmem:[#allocation4 + $0xca] ss:$2 sm:$0xff]  ;;  %v3931_v6 = vld [vmem:[#allocation4 + $0xc7] ss:$2 sm:$0xff]  ;;  %4885 = vmatprep.subr.bf16.mxu0 %v8171_v45 }
 0x480   : > { %v4012_v53 = vpack.c.bf16 %v4003_v50, %v4003_v50 }
 0x481   : > { %4082 = vrot.lane.b32.xlu0 %v9428_v7, %s10400_s21  ;;  %4034 = vrot.lane.b32.xlu1 %v9430_v18, %s10400_s21 }
 0x482   : > { %v4139_v61 = vrot.slane %v4012_v53, 4  ;;  %v8031_v53 = vld [vmem:[%s10385_s9 + $0x48] sm:$0xff]  }
 0x484   : > { %v4184_v39 = vsel %vm4142_vm5, %v9428_v7, %v4139_v61 }
 0x48a   : > { %v7858_v11 = vpop.f32.mrf.mxu1 }
 0x48b   : > { %v3831_v12 = vadd.f32 %v7858_v11, %v9293_v0 }
 0x48c   : > { %v3822_v13 = vpop.f32.mrf.mxu1 }
 0x48d   : > { %v3823_v35 = vadd.f32 %v9293_v0, %v3822_v13  ;;  %v3867_v42 = vmax.f32 %v3831_v12, 0.0  ;;  %v3940_v13 = vpack.c.bf16 %v3931_v6, %v3931_v6 }
 0x48e   : > { %v7859_v17 = vpop.f32.mrf.mxu1 }
 0x48f   : > { %v3865_v14 = vmax.f32 %v3823_v35, 0.0  ;;  %v3834_v1 = vadd.f32 %v7859_v17, %v9293_v0 }
 0x490   : > { %v3825_v19 = vpop.f32.mrf.mxu1 }
 0x491   : > { %v3883_v20 = vmax.f32 %v3865_v14, %v3867_v42  ;;  %v3826_v23 = vadd.f32 %v9293_v0, %v3825_v19  ;;  %v3868_v27 = vmax.f32 %v3834_v1, 0.0 }
 0x493   : > { %3916 = vst.msk [vmem:[#allocation4 + $0xe8] sm:$0xff] %vm1040_vm0, %v3883_v20  ;;  %v3866_v4 = vmax.f32 %v3826_v23, 0.0 }
 0x494   : > { %v4077_v28 = vpop.permute.xlu0 %4076  ;;  %v4029_v29 = vpop.permute.xlu1 %4028 }
 0x495   : > { %v3884_v52 = vmax.f32 %v3866_v4, %v3868_v27  ;;  %v4097_v24 = vsel %vm1040_vm0, %v9367_v37, %v4077_v28  ;;  %v4049_v34 = vsel %vm1040_vm0, %v3937_v33, %v4029_v29  ;;  %v4001_v37 = vld [vmem:[#allocation4 + $0xaa] ss:$2 sm:$0xff]  ;;  %v8024_v29 = vld [vmem:[%s10385_s9 + $0x20] sm:$0xff]  }
 0x496   : > { %v4132_v59 = vrot.slane %v4097_v24, 4  ;;  %v4011_v15 = vpack.c.bf16 %v4001_v37, %v4001_v37  ;;  %4886 = vmatpush1.bf16.msra.mxu0 %v8024_v29 }
 0x497   : > { %3917 = vst.msk [vmem:[#allocation4 + $0xf0] sm:$0xff] %vm1040_vm0, %v3884_v52  ;;  %v8025_v52 = vld [vmem:[%s10385_s9 + $0x18] sm:$0xff]   ;;  %4887 = vmatprep.subr.bf16.mxu0 %v8171_v45 }
 0x498   : > { %v4162_v0 = vsel %vm4142_vm5, %v4049_v34, %v4132_v59  ;;  %v4137_v41 = vrot.slane %v4011_v15, 4 }
 0x499   : > { %4367 = vmatmul.mubr.bf16.gmra.mxu1 %v4162_v0  ;;  %v8027_v0 = vld [vmem:[%s10385_s9 + $0x8] sm:$0xff]  }
 0x49a   : > { %7143 = vmatprep.mubr.msk.bf16.mxu1 %vm1040_vm0, %v4172_v30  ;;  %v4178_v48 = vsel %vm4142_vm5, %v9407_v32, %v4137_v41  ;;  %4888 = vmatpush1.bf16.msra.mxu0 %v8025_v52 }
 0x49b   : > { %4889 = vmatprep.subr.bf16.mxu0 %v8171_v45 }
 0x49e   : > { %v3981_v40 = vld [vmem:[#allocation4 + $0xe9] ss:$2 sm:$0xff]  ;;  %v3957_v43 = vld [vmem:[#allocation4 + $0xe8] ss:$2 sm:$0xff]  ;;  %4890 = vmatpush1.bf16.msra.mxu0 %v8026_v38 }
 0x49f   : > { %v3989_v44 = vpack.c.bf16 %v3981_v40, %v3981_v40  ;;  %v9449_v56 = vpack.c.bf16 %v3957_v43, %v3957_v43  ;;  %4891 = vmatprep.subr.bf16.mxu0 %v8171_v45  ;;  %v3933_v30 = vld [vmem:[#allocation4 + $0xe7] ss:$2 sm:$0xff] }
 0x4a0   : > { %v8028_v40 = vld [vmem:[%s10385_s9] sm:$0xff]   ;;  %v3941_v15 = vpack.c.bf16 %v3933_v30, %v3933_v30 }
 0x4a1   : > { %4084 = vrot.lane.b32.xlu0 %v3989_v44, %s10400_s21  ;;  %4036 = vrot.lane.b32.xlu1 %v9449_v56, %s10400_s21 }
 0x4a2   : > { %4892 = vmatpush1.bf16.msra.mxu0 %v8027_v0 }
 0x4a3   : > { %4893 = vmatprep.subr.bf16.mxu0 %v8171_v45 }
 0x4a6   : > { %4894 = vmatpush1.bf16.msra.mxu0 %v8028_v40 }
 0x4a7   : > { %4903 = vmatprep.subr.bf16.mxu0 %v8171_v45 }
 0x4b3   : > { %v4079_v55 = vpop.permute.xlu0 %4078  ;;  %v4031_v47 = vpop.permute.xlu1 %4030 }
 0x4b4   : > { %v4100_v3 = vsel %vm1040_vm0, %v9388_v5, %v4079_v55  ;;  %v4052_v49 = vsel %vm1040_vm0, %v3938_v36, %v4031_v47  ;;  %v3929_v5 = vld [vmem:[#allocation4 + $0xa7] ss:$2 sm:$0xff]  ;;  %v8029_v36 = vld [vmem:[%s10385_s9 + $0x58] sm:$0xff]  }
 0x4b5   : > { %v4134_v54 = vrot.slane %v4100_v3, 4  ;;  %v3939_v57 = vpack.c.bf16 %v3929_v5, %v3929_v5  ;;  %4904 = vmatpush2.bf16.msra.mxu0 %v8029_v36 }
 0x4b6   : > { %4905 = vmatprep.subr.bf16.mxu0 %v8171_v45 }
 0x4b7   : > { %v4168_v63 = vsel %vm4142_vm5, %v4052_v49, %v4134_v54  ;;  %v8030_v49 = vld [vmem:[%s10385_s9 + $0x50] sm:$0xff]  }
 0x4b8   : > { %4375 = vmatmul.mubr.bf16.gmra.mxu1 %v4168_v63 }
 0x4b9   : > { %7144 = vmatprep.mubr.msk.bf16.mxu1 %vm1040_vm0, %v4178_v48  ;;  %4906 = vmatpush2.bf16.msra.mxu0 %v8030_v49 }
 0x4ba   : > { %4907 = vmatprep.subr.bf16.mxu0 %v8171_v45 }
 0x4bd   : > { %4908 = vmatpush2.bf16.msra.mxu0 %v8031_v53 }
 0x4be   : > { %4909 = vmatprep.subr.bf16.mxu0 %v8171_v45 }
 0x4d3   : > { %v4081_v22 = vpop.permute.xlu0 %4080  ;;  %v4033_v60 = vpop.permute.xlu1 %4032 }
 0x4d4   : > { %v4103_v21 = vsel %vm1040_vm0, %v9409_v58, %v4081_v22  ;;  %v4055_v62 = vsel %vm1040_vm0, %v3939_v57, %v4033_v60  ;;  %v4005_v58 = vld [vmem:[#allocation4 + $0xea] ss:$2 sm:$0xff]  ;;  %v8032_v22 = vld [vmem:[%s10385_s9 + $0x40] sm:$0xff]  }
 0x4d5   : > { %v4136_v32 = vrot.slane %v4103_v21, 4  ;;  %v4013_v2 = vpack.c.bf16 %v4005_v58, %v4005_v58  ;;  %4910 = vmatpush2.bf16.msra.mxu0 %v8032_v22 }
 0x4d7   : > { %v4174_v10 = vsel %vm4142_vm5, %v4055_v62, %v4136_v32  ;;  %v4141_v35 = vrot.slane %v4013_v2, 4 }
 0x4d8   : > { %4383 = vmatmul.mubr.bf16.gmra.mxu1 %v4174_v10 }
 0x4d9   : > { %7145 = vmatprep.mubr.msk.bf16.mxu1 %vm1040_vm0, %v4184_v39  ;;  %v4190_v19 = vsel %vm4142_vm5, %v3989_v44, %v4141_v35 }
 0x4f3   : > { %v4083_v9 = vpop.permute.xlu0 %4082  ;;  %v4035_v11 = vpop.permute.xlu1 %4034 }
 0x4f4   : > { %v4106_v12 = vsel %vm1040_vm0, %v9430_v18, %v4083_v9  ;;  %v4058_v17 = vsel %vm1040_vm0, %v3940_v13, %v4035_v11 }
 0x4f5   : > { %v4138_v7 = vrot.slane %v4106_v12, 4 }
 0x4f6   : > { %v4344_v42 = vpop.f32.mrf.mxu1 }
 0x4f7   : > { %v4180_v14 = vsel %vm4142_vm5, %v4058_v17, %v4138_v7  ;;  %v4345_v20 = vadd.f32 %v9482_v8, %v4344_v42 }
 0x4f8   : > { %v4346_v1 = vpop.f32.mrf.mxu1  ;;  %4391 = vmatmul.mubr.bf16.gmra.mxu1 %v4180_v14 }
 0x4f9   : > { %7146 = vmatprep.mubr.msk.bf16.mxu1 %vm1040_vm0, %v4190_v19  ;;  %v4407_v27 = vmax.f32 %v4345_v20, 0.0 }
 0x4fa   : > { %v4347_v18 = vpop.f32.mrf.mxu1 }
 0x4fb   : > { %v4348_v23 = vadd.f32 %v9482_v8, %v4347_v18 }
 0x4fc   : > { %v4349_v26 = vpop.f32.mrf.mxu1 }
 0x4fd   : > { %v4408_v4 = vmax.f32 %v4348_v23, 0.0 }
 0x4ff   : > { %v4423_v28 = vmax.f32 %v4407_v27, %v4408_v4 }
 0x501   : > { %4447 = vst.msk [vmem:[#allocation5 + $0x8] sm:$0xff] %vm1040_vm0, %v4423_v28 }
 0x508   : > { %v4504_v24 = vld [vmem:[#allocation5 + $0x9] ss:$2 sm:$0xf]  ;;  %v4480_v59 = vld [vmem:[#allocation5 + $0x8] ss:$2 sm:$0xf] }
 0x509   : > { %v4519_v33 = vpack.c.bf16 %v4504_v24, %v4504_v24  ;;  %v9506_v34 = vpack.c.bf16 %v4480_v59, %v4480_v59  ;;  %v4528_v60 = vld [vmem:[#allocation5 + $0xa] ss:$2 sm:$0xf] }
 0x50a   : > { %v4543_v21 = vpack.c.bf16 %v4528_v60, %v4528_v60 }
 0x50b   : > { %4607 = vrot.lane.b32.xlu0 %v4519_v33, %s10400_s21 }
 0x50c   : > { %v4664_v39 = vrot.slane %v4543_v21, 6 }
 0x50e   : > { %v4684_v45 = vsel %vm4679_vm6, %v4519_v33, %v4664_v39 }
 0x50f   : > { %4559 = vrot.lane.b32.xlu0 %v9506_v34, %s10400_s21 }
 0x513   : > { %v4085_v43 = vpop.permute.xlu0 %4084  ;;  %v4037_v44 = vpop.permute.xlu1 %4036 }
 0x514   : > { %v4109_v37 = vsel %vm1040_vm0, %v9449_v56, %v4085_v43  ;;  %v4061_v55 = vsel %vm1040_vm0, %v3941_v15, %v4037_v44 }
 0x515   : > { %v4140_v46 = vrot.slane %v4109_v37, 4 }
 0x517   : > { %v4186_v47 = vsel %vm4142_vm5, %v4061_v55, %v4140_v46 }
 0x518   : > { %4399 = vmatmul.mubr.bf16.gmra.mxu1 %v4186_v47 }
 0x519   : > { %v4352_v3 = vpop.f32.mrf.mxu1 }
 0x51a   : > { %v4353_v54 = vadd.f32 %v9482_v8, %v4352_v3 }
 0x51b   : > { %v4354_v41 = vpop.f32.mrf.mxu1 }
 0x51c   : > { %v4409_v50 = vmax.f32 %v4353_v54, 0.0 }
 0x51d   : > { %v4355_v56 = vpop.f32.mrf.mxu1 }
 0x51e   : > { %v4356_v63 = vadd.f32 %v9482_v8, %v4355_v56 }
 0x51f   : > { %v4357_v48 = vpop.f32.mrf.mxu1 }
 0x520   : > { %v4410_v51 = vmax.f32 %v4356_v63, 0.0 }
 0x522   : > { %v4424_v5 = vmax.f32 %v4409_v50, %v4410_v51 }
 0x524   : > { %4448 = vst.msk [vmem:[#allocation5 + $0x20] sm:$0xff] %vm1040_vm0, %v4424_v5  ;;  %v4456_v5 = vld [vmem:[#allocation5 + $0x7] ss:$2 sm:$0xf] }
 0x52b   : > { %v4506_v57 = vld [vmem:[#allocation5 + $0x21] ss:$2 sm:$0xf]  ;;  %v4530_v32 = vld [vmem:[#allocation5 + $0x22] ss:$2 sm:$0xf] }
 0x52c   : > { %v4520_v61 = vpack.c.bf16 %v4506_v57, %v4506_v57  ;;  %v4482_v62 = vld [vmem:[#allocation5 + $0x20] ss:$2 sm:$0xf]  ;;  %v4544_v10 = vpack.c.bf16 %v4530_v32, %v4530_v32 }
 0x52d   : > { %v9542_v58 = vpack.c.bf16 %v4482_v62, %v4482_v62 }
 0x52e   : > { %4609 = vrot.lane.b32.xlu1 %v4520_v61, %s10400_s21  ;;  %v4666_v25 = vrot.slane %v4544_v10, 6  ;;  %v4471_v10 = vpack.c.bf16 %v4456_v5, %v4456_v5 }
 0x530   : > { %v4689_v2 = vsel %vm4679_vm6, %v4520_v61, %v4666_v25  ;;  %v4458_v25 = vld [vmem:[#allocation5 + $0x1f] ss:$2 sm:$0xf] }
 0x531   : > { %v7149_v6 = vcombine.low %v4684_v45, %v4689_v2 }
 0x532   : > { %4561 = vrot.lane.b32.xlu1 %v9542_v58, %s10400_s21 }
 0x533   : > { %7168 = vmatprep.mubr.msk.bf16.mxu0 %vm1040_vm0, %v7149_v6 }
 0x539   : > { %v4360_v9 = vpop.f32.mrf.mxu1 }
 0x53a   : > { %v4361_v12 = vadd.f32 %v9482_v8, %v4360_v9 }
 0x53b   : > { %v4362_v11 = vpop.f32.mrf.mxu1 }
 0x53c   : > { %v4411_v17 = vmax.f32 %v4361_v12, 0.0  ;;  %v4472_v12 = vpack.c.bf16 %v4458_v25, %v4458_v25 }
 0x53d   : > { %v4363_v13 = vpop.f32.mrf.mxu1 }
 0x53e   : > { %v4364_v35 = vadd.f32 %v9482_v8, %v4363_v13 }
 0x53f   : > { %v4365_v7 = vpop.f32.mrf.mxu1 }
 0x540   : > { %v4412_v42 = vmax.f32 %v4364_v35, 0.0 }
 0x542   : > { %v4425_v14 = vmax.f32 %v4411_v17, %v4412_v42 }
 0x544   : > { %4449 = vst.msk [vmem:[#allocation5 + $0x38] sm:$0xff] %vm1040_vm0, %v4425_v14 }
 0x54b   : > { %v4508_v1 = vld [vmem:[#allocation5 + $0x39] ss:$2 sm:$0xf]  ;;  %v4484_v20 = vld [vmem:[#allocation5 + $0x38] ss:$2 sm:$0xf] }
 0x54c   : > { %v9552_v19 = vpack.c.bf16 %v4508_v1, %v4508_v1  ;;  %v9556_v18 = vpack.c.bf16 %v4484_v20, %v4484_v20  ;;  %v4532_v53 = vld [vmem:[#allocation5 + $0x3a] ss:$2 sm:$0xf] }
 0x54d   : > { %v4545_v32 = vpack.c.bf16 %v4532_v53, %v4532_v53 }
 0x54e   : > { %4611 = vrot.lane.b32.xlu0 %v9552_v19, %s10400_s21 }
 0x54f   : > { %v4668_v13 = vrot.slane %v4545_v32, 6 }
 0x552   : > { %4563 = vrot.lane.b32.xlu0 %v9556_v18, %s10400_s21 }
 0x559   : > { %v4368_v23 = vpop.f32.mrf.mxu1 }
 0x55a   : > { %v4369_v26 = vadd.f32 %v9482_v8, %v4368_v23 }
 0x55b   : > { %v4370_v16 = vpop.f32.mrf.mxu1 }
 0x55c   : > { %v4413_v29 = vmax.f32 %v4369_v26, 0.0 }
 0x55d   : > { %v4371_v27 = vpop.f32.mrf.mxu1 }
 0x55e   : > { %v4372_v4 = vadd.f32 %v9482_v8, %v4371_v27 }
 0x55f   : > { %v4373_v28 = vpop.f32.mrf.mxu1 }
 0x560   : > { %v4414_v52 = vmax.f32 %v4372_v4, 0.0 }
 0x562   : > { %v4426_v24 = vmax.f32 %v4413_v29, %v4414_v52 }
 0x564   : > { %4450 = vst.msk [vmem:[#allocation5 + $0x50] sm:$0xff] %vm1040_vm0, %v4426_v24 }
 0x56b   : > { %v4510_v33 = vld [vmem:[#allocation5 + $0x51] ss:$2 sm:$0xf]  ;;  %v4486_v59 = vld [vmem:[#allocation5 + $0x50] ss:$2 sm:$0xf] }
 0x56c   : > { %v4522_v38 = vpack.c.bf16 %v4510_v33, %v4510_v33  ;;  %v9564_v0 = vpack.c.bf16 %v4486_v59, %v4486_v59  ;;  %v4534_v48 = vld [vmem:[#allocation5 + $0x52] ss:$2 sm:$0xf] }
 0x56d   : > { %v4546_v60 = vpack.c.bf16 %v4534_v48, %v4534_v48 }
 0x56e   : > { %4613 = vrot.lane.b32.xlu1 %v4522_v38, %s10400_s21 }
 0x56f   : > { %v4670_v9 = vrot.slane %v4546_v60, 6 }
 0x571   : > { %v4699_v14 = vsel %vm4679_vm6, %v4522_v38, %v4670_v9 }
 0x572   : > { %4565 = vrot.lane.b32.xlu1 %v9564_v0, %s10400_s21 }
 0x578   : > { %v4376_v30 = vpop.f32.mrf.mxu1 }
 0x579   : > { %v4377_v43 = vadd.f32 %v9482_v8, %v4376_v30 }
 0x57a   : > { %v4378_v40 = vpop.f32.mrf.mxu1 }
 0x57b   : > { %v4415_v46 = vmax.f32 %v4377_v43, 0.0 }
 0x57c   : > { %v4379_v44 = vpop.f32.mrf.mxu1 }
 0x57d   : > { %v4380_v37 = vadd.f32 %v9482_v8, %v4379_v44  ;;  %v4608_v49 = vpop.permute.xlu0 %4607 }
 0x57e   : > { %v4381_v15 = vpop.f32.mrf.mxu1  ;;  %v4625_v45 = vsel %vm1040_vm0, %v9506_v34, %v4608_v49  ;;  %v4460_v49 = vld [vmem:[#allocation5 + $0x37] ss:$2 sm:$0xf] }
 0x57f   : > { %v4416_v55 = vmax.f32 %v4380_v37, 0.0  ;;  %v4663_v35 = vrot.slane %v4625_v45, 6 }
 0x581   : > { %v4427_v47 = vmax.f32 %v4415_v46, %v4416_v55  ;;  %v4560_v62 = vpop.permute.xlu0 %4559 }
 0x582   : > { %v4577_v11 = vsel %vm1040_vm0, %v4471_v10, %v4560_v62 }
 0x583   : > { %4451 = vst.msk [vmem:[#allocation5 + $0x68] sm:$0xff] %vm1040_vm0, %v4427_v47  ;;  %v4681_v34 = vsel %vm4679_vm6, %v4577_v11, %v4663_v35 }
 0x58a   : > { %v4512_v3 = vld [vmem:[#allocation5 + $0x69] ss:$2 sm:$0xf]  ;;  %v4488_v41 = vld [vmem:[#allocation5 + $0x68] ss:$2 sm:$0xf] }
 0x58b   : > { %v9571_v36 = vpack.c.bf16 %v4512_v3, %v4512_v3  ;;  %v9575_v54 = vpack.c.bf16 %v4488_v41, %v4488_v41 }
 0x58d   : > { %4615 = vrot.lane.b32.xlu0 %v9571_v36, %s10400_s21 }
 0x591   : > { %4567 = vrot.lane.b32.xlu0 %v9575_v54, %s10400_s21 }
 0x598   : > { %v4384_v56 = vpop.f32.mrf.mxu1 }
 0x599   : > { %v4385_v50 = vadd.f32 %v9482_v8, %v4384_v56  ;;  %v4536_v56 = vld [vmem:[#allocation5 + $0x6a] ss:$2 sm:$0xf] }
 0x59a   : > { %v4386_v63 = vpop.f32.mrf.mxu1  ;;  %v4547_v5 = vpack.c.bf16 %v4536_v56, %v4536_v56 }
 0x59b   : > { %v4417_v57 = vmax.f32 %v4385_v50, 0.0 }
 0x59c   : > { %v4387_v51 = vpop.f32.mrf.mxu1  ;;  %v4672_v25 = vrot.slane %v4547_v5, 6 }
 0x59d   : > { %v4388_v22 = vadd.f32 %v9482_v8, %v4387_v51 }
 0x59e   : > { %v4389_v21 = vpop.f32.mrf.mxu1 }
 0x59f   : > { %v4418_v61 = vmax.f32 %v4388_v22, 0.0  ;;  %v4473_v22 = vpack.c.bf16 %v4460_v49, %v4460_v49 }
 0x5a0   : > { %v4610_v39 = vpop.permute.xlu1 %4609 }
 0x5a1   : > { %v4428_v2 = vmax.f32 %v4417_v57, %v4418_v61  ;;  %v4628_v6 = vsel %vm1040_vm0, %v9542_v58, %v4610_v39  ;;  %v4694_v58 = vsel %vm4679_vm6, %v9552_v19, %v4668_v13  ;;  %v4462_v57 = vld [vmem:[#allocation5 + $0x4f] ss:$2 sm:$0xf] }
 0x5a2   : > { %v4665_v7 = vrot.slane %v4628_v6, 6  ;;  %v7151_v23 = vcombine.low %v4694_v58, %v4699_v14 }
 0x5a3   : > { %4452 = vst.msk [vmem:[#allocation5 + $0x80] sm:$0xff] %vm1040_vm0, %v4428_v2 }
 0x5a4   : > { %v4562_v17 = vpop.permute.xlu1 %4561 }
 0x5a5   : > { %v4580_v42 = vsel %vm1040_vm0, %v4472_v12, %v4562_v17 }
 0x5a6   : > { %v4686_v1 = vsel %vm4679_vm6, %v4580_v42, %v4665_v7 }
 0x5a7   : > { %v7148_v20 = vcombine.low %v4681_v34, %v4686_v1 }
 0x5a9   : > { %4912 = vmatmul.mubr.bf16.vlgmr.msra.gmra.mxu0 %v7148_v20 }
 0x5aa   : > { %7169 = vmatprep.mubr.msk.bf16.mxu0 %vm1040_vm0, %v7151_v23  ;;  %v4514_v16 = vld [vmem:[#allocation5 + $0x81] ss:$2 sm:$0xf]  ;;  %v4490_v27 = vld [vmem:[#allocation5 + $0x80] ss:$2 sm:$0xf] }
 0x5ab   : > { %v4524_v26 = vpack.c.bf16 %v4514_v16, %v4514_v16  ;;  %v9595_v4 = vpack.c.bf16 %v4490_v27, %v4490_v27  ;;  %v4538_v47 = vld [vmem:[#allocation5 + $0x82] ss:$2 sm:$0xf]  ;;  %v4464_v23 = vld [vmem:[#allocation5 + $0x67] ss:$2 sm:$0xf] }
 0x5ac   : > { %v4548_v48 = vpack.c.bf16 %v4538_v47, %v4538_v47  ;;  %v4466_v27 = vld [vmem:[#allocation5 + $0x7f] ss:$2 sm:$0xf] }
 0x5ad   : > { %4617 = vrot.lane.b32.xlu1 %v4524_v26, %s10400_s21 }
 0x5ae   : > { %v4674_v10 = vrot.slane %v4548_v48, 6 }
 0x5b0   : > { %v4709_v11 = vsel %vm4679_vm6, %v4524_v26, %v4674_v10 }
 0x5b1   : > { %4569 = vrot.lane.b32.xlu1 %v9595_v4, %s10400_s21 }
 0x5b8   : > { %v4392_v28 = vpop.f32.mrf.mxu1 }
 0x5b9   : > { %v4393_v52 = vadd.f32 %v9482_v8, %v4392_v28 }
 0x5ba   : > { %v4394_v29 = vpop.f32.mrf.mxu1 }
 0x5bb   : > { %v4419_v38 = vmax.f32 %v4393_v52, 0.0  ;;  %v4475_v29 = vpack.c.bf16 %v4464_v23, %v4464_v23 }
 0x5bc   : > { %v4395_v24 = vpop.f32.mrf.mxu1 }
 0x5bd   : > { %v4396_v19 = vadd.f32 %v9482_v8, %v4395_v24 }
 0x5be   : > { %v4397_v33 = vpop.f32.mrf.mxu1 }
 0x5bf   : > { %v4420_v59 = vmax.f32 %v4396_v19, 0.0  ;;  %v4476_v33 = vpack.c.bf16 %v4466_v27, %v4466_v27 }
 0x5c0   : > { %v4612_v46 = vpop.permute.xlu0 %4611 }
 0x5c1   : > { %v4429_v30 = vmax.f32 %v4419_v38, %v4420_v59  ;;  %v4631_v61 = vsel %vm1040_vm0, %v9556_v18, %v4612_v46 }
 0x5c2   : > { %v4667_v45 = vrot.slane %v4631_v61, 6 }
 0x5c3   : > { %4453 = vst.msk [vmem:[#allocation5 + $0x98] sm:$0xff] %vm1040_vm0, %v4429_v30 }
 0x5c4   : > { %v4564_v60 = vpop.permute.xlu0 %4563 }
 0x5c5   : > { %v4583_v39 = vsel %vm1040_vm0, %v4473_v22, %v4564_v60 }
 0x5c6   : > { %v4691_v18 = vsel %vm4679_vm6, %v4583_v39, %v4667_v45 }
 0x5ca   : > { %v4516_v40 = vld [vmem:[#allocation5 + $0x99] ss:$2 sm:$0xf]  ;;  %v4492_v44 = vld [vmem:[#allocation5 + $0x98] ss:$2 sm:$0xf] }
 0x5cb   : > { %v9602_v43 = vpack.c.bf16 %v4516_v40, %v4516_v40  ;;  %v9606_v37 = vpack.c.bf16 %v4492_v44, %v4492_v44  ;;  %v4540_v20 = vld [vmem:[#allocation5 + $0x9a] ss:$2 sm:$0xf] }
 0x5cc   : > { %v4549_v16 = vpack.c.bf16 %v4540_v20, %v4540_v20 }
 0x5cd   : > { %4619 = vrot.lane.b32.xlu0 %v9602_v43, %s10400_s21 }
 0x5ce   : > { %v4676_v38 = vrot.slane %v4549_v16, 6 }
 0x5d1   : > { %4571 = vrot.lane.b32.xlu0 %v9606_v37, %s10400_s21 }
 0x5d8   : > { %v4400_v15 = vpop.f32.mrf.mxu1 }
 0x5d9   : > { %v4401_v3 = vadd.f32 %v9482_v8, %v4400_v15 }
 0x5da   : > { %v4402_v55 = vpop.f32.mrf.mxu1 }
 0x5db   : > { %v4421_v51 = vmax.f32 %v4401_v3, 0.0 }
 0x5dc   : > { %v4403_v41 = vpop.f32.mrf.mxu1 }
 0x5dd   : > { %v4404_v63 = vadd.f32 %v9482_v8, %v4403_v41  ;;  %v4474_v8 = vpack.c.bf16 %v4462_v57, %v4462_v57  ;;  %v4468_v41 = vld [vmem:[#allocation5 + $0x97] ss:$2 sm:$0xf] }
 0x5de   : > { %v4405_v50 = vpop.f32.mrf.mxu1 }
 0x5df   : > { %v4422_v53 = vmax.f32 %v4404_v63, 0.0  ;;  %v4477_v50 = vpack.c.bf16 %v4468_v41, %v4468_v41 }
 0x5e0   : > { %v4614_v21 = vpop.permute.xlu1 %4613 }
 0x5e1   : > { %v4430_v32 = vmax.f32 %v4421_v51, %v4422_v53  ;;  %v4634_v62 = vsel %vm1040_vm0, %v9564_v0, %v4614_v21  ;;  %v4704_v0 = vsel %vm4679_vm6, %v9571_v36, %v4672_v25 }
 0x5e2   : > { %v4669_v2 = vrot.slane %v4634_v62, 6  ;;  %v7153_v35 = vcombine.low %v4704_v0, %v4709_v11 }
 0x5e3   : > { %4454 = vst.msk [vmem:[#allocation5 + $0xb0] sm:$0xff] %vm1040_vm0, %v4430_v32 }
 0x5e4   : > { %v4566_v6 = vpop.permute.xlu1 %4565 }
 0x5e5   : > { %v4586_v9 = vsel %vm1040_vm0, %v4474_v8, %v4566_v6 }
 0x5e6   : > { %v4696_v12 = vsel %vm4679_vm6, %v4586_v9, %v4669_v2 }
 0x5e7   : > { %v7150_v13 = vcombine.low %v4691_v18, %v4696_v12 }
 0x5e9   : > { %4920 = vmatmul.mubr.bf16.gmra.mxu0 %v7150_v13 }
 0x5ea   : > { %7170 = vmatprep.mubr.msk.bf16.mxu0 %vm1040_vm0, %v7153_v35  ;;  %v4518_v7 = vld [vmem:[#allocation5 + $0xb1] ss:$2 sm:$0xf]  ;;  %v4494_v42 = vld [vmem:[#allocation5 + $0xb0] ss:$2 sm:$0xf] }
 0x5eb   : > { %v4526_v17 = vpack.c.bf16 %v4518_v7, %v4518_v7  ;;  %v4502_v14 = vpack.c.bf16 %v4494_v42, %v4494_v42  ;;  %v4542_v1 = vld [vmem:[#allocation5 + $0xb2] ss:$2 sm:$0xf]  ;;  %v4470_v63 = vld [vmem:[#allocation5 + $0xaf] ss:$2 sm:$0xf] }
 0x5ec   : > { %v4550_v58 = vpack.c.bf16 %v4542_v1, %v4542_v1  ;;  %v4478_v5 = vpack.c.bf16 %v4470_v63, %v4470_v63  ;;  %v5127_v63 = vld [vmem:[%s10387_s11 + $0x1e0] sm:$0xff] }
 0x5ed   : > { %4621 = vrot.lane.b32.xlu1 %v4526_v17, %s10400_s21 }
 0x5ee   : > { %v4678_v24 = vrot.slane %v4550_v58, 6 }
 0x5f0   : > { %v4719_v15 = vsel %vm4679_vm6, %v4526_v17, %v4678_v24 }
 0x5f1   : > { %4573 = vrot.lane.b32.xlu1 %v4502_v14, %s10400_s21 }
 0x5ff   : > { %v4616_v34 = vpop.permute.xlu0 %4615 }
 0x600   : > { %v4637_v28 = vsel %vm1040_vm0, %v9575_v54, %v4616_v34 }
 0x601   : > { %v4671_v59 = vrot.slane %v4637_v28, 6 }
 0x603   : > { %v4568_v26 = vpop.permute.xlu0 %4567 }
 0x604   : > { %v4589_v19 = vsel %vm1040_vm0, %v4475_v29, %v4568_v26 }
 0x605   : > { %v4701_v46 = vsel %vm4679_vm6, %v4589_v19, %v4671_v59 }
 0x61f   : > { %v4618_v36 = vpop.permute.xlu1 %4617 }
 0x620   : > { %v4640_v52 = vsel %vm1040_vm0, %v9595_v4, %v4618_v36  ;;  %v4714_v4 = vsel %vm4679_vm6, %v9602_v43, %v4676_v38 }
 0x621   : > { %v4673_v30 = vrot.slane %v4640_v52, 6  ;;  %v7155_v47 = vcombine.low %v4714_v4, %v4719_v15 }
 0x623   : > { %v4570_v40 = vpop.permute.xlu1 %4569 }
 0x624   : > { %v4592_v44 = vsel %vm1040_vm0, %v4476_v33, %v4570_v40 }
 0x625   : > { %v4706_v54 = vsel %vm4679_vm6, %v4592_v44, %v4673_v30 }
 0x626   : > { %v7152_v55 = vcombine.low %v4701_v46, %v4706_v54 }
 0x628   : > { %4928 = vmatmul.mubr.bf16.gmra.mxu0 %v7152_v55 }
 0x629   : > { %7171 = vmatprep.mubr.msk.bf16.mxu0 %vm1040_vm0, %v7155_v47 }
 0x63f   : > { %v4620_v3 = vpop.permute.xlu0 %4619 }
 0x640   : > { %v4643_v48 = vsel %vm1040_vm0, %v9606_v37, %v4620_v3  ;;  %v9649_v37 = vld [vmem:[%s10386_s10] ss:$0 sm:$0xff] }
 0x641   : > { %v4675_v22 = vrot.slane %v4643_v48, 6  ;;  %v5124_v48 = vld [vmem:[%s10387_s11 + $0x1c8] sm:$0xff] }
 0x643   : > { %v4572_v56 = vpop.permute.xlu0 %4571 }
 0x644   : > { %v4595_v53 = vsel %vm1040_vm0, %v4477_v50, %v4572_v56 }
 0x645   : > { %v4711_v57 = vsel %vm4679_vm6, %v4595_v53, %v4675_v22  ;;  %v5128_v53 = vld [vmem:[%s10387_s11 + $0x1e8] sm:$0xff]  ;;  %v5119_v22 = vld [vmem:[%s10387_s11 + $0x1a0] sm:$0xff] }
 0x65f   : > { %v4622_v49 = vpop.permute.xlu1 %4621 }
 0x660   : > { %v4646_v51 = vsel %vm1040_vm0, %v4502_v14, %v4622_v49  ;;  %v5123_v49 = vld [vmem:[%s10387_s11 + $0x1c0] sm:$0xff] }
 0x661   : > { %v4677_v43 = vrot.slane %v4646_v51, 6  ;;  %v7228_v50 = vcombine.low %v5123_v49, %v5127_v63  ;;  %v7229_v51 = vcombine.high %v5123_v49, %v5127_v63 }
 0x663   : > { %v4574_v60 = vpop.permute.xlu1 %4573  ;;  %5877 = vmatprep.subr.bf16.mxu1 %v7229_v51  ;;  %v5187_v51 = vld [vmem:[%s10387_s11 + $0x3c0] sm:$0xff] }
 0x664   : > { %v4598_v21 = vsel %vm1040_vm0, %v4478_v5, %v4574_v60  ;;  %v5115_v5 = vld [vmem:[%s10387_s11 + $0x180] sm:$0xff]  ;;  %v7231_v60 = vcombine.high %v5124_v48, %v5128_v53  ;;  %5878 = vmatpush1.bf16.msra.mxu1 %v7228_v50 }
 0x665   : > { %v4716_v61 = vsel %vm4679_vm6, %v4598_v21, %v4677_v43  ;;  %v7230_v43 = vcombine.low %v5124_v48, %v5128_v53  ;;  %v7221_v21 = vcombine.high %v5115_v5, %v5119_v22  ;;  %v5191_v53 = vld [vmem:[%s10387_s11 + $0x3e0] sm:$0xff] }
 0x666   : > { %v7154_v32 = vcombine.low %v4711_v57, %v4716_v61  ;;  %v5116_v57 = vld [vmem:[%s10387_s11 + $0x188] sm:$0xff]  ;;  %5918 = vmatprep.subr.bf16.mxu0 %v7231_v60 }
 0x667   : > { %v5120_v61 = vld [vmem:[%s10387_s11 + $0x1a8] sm:$0xff]  ;;  %5919 = vmatpush1.bf16.msra.mxu0 %v7230_v43  ;;  %5879 = vmatprep.subr.bf16.mxu1 %v7221_v21  ;;  %v7293_v21 = vcombine.high %v5187_v51, %v5191_v53 }
 0x668   : > { %4936 = vmatmul.mubr.bf16.gmra.mxu0 %v7154_v32  ;;  %v5107_v32 = vld [vmem:[%s10387_s11 + $0x140] sm:$0xff] }
 0x669   : > { %v4913_v62 = vpop.f32.mrf.mxu0 }
 0x66a   : > { %v4914_v10 = vadd.f32 %v9649_v37, %v4913_v62  ;;  %v7223_v62 = vcombine.high %v5116_v57, %v5120_v61 }
 0x66b   : > { %v4915_v39 = vpop.f32.mrf.mxu0 }
 0x66c   : > { %v4944_v8 = vmax.f32 %v4914_v10, 0.0  ;;  %v5111_v10 = vld [vmem:[%s10387_s11 + $0x160] sm:$0xff]  ;;  %v5108_v39 = vld [vmem:[%s10387_s11 + $0x148] sm:$0xff]  ;;  %5920 = vmatprep.subr.bf16.mxu0 %v7223_v62 }
 0x66d   : > { %v4916_v25 = vpop.f32.mrf.mxu0  ;;  %v5180_v62 = vld [vmem:[%s10387_s11 + $0x388] sm:$0xff] }
 0x66e   : > { %v4960_v45 = vrot.slane %v4944_v8, 4  ;;  %v4917_v2 = vadd.f32 %v9649_v37, %v4916_v25  ;;  %v7220_v25 = vcombine.low %v5115_v5, %v5119_v22  ;;  %v5188_v5 = vld [vmem:[%s10387_s11 + $0x3c8] sm:$0xff] }
 0x66f   : > { %v4918_v6 = vpop.f32.mrf.mxu0  ;;  %v5192_v22 = vld [vmem:[%s10387_s11 + $0x3e8] sm:$0xff] }
 0x670   : > { %v4976_v9 = vmax.f32 %v4944_v8, %v4960_v45  ;;  %v4945_v11 = vmax.f32 %v4917_v2, 0.0  ;;  %v5112_v8 = vld [vmem:[%s10387_s11 + $0x168] sm:$0xff]  ;;  %v7222_v45 = vcombine.low %v5116_v57, %v5120_v61  ;;  %v7213_v2 = vcombine.high %v5107_v32, %v5111_v10  ;;  %5880 = vmatpush1.bf16.msra.mxu1 %v7220_v25  ;;  %v5179_v61 = vld [vmem:[%s10387_s11 + $0x380] sm:$0xff] }
 0x671   : > { %v7215_v6 = vcombine.high %v5108_v39, %v5112_v8  ;;  %v7295_v57 = vcombine.high %v5188_v5, %v5192_v22 }
 0x672   : > { %v4961_v18 = vrot.slane %v4945_v11, 4  ;;  %v5014_v12 = vrot.slane %v4976_v9, 1  ;;  %v5031_v0 = vrot.slane %v4976_v9, 2  ;;  %v5046_v35 = vrot.slane %v4976_v9, 3  ;;  %5921 = vmatpush1.bf16.msra.mxu0 %v7222_v45  ;;  %5881 = vmatprep.subr.bf16.mxu1 %v7213_v2  ;;  %v5171_v2 = vld [vmem:[%s10387_s11 + $0x340] sm:$0xff] }
 0x673   : > { %5922 = vmatprep.subr.bf16.mxu0 %v7215_v6  ;;  %v5175_v6 = vld [vmem:[%s10387_s11 + $0x360] sm:$0xff] }
 0x674   : > { %v4977_v13 = vmax.f32 %v4945_v11, %v4961_v18  ;;  %v5103_v11 = vld [vmem:[%s10387_s11 + $0x120] sm:$0xff]  ;;  %v5100_v18 = vld [vmem:[%s10387_s11 + $0x108] sm:$0xff] }
 0x676   : > { %v4992_v7 = vrot.slane %v4977_v13, 7  ;;  %v5015_v17 = vsel %vm4993_vm7, %v4977_v13, %v5014_v12  ;;  %v5032_v42 = vrot.slane %v4977_v13, 1  ;;  %v5047_v14 = vrot.slane %v4977_v13, 2  ;;  %v5104_v12 = vld [vmem:[%s10387_s11 + $0x128] sm:$0xff] }
 0x677   : > { %v7212_v13 = vcombine.low %v5107_v32, %v5111_v10  ;;  %v5183_v32 = vld [vmem:[%s10387_s11 + $0x3a0] sm:$0xff]  ;;  %v5184_v10 = vld [vmem:[%s10387_s11 + $0x3a8] sm:$0xff] }
 0x678   : > { %v4994_v34 = vsel %vm4993_vm7, %v4992_v7, %v4976_v9  ;;  %v5033_v1 = vsel %vm4993_vm7, %v5032_v42, %v5031_v0  ;;  %v5048_v20 = vsel %vm4993_vm7, %v5047_v14, %v5046_v35  ;;  %v5099_v9 = vld [vmem:[%s10387_s11 + $0x100] sm:$0xff]  ;;  %v7214_v0 = vcombine.low %v5108_v39, %v5112_v8  ;;  %v5092_v14 = vld [vmem:[%s10387_s11 + $0xc8] sm:$0xff] }
 0x679   : > { %v7205_v35 = vcombine.high %v5099_v9, %v5103_v11  ;;  %v7207_v7 = vcombine.high %v5100_v18, %v5104_v12  ;;  %v5095_v42 = vld [vmem:[%s10387_s11 + $0xe0] sm:$0xff]  ;;  %5882 = vmatpush1.bf16.msra.mxu1 %v7212_v13  ;;  %v7292_v39 = vcombine.low %v5187_v51, %v5191_v53  ;;  %v7294_v8 = vcombine.low %v5188_v5, %v5192_v22  ;;  %v5144_v51 = vld [vmem:[%s10387_s11 + $0x268] sm:$0xff] }
 0x67a   : > { %5923 = vmatpush1.bf16.msra.mxu0 %v7214_v0  ;;  %v7285_v25 = vcombine.high %v5179_v61, %v5183_v32  ;;  %v7287_v45 = vcombine.high %v5180_v62, %v5184_v10  ;;  %v7277_v13 = vcombine.high %v5171_v2, %v5175_v6 }
 0x67b   : > { %5883 = vmatprep.subr.bf16.mxu1 %v7205_v35  ;;  %5924 = vmatprep.subr.bf16.mxu0 %v7207_v7  ;;  %v5163_v35 = vld [vmem:[%s10387_s11 + $0x300] sm:$0xff] }
 0x67c   : > { %v5167_v7 = vld [vmem:[%s10387_s11 + $0x320] sm:$0xff] }
 0x6a9   : > { %v4921_v58 = vpop.f32.mrf.mxu0 }
 0x6aa   : > { %v4922_v23 = vadd.f32 %v9649_v37, %v4921_v58 }
 0x6ab   : > { %v4923_v16 = vpop.f32.mrf.mxu0 }
 0x6ac   : > { %v4946_v26 = vmax.f32 %v4922_v23, 0.0  ;;  %v5083_v16 = vld [vmem:[%s10387_s11 + $0x80] sm:$0xff] }
 0x6ad   : > { %v4924_v36 = vpop.f32.mrf.mxu0 }
 0x6ae   : > { %v4962_v27 = vrot.slane %v4946_v26, 4  ;;  %v4925_v28 = vadd.f32 %v9649_v37, %v4924_v36  ;;  %v5084_v36 = vld [vmem:[%s10387_s11 + $0x88] sm:$0xff] }
 0x6af   : > { %v4926_v29 = vpop.f32.mrf.mxu0 }
 0x6b0   : > { %v4978_v52 = vmax.f32 %v4946_v26, %v4962_v27  ;;  %v4947_v24 = vmax.f32 %v4925_v28, 0.0  ;;  %v5087_v26 = vld [vmem:[%s10387_s11 + $0xa0] sm:$0xff]  ;;  %v5088_v27 = vld [vmem:[%s10387_s11 + $0xa8] sm:$0xff] }
 0x6b2   : > { %v4995_v19 = vrot.slane %v4978_v52, 6  ;;  %v5016_v33 = vrot.slane %v4978_v52, 7  ;;  %v5034_v38 = vsel %vm4996_vm8, %v4978_v52, %v5033_v1  ;;  %v5049_v59 = vrot.slane %v4978_v52, 1 }
 0x6b3   : > { %v4963_v30 = vrot.slane %v4947_v24, 4  ;;  %v7204_v1 = vcombine.low %v5099_v9, %v5103_v11  ;;  %v7189_v52 = vcombine.high %v5083_v16, %v5087_v26  ;;  %v5172_v9 = vld [vmem:[%s10387_s11 + $0x348] sm:$0xff] }
 0x6b4   : > { %v4997_v40 = vsel %vm4996_vm8, %v4995_v19, %v4994_v34  ;;  %v5017_v44 = vsel %vm4996_vm8, %v5016_v33, %v5015_v17  ;;  %v5050_v15 = vsel %vm4996_vm8, %v5049_v59, %v5048_v20  ;;  %v5091_v17 = vld [vmem:[%s10387_s11 + $0xc0] sm:$0xff]  ;;  %v5096_v34 = vld [vmem:[%s10387_s11 + $0xe8] sm:$0xff]  ;;  %v7206_v20 = vcombine.low %v5100_v18, %v5104_v12 }
 0x6b5   : > { %v4979_v46 = vmax.f32 %v4947_v24, %v4963_v30  ;;  %v7197_v58 = vcombine.high %v5091_v17, %v5095_v42  ;;  %v7199_v23 = vcombine.high %v5092_v14, %v5096_v34  ;;  %5884 = vmatpush1.bf16.msra.mxu1 %v7204_v1  ;;  %v7196_v28 = vcombine.low %v5091_v17, %v5095_v42  ;;  %v5075_v19 = vld [vmem:[%s10387_s11 + $0x40] sm:$0xff]  ;;  %v5080_v59 = vld [vmem:[%s10387_s11 + $0x68] sm:$0xff] }
 0x6b6   : > { %5925 = vmatpush1.bf16.msra.mxu0 %v7206_v20  ;;  %v7198_v29 = vcombine.low %v5092_v14, %v5096_v34  ;;  %v7191_v24 = vcombine.high %v5084_v36, %v5088_v27  ;;  %v5079_v33 = vld [vmem:[%s10387_s11 + $0x60] sm:$0xff]  ;;  %v7188_v30 = vcombine.low %v5083_v16, %v5087_v26  ;;  %v5176_v11 = vld [vmem:[%s10387_s11 + $0x368] sm:$0xff]  ;;  %v7284_v18 = vcombine.low %v5179_v61, %v5183_v32 }
 0x6b7   : > { %v4998_v54 = vrot.slane %v4979_v46, 5  ;;  %v5018_v55 = vrot.slane %v4979_v46, 6  ;;  %v5035_v4 = vrot.slane %v4979_v46, 7  ;;  %v9655_v47 = vsel %vm4999_vm9, %v4979_v46, %v5050_v15  ;;  %5885 = vmatprep.subr.bf16.mxu1 %v7197_v58  ;;  %5926 = vmatprep.subr.bf16.mxu0 %v7199_v23  ;;  %v5067_v46 = vld [vmem:[%s10387_s11] sm:$0xff]  ;;  %v5164_v17 = vld [vmem:[%s10387_s11 + $0x308] sm:$0xff] }
 0x6b8   : > { %v7180_v49 = vcombine.low %v5075_v19, %v5079_v33  ;;  %v7286_v12 = vcombine.low %v5180_v62, %v5184_v10  ;;  %v7279_v0 = vcombine.high %v5172_v9, %v5176_v11  ;;  %v5168_v42 = vld [vmem:[%s10387_s11 + $0x328] sm:$0xff]  ;;  %v7276_v14 = vcombine.low %v5171_v2, %v5175_v6  ;;  %v5155_v58 = vld [vmem:[%s10387_s11 + $0x2c0] sm:$0xff] }
 0x6b9   : > { %v9657_v3 = vsel %vm4999_vm9, %v4998_v54, %v4997_v40  ;;  %v9659_v41 = vsel %vm4999_vm9, %v5018_v55, %v5017_v44  ;;  %v9661_v56 = vsel %vm4999_vm9, %v5035_v4, %v5034_v38  ;;  %v5076_v38 = vld [vmem:[%s10387_s11 + $0x48] sm:$0xff]  ;;  %5886 = vmatpush1.bf16.msra.mxu1 %v7196_v28  ;;  %v7190_v40 = vcombine.low %v5084_v36, %v5088_v27  ;;  %v5071_v54 = vld [vmem:[%s10387_s11 + $0x20] sm:$0xff] }
 0x6ba   : > { %5927 = vmatpush1.bf16.msra.mxu0 %v7198_v29  ;;  %5887 = vmatprep.subr.bf16.mxu1 %v7189_v52  ;;  %v7181_v44 = vcombine.high %v5075_v19, %v5079_v33  ;;  %v7183_v15 = vcombine.high %v5076_v38, %v5080_v59  ;;  %v5068_v55 = vld [vmem:[%s10387_s11 + $0x8] sm:$0xff]  ;;  %v7182_v63 = vcombine.low %v5076_v38, %v5080_v59  ;;  %v5159_v23 = vld [vmem:[%s10387_s11 + $0x2e0] sm:$0xff] }
 0x6bb   : > { %5928 = vmatprep.subr.bf16.mxu0 %v7191_v24  ;;  %v5072_v4 = vld [vmem:[%s10387_s11 + $0x28] sm:$0xff]  ;;  %v7173_v48 = vcombine.high %v5067_v46, %v5071_v54  ;;  %v7172_v43 = vcombine.low %v5067_v46, %v5071_v54  ;;  %v7278_v34 = vcombine.low %v5172_v9, %v5176_v11  ;;  %v7269_v1 = vcombine.high %v5163_v35, %v5167_v7  ;;  %v5147_v19 = vld [vmem:[%s10387_s11 + $0x280] sm:$0xff] }
 0x6bc   : > { %v7175_v50 = vcombine.high %v5068_v55, %v5072_v4  ;;  %v7174_v60 = vcombine.low %v5068_v55, %v5072_v4  ;;  %v7271_v20 = vcombine.high %v5164_v17, %v5168_v42  ;;  %v5156_v16 = vld [vmem:[%s10387_s11 + $0x2c8] sm:$0xff]  ;;  %v7268_v36 = vcombine.low %v5163_v35, %v5167_v7  ;;  %v5151_v33 = vld [vmem:[%s10387_s11 + $0x2a0] sm:$0xff] }
 0x6bd   : > { %5888 = vmatpush1.bf16.msra.mxu1 %v7188_v30  ;;  %v5160_v26 = vld [vmem:[%s10387_s11 + $0x2e8] sm:$0xff]  ;;  %v7270_v28 = vcombine.low %v5164_v17, %v5168_v42  ;;  %v7261_v29 = vcombine.high %v5155_v58, %v5159_v23  ;;  %v7253_v54 = vcombine.high %v5147_v19, %v5151_v33  ;;  %v5139_v55 = vld [vmem:[%s10387_s11 + $0x240] sm:$0xff] }
 0x6be   : > { %5929 = vmatpush1.bf16.msra.mxu0 %v7190_v40  ;;  %5889 = vmatprep.subr.bf16.mxu1 %v7181_v44  ;;  %v7263_v24 = vcombine.high %v5156_v16, %v5160_v26  ;;  %v5148_v59 = vld [vmem:[%s10387_s11 + $0x288] sm:$0xff]  ;;  %v7260_v44 = vcombine.low %v5155_v58, %v5159_v23  ;;  %v7262_v46 = vcombine.low %v5156_v16, %v5160_v26  ;;  %v5131_v42 = vld [vmem:[%s10387_s11 + $0x200] sm:$0xff] }
 0x6bf   : > { %5930 = vmatprep.subr.bf16.mxu0 %v7183_v15  ;;  %v5152_v30 = vld [vmem:[%s10387_s11 + $0x2a8] sm:$0xff] }
 0x6c0   : > { %v5136_v58 = vld [vmem:[%s10387_s11 + $0x228] sm:$0xff] }
 0x6c1   : > { %5890 = vmatpush1.bf16.msra.mxu1 %v7180_v49 }
 0x6c2   : > { %5931 = vmatpush1.bf16.msra.mxu0 %v7182_v63  ;;  %5891 = vmatprep.subr.bf16.mxu1 %v7173_v48  ;;  %v7255_v63 = vcombine.high %v5148_v59, %v5152_v30  ;;  %v5143_v48 = vld [vmem:[%s10387_s11 + $0x260] sm:$0xff] }
 0x6c3   : > { %5932 = vmatprep.subr.bf16.mxu0 %v7175_v50  ;;  %v5140_v50 = vld [vmem:[%s10387_s11 + $0x248] sm:$0xff] }
 0x6c4   : > { %v7246_v11 = vcombine.low %v5140_v50, %v5144_v51 }
 0x6c5   : > { %5892 = vmatpush1.bf16.msra.mxu1 %v7172_v43  ;;  %v7252_v43 = vcombine.low %v5147_v19, %v5151_v33  ;;  %v5129_v19 = vld [vmem:[%s10387_s11 + $0x1f0] sm:$0xff] }
 0x6c6   : > { %5933 = vmatpush1.bf16.msra.mxu0 %v7174_v60  ;;  %5893 = vmatprep.subr.bf16.mxu1 %v7293_v21  ;;  %v7254_v60 = vcombine.low %v5148_v59, %v5152_v30  ;;  %v7245_v21 = vcombine.high %v5139_v55, %v5143_v48  ;;  %v5126_v59 = vld [vmem:[%s10387_s11 + $0x1d8] sm:$0xff] }
 0x6c7   : > { %5934 = vmatprep.subr.bf16.mxu0 %v7295_v57  ;;  %v7247_v57 = vcombine.high %v5140_v50, %v5144_v51  ;;  %v5130_v30 = vld [vmem:[%s10387_s11 + $0x1f8] sm:$0xff] }
 0x6c9   : > { %5894 = vmatpush2.bf16.msra.mxu1 %v7292_v39 }
 0x6ca   : > { %5935 = vmatpush2.bf16.msra.mxu0 %v7294_v8  ;;  %5895 = vmatprep.subr.bf16.mxu1 %v7285_v25  ;;  %v7244_v8 = vcombine.low %v5139_v55, %v5143_v48 }
 0x6cb   : > { %5936 = vmatprep.subr.bf16.mxu0 %v7287_v45 }
 0x6cd   : > { %5896 = vmatpush2.bf16.msra.mxu1 %v7284_v18 }
 0x6ce   : > { %5937 = vmatpush2.bf16.msra.mxu0 %v7286_v12  ;;  %5897 = vmatprep.subr.bf16.mxu1 %v7277_v13 }
 0x6cf   : > { %5938 = vmatprep.subr.bf16.mxu0 %v7279_v0 }
 0x6d1   : > { %5898 = vmatpush2.bf16.msra.mxu1 %v7276_v14  ;;  %v5135_v14 = vld [vmem:[%s10387_s11 + $0x220] sm:$0xff] }
 0x6d2   : > { %5939 = vmatpush2.bf16.msra.mxu0 %v7278_v34  ;;  %5899 = vmatprep.subr.bf16.mxu1 %v7269_v1  ;;  %v5132_v34 = vld [vmem:[%s10387_s11 + $0x208] sm:$0xff]  ;;  %v7236_v16 = vcombine.low %v5131_v42, %v5135_v14 }
 0x6d3   : > { %5940 = vmatprep.subr.bf16.mxu0 %v7271_v20  ;;  %v7237_v20 = vcombine.high %v5131_v42, %v5135_v14  ;;  %v7238_v26 = vcombine.low %v5132_v34, %v5136_v58  ;;  %v5101_v42 = vld [vmem:[%s10387_s11 + $0x110] sm:$0xff] }
 0x6d4   : > { %v5105_v14 = vld [vmem:[%s10387_s11 + $0x130] sm:$0xff] }
 0x6d5   : > { %5900 = vmatpush2.bf16.msra.mxu1 %v7268_v36  ;;  %v7239_v36 = vcombine.high %v5132_v34, %v5136_v58  ;;  %v5102_v34 = vld [vmem:[%s10387_s11 + $0x118] sm:$0xff] }
 0x6d6   : > { %5941 = vmatpush2.bf16.msra.mxu0 %v7270_v28  ;;  %5901 = vmatprep.subr.bf16.mxu1 %v7261_v29 }
 0x6d7   : > { %5942 = vmatprep.subr.bf16.mxu0 %v7263_v24  ;;  %v5125_v24 = vld [vmem:[%s10387_s11 + $0x1d0] sm:$0xff] }
 0x6d8   : > { %v7232_v55 = vcombine.low %v5125_v24, %v5129_v19 }
 0x6d9   : > { %5902 = vmatpush2.bf16.msra.mxu1 %v7260_v44 }
 0x6da   : > { %5943 = vmatpush2.bf16.msra.mxu0 %v7262_v46  ;;  %5903 = vmatprep.subr.bf16.mxu1 %v7253_v54 }
 0x6db   : > { %5944 = vmatprep.subr.bf16.mxu0 %v7255_v63 }
 0x6dd   : > { %5904 = vmatpush2.bf16.msra.mxu1 %v7252_v43 }
 0x6de   : > { %5945 = vmatpush2.bf16.msra.mxu0 %v7254_v60  ;;  %5905 = vmatprep.subr.bf16.mxu1 %v7245_v21 }
 0x6df   : > { %5946 = vmatprep.subr.bf16.mxu0 %v7247_v57 }
 0x6e1   : > { %5906 = vmatpush2.bf16.msra.mxu1 %v7244_v8  ;;  %v5117_v8 = vld [vmem:[%s10387_s11 + $0x190] sm:$0xff] }
 0x6e2   : > { %5947 = vmatpush2.bf16.msra.mxu0 %v7246_v11  ;;  %5907 = vmatprep.subr.bf16.mxu1 %v7237_v20 }
 0x6e3   : > { %5948 = vmatprep.subr.bf16.mxu0 %v7239_v36  ;;  %v5094_v36 = vld [vmem:[%s10387_s11 + $0xd8] sm:$0xff] }
 0x6e5   : > { %5908 = vmatpush2.bf16.msra.mxu1 %v7236_v16  ;;  %v5093_v16 = vld [vmem:[%s10387_s11 + $0xd0] sm:$0xff] }
 0x6e6   : > { %5949 = vmatpush2.bf16.msra.mxu0 %v7238_v26  ;;  %v5097_v26 = vld [vmem:[%s10387_s11 + $0xf0] sm:$0xff] }
 0x6e8   : > { %v4929_v27 = vpop.f32.mrf.mxu0 }
 0x6e9   : > { %v4930_v52 = vadd.f32 %v9649_v37, %v4929_v27 }
 0x6ea   : > { %v4931_v38 = vpop.f32.mrf.mxu0 }
 0x6eb   : > { %v4948_v40 = vmax.f32 %v4930_v52, 0.0  ;;  %v7233_v38 = vcombine.high %v5125_v24, %v5129_v19  ;;  %v5085_v19 = vld [vmem:[%s10387_s11 + $0x90] sm:$0xff] }
 0x6ec   : > { %v4932_v15 = vpop.f32.mrf.mxu0 }
 0x6ed   : > { %v4964_v4 = vrot.slane %v4948_v40, 4  ;;  %v4933_v49 = vadd.f32 %v9649_v37, %v4932_v15  ;;  %5959 = vmatprep.subr.bf16.mxu1 %v7233_v38  ;;  %v5086_v38 = vld [vmem:[%s10387_s11 + $0x98] sm:$0xff] }
 0x6ee   : > { %v4934_v53 = vpop.f32.mrf.mxu0 }
 0x6ef   : > { %v4980_v5 = vmax.f32 %v4948_v40, %v4964_v4  ;;  %v4949_v22 = vmax.f32 %v4933_v49, 0.0  ;;  %v7234_v4 = vcombine.low %v5126_v59, %v5130_v30  ;;  %v7235_v49 = vcombine.high %v5126_v59, %v5130_v30  ;;  %v5090_v59 = vld [vmem:[%s10387_s11 + $0xb8] sm:$0xff] }
 0x6f0   : > { %v7200_v30 = vcombine.low %v5093_v16, %v5097_v26 }
 0x6f1   : > { %v5001_v61 = vrot.slane %v4980_v5, 4  ;;  %v5020_v32 = vrot.slane %v4980_v5, 5  ;;  %v5037_v62 = vrot.slane %v4980_v5, 6  ;;  %v5052_v10 = vrot.slane %v4980_v5, 7  ;;  %6000 = vmatprep.subr.bf16.mxu0 %v7235_v49 }
 0x6f2   : > { %v4965_v39 = vrot.slane %v4949_v22, 4 }
 0x6f3   : > { %v5021_v25 = vsel %vm5002_vm10, %v5020_v32, %v9659_v41  ;;  %v5053_v45 = vsel %vm5002_vm10, %v5052_v10, %v9655_v47  ;;  %v5038_v2 = vsel %vm5002_vm10, %v5037_v62, %v9661_v56  ;;  %v5003_v6 = vsel %vm5002_vm10, %v5001_v61, %v9657_v3 }
 0x6f4   : > { %v4981_v9 = vmax.f32 %v4949_v22, %v4965_v39 }
 0x6f6   : > { %v5004_v18 = vrot.slane %v4981_v9, 3  ;;  %v5039_v12 = vrot.slane %v4981_v9, 5  ;;  %v5022_v27 = vrot.slane %v4981_v9, 4  ;;  %v5054_v28 = vrot.slane %v4981_v9, 6  ;;  %v5122_v9 = vld [vmem:[%s10387_s11 + $0x1b8] sm:$0xff] }
 0x6f8   : > { %v5040_v41 = vsel %vm5005_vm11, %v5039_v12, %v5038_v2  ;;  %v5006_v47 = vsel %vm5005_vm11, %v5004_v18, %v5003_v6  ;;  %v5023_v63 = vsel %vm5005_vm11, %v5022_v27, %v5021_v25  ;;  %v5055_v48 = vsel %vm5005_vm11, %v5054_v28, %v5053_v45  ;;  %v5121_v2 = vld [vmem:[%s10387_s11 + $0x1b0] sm:$0xff]  ;;  %v5118_v6 = vld [vmem:[%s10387_s11 + $0x198] sm:$0xff] }
 0x6f9   : > { %v5109_v12 = vld [vmem:[%s10387_s11 + $0x150] sm:$0xff]  ;;  %v5098_v27 = vld [vmem:[%s10387_s11 + $0xf8] sm:$0xff]  ;;  %v7208_v28 = vcombine.low %v5101_v42, %v5105_v14 }
 0x6fa   : > { %v7203_v24 = vcombine.high %v5094_v36, %v5098_v27 }
 0x728   : > { %v4937_v13 = vpop.f32.mrf.mxu0 }
 0x729   : > { %v4938_v56 = vadd.f32 %v9649_v37, %v4937_v13  ;;  %v5113_v13 = vld [vmem:[%s10387_s11 + $0x170] sm:$0xff] }
 0x72a   : > { %v4939_v0 = vpop.f32.mrf.mxu0  ;;  %v7216_v20 = vcombine.low %v5109_v12, %v5113_v13 }
 0x72b   : > { %v4950_v35 = vmax.f32 %v4938_v56, 0.0  ;;  %v5110_v56 = vld [vmem:[%s10387_s11 + $0x158] sm:$0xff] }
 0x72c   : > { %v4940_v3 = vpop.f32.mrf.mxu0  ;;  %v5114_v0 = vld [vmem:[%s10387_s11 + $0x178] sm:$0xff] }
 0x72d   : > { %v4966_v7 = vrot.slane %v4950_v35, 4  ;;  %v4941_v17 = vadd.f32 %v9649_v37, %v4940_v3  ;;  %v7226_v3 = vcombine.low %v5118_v6, %v5122_v9  ;;  %v7218_v58 = vcombine.low %v5110_v56, %v5114_v0 }
 0x72e   : > { %v4942_v1 = vpop.f32.mrf.mxu0 }
 0x72f   : > { %v4982_v23 = vmax.f32 %v4950_v35, %v4966_v7  ;;  %v4951_v37 = vmax.f32 %v4941_v17, 0.0  ;;  %v7224_v35 = vcombine.low %v5117_v8, %v5121_v2  ;;  %v7217_v7 = vcombine.high %v5109_v12, %v5113_v13  ;;  %v5106_v1 = vld [vmem:[%s10387_s11 + $0x138] sm:$0xff] }
 0x730   : > { %v7219_v17 = vcombine.high %v5110_v56, %v5114_v0  ;;  %v5173_v56 = vld [vmem:[%s10387_s11 + $0x350] sm:$0xff] }
 0x731   : > { %v5007_v29 = vrot.slane %v4982_v23, 2  ;;  %v5041_v52 = vrot.slane %v4982_v23, 4  ;;  %v4967_v33 = vrot.slane %v4951_v37, 4  ;;  %v5024_v40 = vrot.slane %v4982_v23, 3  ;;  %v5177_v0 = vld [vmem:[%s10387_s11 + $0x370] sm:$0xff] }
 0x732   : > { %v5056_v44 = vrot.slane %v4982_v23, 5  ;;  %v7209_v23 = vcombine.high %v5101_v42, %v5105_v14  ;;  %v7281_v42 = vcombine.high %v5173_v56, %v5177_v0 }
 0x733   : > { %v5042_v15 = vsel %vm5008_vm12, %v5041_v52, %v5040_v41  ;;  %v5009_v46 = vsel %vm5008_vm12, %v5007_v29, %v5006_v47  ;;  %v4983_v54 = vmax.f32 %v4951_v37, %v4967_v33  ;;  %v5025_v22 = vsel %vm5008_vm12, %v5024_v40, %v5023_v63  ;;  %v5089_v33 = vld [vmem:[%s10387_s11 + $0xb0] sm:$0xff] }
 0x734   : > { %v5057_v43 = vsel %vm5008_vm12, %v5056_v44, %v5055_v48  ;;  %v7225_v41 = vcombine.high %v5117_v8, %v5121_v2  ;;  %v7227_v47 = vcombine.high %v5118_v6, %v5122_v9  ;;  %v7211_v37 = vcombine.high %v5102_v34, %v5106_v1  ;;  %v5181_v2 = vld [vmem:[%s10387_s11 + $0x390] sm:$0xff]  ;;  %v5182_v9 = vld [vmem:[%s10387_s11 + $0x398] sm:$0xff] }
 0x735   : > { %v5010_v50 = vrot.slane %v4983_v54, 1  ;;  %v5026_v51 = vrot.slane %v4983_v54, 2  ;;  %v5043_v53 = vrot.slane %v4983_v54, 3  ;;  %v5058_v5 = vrot.slane %v4983_v54, 4  ;;  %v5081_v54 = vld [vmem:[%s10387_s11 + $0x70] sm:$0xff] }
 0x736   : > { %v7210_v29 = vcombine.low %v5102_v34, %v5106_v1  ;;  %v7201_v52 = vcombine.high %v5093_v16, %v5097_v26  ;;  %v7202_v40 = vcombine.low %v5094_v36, %v5098_v27  ;;  %v7193_v44 = vcombine.high %v5085_v19, %v5089_v33  ;;  %v5185_v6 = vld [vmem:[%s10387_s11 + $0x3b0] sm:$0xff] }
 0x737   : > { %v5027_v60 = vsel %vm5011_vm13, %v5026_v51, %v5025_v22  ;;  %v5059_v21 = vsel %vm5011_vm13, %v5058_v5, %v5057_v43  ;;  %v5044_v57 = vsel %vm5011_vm13, %v5043_v53, %v5042_v15  ;;  %v5012_v61 = vsel %vm5011_vm13, %v5010_v50, %v5009_v46  ;;  %v5077_v46 = vld [vmem:[%s10387_s11 + $0x50] sm:$0xff]  ;;  %v5070_v5 = vld [vmem:[%s10387_s11 + $0x18] sm:$0xff] }
 0x738   : > { %v7924_v32 = vpack.i.bf16 %v5027_v60, %v5059_v21  ;;  %v7195_v15 = vcombine.high %v5086_v38, %v5090_v59  ;;  %v7192_v49 = vcombine.low %v5085_v19, %v5089_v33  ;;  %v7194_v63 = vcombine.low %v5086_v38, %v5090_v59  ;;  %v5069_v51 = vld [vmem:[%s10387_s11 + $0x10] sm:$0xff]  ;;  %v5074_v22 = vld [vmem:[%s10387_s11 + $0x38] sm:$0xff] }
 0x739   : > { %v7185_v48 = vcombine.high %v5077_v46, %v5081_v54  ;;  %v5073_v53 = vld [vmem:[%s10387_s11 + $0x30] sm:$0xff]  ;;  %v7184_v43 = vcombine.low %v5077_v46, %v5081_v54  ;;  %v7178_v8 = vcombine.low %v5070_v5, %v5074_v22 }
 0x73a   : > { %7925 = vrot.lane.b32.xlu0 %v7924_v32, %s10414_s29  ;;  %v7177_v21 = vcombine.high %v5069_v51, %v5073_v53  ;;  %v5193_v32 = vld [vmem:[%s10387_s11 + $0x3f0] sm:$0xff]  ;;  %s6927_s29 = sshll.u32 %s542_s20, 3 }
 0x73b   : > { %v5165_v34 = vld [vmem:[%s10387_s11 + $0x310] sm:$0xff]  ;;  %s544_s22 = scalar_lea.vmem [#allocation6], %s6927_s29  ;;  %s8110_s29 = sshll.u32 %s8173_s28, 4  ;;  %s8111_s29 = int_to_ptr.vmem [resolvable:$false] %s8110_s29 }
 0x73c   : > { %v5169_v1 = vld [vmem:[%s10387_s11 + $0x330] sm:$0xff]  ;;  %s6864_s24 = sshll.u32 %s544_s22, 4  ;;  %s8112_s26 = scalar_lea.vmem %s8111_s29, 256  ;;  %s10337_s24 = int_to_ptr.vmem [resolvable:$true] %s6864_s24 }
 0x73d   : > { %v7273_v16 = vcombine.high %v5165_v34, %v5169_v1  ;;  %v5157_v36 = vld [vmem:[%s10387_s11 + $0x2d0] sm:$0xff]  ;;  %s8106_s21 = scalar_lea.vmem %s10337_s24, 128  ;;  %p8113_p0 = scmp.lt.s32.totalorder %s10337_s24, %s8111_s29 }
 0x73e   : > { %v5161_v27 = vld [vmem:[%s10387_s11 + $0x2f0] sm:$0xff]  ;;  %p8107_p11 = scmp.ne.s32.totalorder %s10337_s24, %s8106_s21  ;;  %p8114_p1 = scmp.lt.s32.totalorder %s8112_s26, %s8106_s21 }
 0x73f   : > { %v7265_v19 = vcombine.high %v5157_v36, %v5161_v27  ;;  %v5149_v38 = vld [vmem:[%s10387_s11 + $0x290] sm:$0xff] }
 0x740   : > { %v5153_v59 = vld [vmem:[%s10387_s11 + $0x2b0] sm:$0xff]  ;;  %p8108_p12 = pnand %p8107_p11, %p8302_p5  ;;  %p8115_p2 = por %p8114_p1, %p8113_p0 }
 0x741   : > { %v7257_v46 = vcombine.high %v5149_v38, %v5153_v59 }
 0x742   : > { %p8109_p13 = pneg %p8108_p12 }
 0x744   : > { %p8116_p3 = pnand %p8115_p2, %p8109_p13 }
 0x7ac   : > { %v7926_v62 = vpop.permute.xlu0 %7925 }
 0x7ad   : > { %v7928_v10 = vunpack.i.h.bf16 %v7926_v62  ;;  %v7927_v39 = vunpack.i.l.bf16 %v7926_v62  ;;  %v5190_v62 = vld [vmem:[%s10387_s11 + $0x3d8] sm:$0xff] }
 0x7af   : > { %v5063_v25 = vsel %vm1040_vm0, %v5012_v61, %v7928_v10  ;;  %v5064_v45 = vsel %vm1040_vm0, %v5044_v57, %v7927_v39  ;;  %v7179_v57 = vcombine.high %v5070_v5, %v5074_v22  ;;  %v5189_v61 = vld [vmem:[%s10387_s11 + $0x3d0] sm:$0xff]  ;;  %v5194_v10 = vld [vmem:[%s10387_s11 + $0x3f8] sm:$0xff]  ;;  %v7176_v39 = vcombine.low %v5069_v51, %v5073_v53 }
 0x7b0   : > { %v9902_v11 = vpack.c.bf16 %v5063_v25, %v5063_v25  ;;  %v5066_v18 = vpack.c.bf16 %v5064_v45, %v5064_v45  ;;  %v7297_v25 = vcombine.high %v5189_v61, %v5193_v32  ;;  %v7299_v45 = vcombine.high %v5190_v62, %v5194_v10  ;;  %v5133_v5 = vld [vmem:[%s10387_s11 + $0x210] sm:$0xff] }
 0x7b1   : > { %v7296_v12 = vcombine.low %v5189_v61, %v5193_v32  ;;  %v5137_v22 = vld [vmem:[%s10387_s11 + $0x230] sm:$0xff] }
 0x7b2   : > { %5909 = vmatprep.mubr.bf16.mxu1 %v5066_v18  ;;  %5950 = vmatprep.mubr.bf16.mxu0 %v5066_v18  ;;  %v7241_v61 = vcombine.high %v5133_v5, %v5137_v22 }
 0x7b3   : > { %5910 = vmatmul.mubr.bf16.vlgmr.msra.gmra.mxu1 %v9902_v11  ;;  %5951 = vmatmul.mubr.bf16.vlgmr.msra.gmra.mxu0 %v9902_v11 }
 0x7b4   : > { %5960 = vmatpush1.bf16.msra.mxu1 %v7232_v55  ;;  %6001 = vmatpush1.bf16.msra.mxu0 %v7234_v4  ;;  %v5078_v55 = vld [vmem:[%s10387_s11 + $0x58] sm:$0xff] }
 0x7b5   : > { %5991 = vmatprep.mubr.bf16.mxu1 %v5066_v18  ;;  %6032 = vmatprep.mubr.bf16.mxu0 %v5066_v18  ;;  %v5082_v4 = vld [vmem:[%s10387_s11 + $0x78] sm:$0xff] }
 0x7b6   : > { %5961 = vmatprep.subr.bf16.mxu1 %v7225_v41  ;;  %6002 = vmatprep.subr.bf16.mxu0 %v7227_v47  ;;  %v7187_v50 = vcombine.high %v5078_v55, %v5082_v4  ;;  %v7186_v60 = vcombine.low %v5078_v55, %v5082_v4  ;;  %v5186_v18 = vld [vmem:[%s10387_s11 + $0x3b8] sm:$0xff]  ;;  %v7298_v41 = vcombine.low %v5190_v62, %v5194_v10  ;;  %v5141_v55 = vld [vmem:[%s10387_s11 + $0x250] sm:$0xff] }
 0x7b7   : > { %v7289_v47 = vcombine.high %v5181_v2, %v5185_v6  ;;  %v7291_v13 = vcombine.high %v5182_v9, %v5186_v18  ;;  %v5145_v4 = vld [vmem:[%s10387_s11 + $0x270] sm:$0xff]  ;;  %v7240_v62 = vcombine.low %v5133_v5, %v5137_v22 }
 0x7b8   : > { %5962 = vmatpush1.bf16.msra.mxu1 %v7224_v35  ;;  %6003 = vmatpush1.bf16.msra.mxu0 %v7226_v3  ;;  %v5174_v35 = vld [vmem:[%s10387_s11 + $0x358] sm:$0xff]  ;;  %v7249_v51 = vcombine.high %v5141_v55, %v5145_v4 }
 0x7b9   : > { %5963 = vmatprep.subr.bf16.mxu1 %v7217_v7  ;;  %6004 = vmatprep.subr.bf16.mxu0 %v7219_v17  ;;  %v5178_v3 = vld [vmem:[%s10387_s11 + $0x378] sm:$0xff]  ;;  %v7288_v7 = vcombine.low %v5181_v2, %v5185_v6  ;;  %v7290_v17 = vcombine.low %v5182_v9, %v5186_v18  ;;  %v8037_v2 = vld [vmem:[%s10389_s13 + $0x68] sm:$0xff]   ;;  %v8040_v9 = vld [vmem:[%s10389_s13 + $0x20] sm:$0xff]  }
 0x7ba   : > { %v7283_v14 = vcombine.high %v5174_v35, %v5178_v3  ;;  %v8038_v6 = vld [vmem:[%s10389_s13 + $0x28] sm:$0xff]   ;;  %v8041_v18 = vld [vmem:[%s10389_s13 + $0x58] sm:$0xff]  }
 0x7bc   : > { %5964 = vmatpush1.bf16.msra.mxu1 %v7216_v20  ;;  %6005 = vmatpush1.bf16.msra.mxu0 %v7218_v58  ;;  %v5166_v20 = vld [vmem:[%s10387_s11 + $0x318] sm:$0xff] }
 0x7bd   : > { %5965 = vmatprep.subr.bf16.mxu1 %v7209_v23  ;;  %6006 = vmatprep.subr.bf16.mxu0 %v7211_v37  ;;  %v5170_v58 = vld [vmem:[%s10387_s11 + $0x338] sm:$0xff]  ;;  %v7280_v23 = vcombine.low %v5173_v56, %v5177_v0  ;;  %v7282_v37 = vcombine.low %v5174_v35, %v5178_v3  ;;  %v8046_v56 = vld [vmem:[%s10389_s13 + $0x8] sm:$0xff]   ;;  %v8047_v0 = vld [vmem:[%s10389_s13 + $0x40] sm:$0xff]  }
 0x7be   : > { %v7275_v26 = vcombine.high %v5166_v20, %v5170_v58  ;;  %v8048_v35 = vld [vmem:[%s10389_s13] sm:$0xff]   ;;  %v8049_v3 = vld [vmem:[%s10389_s13 + $0xf8] sm:$0xff]  }
 0x7c0   : > { %5966 = vmatpush1.bf16.msra.mxu1 %v7208_v28  ;;  %6007 = vmatpush1.bf16.msra.mxu0 %v7210_v29  ;;  %v5158_v28 = vld [vmem:[%s10387_s11 + $0x2d8] sm:$0xff] }
 0x7c1   : > { %5967 = vmatprep.subr.bf16.mxu1 %v7201_v52  ;;  %6008 = vmatprep.subr.bf16.mxu0 %v7203_v24  ;;  %v5162_v29 = vld [vmem:[%s10387_s11 + $0x2f8] sm:$0xff]  ;;  %v7272_v52 = vcombine.low %v5165_v34, %v5169_v1  ;;  %v7274_v24 = vcombine.low %v5166_v20, %v5170_v58  ;;  %v8073_v34 = vld [vmem:[%s10389_s13 + $0x168] sm:$0xff]   ;;  %v8077_v20 = vld [vmem:[%s10389_s13 + $0x160] sm:$0xff]  }
 0x7c2   : > { %v7267_v33 = vcombine.high %v5158_v28, %v5162_v29  ;;  %v8075_v1 = vld [vmem:[%s10389_s13 + $0x128] sm:$0xff]   ;;  %v8079_v58 = vld [vmem:[%s10389_s13 + $0x120] sm:$0xff]  }
 0x7c4   : > { %5968 = vmatpush1.bf16.msra.mxu1 %v7200_v30  ;;  %6009 = vmatpush1.bf16.msra.mxu0 %v7202_v40  ;;  %v5150_v30 = vld [vmem:[%s10387_s11 + $0x298] sm:$0xff] }
 0x7c5   : > { %5969 = vmatprep.subr.bf16.mxu1 %v7193_v44  ;;  %6010 = vmatprep.subr.bf16.mxu0 %v7195_v15  ;;  %v5154_v40 = vld [vmem:[%s10387_s11 + $0x2b8] sm:$0xff]  ;;  %v7264_v44 = vcombine.low %v5157_v36, %v5161_v27  ;;  %v7266_v15 = vcombine.low %v5158_v28, %v5162_v29  ;;  %v8089_v36 = vld [vmem:[%s10389_s13 + $0x148] sm:$0xff]   ;;  %v8093_v28 = vld [vmem:[%s10389_s13 + $0x140] sm:$0xff]  }
 0x7c6   : > { %v7259_v54 = vcombine.high %v5150_v30, %v5154_v40  ;;  %v8091_v27 = vld [vmem:[%s10389_s13 + $0x108] sm:$0xff]   ;;  %v8095_v29 = vld [vmem:[%s10389_s13 + $0x100] sm:$0xff]  }
 0x7c8   : > { %5970 = vmatpush1.bf16.msra.mxu1 %v7192_v49  ;;  %6011 = vmatpush1.bf16.msra.mxu0 %v7194_v63  ;;  %v5142_v49 = vld [vmem:[%s10387_s11 + $0x258] sm:$0xff] }
 0x7c9   : > { %5971 = vmatprep.subr.bf16.mxu1 %v7185_v48  ;;  %6012 = vmatprep.subr.bf16.mxu0 %v7187_v50  ;;  %v5146_v63 = vld [vmem:[%s10387_s11 + $0x278] sm:$0xff]  ;;  %v7256_v48 = vcombine.low %v5149_v38, %v5153_v59  ;;  %v7258_v50 = vcombine.low %v5150_v30, %v5154_v40 }
 0x7ca   : > { %v7251_v53 = vcombine.high %v5142_v49, %v5146_v63 }
 0x7cc   : > { %5972 = vmatpush1.bf16.msra.mxu1 %v7184_v43  ;;  %6013 = vmatpush1.bf16.msra.mxu0 %v7186_v60  ;;  %v5134_v43 = vld [vmem:[%s10387_s11 + $0x218] sm:$0xff] }
 0x7cd   : > { %5973 = vmatprep.subr.bf16.mxu1 %v7177_v21  ;;  %6014 = vmatprep.subr.bf16.mxu0 %v7179_v57  ;;  %v5138_v60 = vld [vmem:[%s10387_s11 + $0x238] sm:$0xff]  ;;  %v7248_v21 = vcombine.low %v5141_v55, %v5145_v4  ;;  %v7250_v57 = vcombine.low %v5142_v49, %v5146_v63 }
 0x7ce   : > { %v7243_v32 = vcombine.high %v5134_v43, %v5138_v60  ;;  %v7242_v10 = vcombine.low %v5134_v43, %v5138_v60 }
 0x7d0   : > { %5974 = vmatpush1.bf16.msra.mxu1 %v7176_v39  ;;  %6015 = vmatpush1.bf16.msra.mxu0 %v7178_v8  ;;  %v8033_v39 = vld [vmem:[%s10389_s13 + $0x78] sm:$0xff]  }
 0x7d1   : > { %5975 = vmatprep.subr.bf16.mxu1 %v7297_v25  ;;  %6016 = vmatprep.subr.bf16.mxu0 %v7299_v45  ;;  %v8034_v8 = vld [vmem:[%s10389_s13 + $0x38] sm:$0xff]   ;;  %v8035_v25 = vld [vmem:[%s10389_s13 + $0x70] sm:$0xff]  }
 0x7d2   : > { %v8036_v45 = vld [vmem:[%s10389_s13 + $0x30] sm:$0xff]  }
 0x7d4   : > { %5976 = vmatpush2.bf16.msra.mxu1 %v7296_v12  ;;  %6017 = vmatpush2.bf16.msra.mxu0 %v7298_v41  ;;  %v8042_v12 = vld [vmem:[%s10389_s13 + $0x18] sm:$0xff]   ;;  %v8043_v41 = vld [vmem:[%s10389_s13 + $0x50] sm:$0xff]  }
 0x7d5   : > { %5977 = vmatprep.subr.bf16.mxu1 %v7289_v47  ;;  %6018 = vmatprep.subr.bf16.mxu0 %v7291_v13  ;;  %v8044_v47 = vld [vmem:[%s10389_s13 + $0x10] sm:$0xff]   ;;  %v8045_v13 = vld [vmem:[%s10389_s13 + $0x48] sm:$0xff]  }
 0x7d8   : > { %5978 = vmatpush2.bf16.msra.mxu1 %v7288_v7  ;;  %6019 = vmatpush2.bf16.msra.mxu0 %v7290_v17  ;;  %v8065_v7 = vld [vmem:[%s10389_s13 + $0x178] sm:$0xff]  }
 0x7d9   : > { %5979 = vmatprep.subr.bf16.mxu1 %v7281_v42  ;;  %6020 = vmatprep.subr.bf16.mxu0 %v7283_v14  ;;  %v8067_v17 = vld [vmem:[%s10389_s13 + $0x138] sm:$0xff]   ;;  %v8069_v42 = vld [vmem:[%s10389_s13 + $0x170] sm:$0xff]  }
 0x7da   : > { %v8071_v14 = vld [vmem:[%s10389_s13 + $0x130] sm:$0xff]  }
 0x7dc   : > { %5980 = vmatpush2.bf16.msra.mxu1 %v7280_v23  ;;  %6021 = vmatpush2.bf16.msra.mxu0 %v7282_v37  ;;  %v8081_v23 = vld [vmem:[%s10389_s13 + $0x158] sm:$0xff]  }
 0x7dd   : > { %5981 = vmatprep.subr.bf16.mxu1 %v7273_v16  ;;  %6022 = vmatprep.subr.bf16.mxu0 %v7275_v26  ;;  %v8083_v37 = vld [vmem:[%s10389_s13 + $0x118] sm:$0xff]   ;;  %v8085_v16 = vld [vmem:[%s10389_s13 + $0x150] sm:$0xff]  }
 0x7de   : > { %v8087_v26 = vld [vmem:[%s10389_s13 + $0x110] sm:$0xff]  }
 0x7e0   : > { %5982 = vmatpush2.bf16.msra.mxu1 %v7272_v52  ;;  %6023 = vmatpush2.bf16.msra.mxu0 %v7274_v24  ;;  %v5197_v52 = vlaneseq }
 0x7e1   : > { %5983 = vmatprep.subr.bf16.mxu1 %v7265_v19  ;;  %6024 = vmatprep.subr.bf16.mxu0 %v7267_v33  ;;  %v10182_v33 = vld [vmem:[%s10388_s12] sm:$0xff] }
 0x7e2   : > { %v10176_v24 = vshrl.u32 %v5197_v52, 7 }
 0x7e4   : > { %5984 = vmatpush2.bf16.msra.mxu1 %v7264_v44  ;;  %6025 = vmatpush2.bf16.msra.mxu0 %v7266_v15  ;;  %v5199_v19 = vsub.s32 0, %v10176_v24  ;;  %v5203_v38 = vsub.s32 1, %v10176_v24  ;;  %v5211_v59 = vsub.s32 3, %v10176_v24 }
 0x7e5   : > { %5985 = vmatprep.subr.bf16.mxu1 %v7257_v46  ;;  %6026 = vmatprep.subr.bf16.mxu0 %v7259_v54 }
 0x7e6   : > { %v5200_v30 = vrot.slane %v10182_v33, %v5199_v19  ;;  %v5204_v40 = vrot.slane %v10182_v33, %v5203_v38  ;;  %v5212_v44 = vrot.slane %v10182_v33, %v5211_v59 }
 0x7e8   : > { %5986 = vmatpush2.bf16.msra.mxu1 %v7256_v48  ;;  %6027 = vmatpush2.bf16.msra.mxu0 %v7258_v50 }
 0x7e9   : > { %5987 = vmatprep.subr.bf16.mxu1 %v7249_v51  ;;  %6028 = vmatprep.subr.bf16.mxu0 %v7251_v53 }
 0x7ec   : > { %5988 = vmatpush2.bf16.msra.mxu1 %v7248_v21  ;;  %6029 = vmatpush2.bf16.msra.mxu0 %v7250_v57  ;;  %v8050_v21 = vld [vmem:[%s10389_s13 + $0xb8] sm:$0xff]  }
 0x7ed   : > { %5989 = vmatprep.subr.bf16.mxu1 %v7241_v61  ;;  %6030 = vmatprep.subr.bf16.mxu0 %v7243_v32  ;;  %v8051_v61 = vld [vmem:[%s10389_s13 + $0xf0] sm:$0xff]  }
 0x7f0   : > { %5990 = vmatpush2.bf16.msra.mxu1 %v7240_v62  ;;  %6031 = vmatpush2.bf16.msra.mxu0 %v7242_v10  ;;  %v8052_v62 = vld [vmem:[%s10389_s13 + $0xb0] sm:$0xff]   ;;  %v8053_v10 = vld [vmem:[%s10389_s13 + $0xe8] sm:$0xff]  }
 0x7f1   : > { %7507 = vmatprep.subr.bf16.mxu1 %v8033_v39  ;;  %7551 = vmatprep.subr.bf16.mxu0 %v8065_v7  ;;  %v8054_v39 = vld [vmem:[%s10389_s13 + $0xa8] sm:$0xff]  }
 0x7f3   : > { %5992 = vmatmul.mubr.bf16.vlgmr.msra.gmra.mxu1 %v9902_v11  ;;  %6033 = vmatmul.mubr.bf16.vlgmr.msra.gmra.mxu0 %v9902_v11  ;;  %v8039_v11 = vld [vmem:[%s10389_s13 + $0x60] sm:$0xff]  }
 0x7f4   : > { %7508 = vmatpush3.bf16.msra.mxu1 %v8034_v8  ;;  %7552 = vmatpush3.bf16.msra.mxu0 %v8067_v17  ;;  %v8055_v8 = vld [vmem:[%s10389_s13 + $0xe0] sm:$0xff]   ;;  %v8070_v17 = vld [vmem:[%s10389_s13 + $0x1f0] sm:$0xff]  }
 0x7f5   : > { %7509 = vmatprep.subr.bf16.mxu1 %v8035_v25  ;;  %7553 = vmatprep.subr.bf16.mxu0 %v8069_v42  ;;  %v8056_v25 = vld [vmem:[%s10389_s13 + $0xa0] sm:$0xff]   ;;  %v8072_v42 = vld [vmem:[%s10389_s13 + $0x1b0] sm:$0xff]  }
 0x7f8   : > { %7510 = vmatpush3.bf16.msra.mxu1 %v8036_v45  ;;  %7554 = vmatpush3.bf16.msra.mxu0 %v8071_v14  ;;  %v8057_v45 = vld [vmem:[%s10389_s13 + $0xd8] sm:$0xff]   ;;  %v8074_v14 = vld [vmem:[%s10389_s13 + $0x1e8] sm:$0xff]  }
 0x7f9   : > { %7511 = vmatprep.subr.bf16.mxu1 %v8037_v2  ;;  %7555 = vmatprep.subr.bf16.mxu0 %v8073_v34  ;;  %v8058_v2 = vld [vmem:[%s10389_s13 + $0x98] sm:$0xff]   ;;  %v8076_v34 = vld [vmem:[%s10389_s13 + $0x1a8] sm:$0xff]  }
 0x7fc   : > { %7512 = vmatpush3.bf16.msra.mxu1 %v8038_v6  ;;  %7556 = vmatpush3.bf16.msra.mxu0 %v8075_v1  ;;  %v5207_v6 = vsub.s32 2, %v10176_v24  ;;  %v8078_v1 = vld [vmem:[%s10389_s13 + $0x1e0] sm:$0xff]  }
 0x7fd   : > { %7513 = vmatprep.subr.bf16.mxu1 %v8039_v11  ;;  %7557 = vmatprep.subr.bf16.mxu0 %v8077_v20  ;;  %v8059_v11 = vld [vmem:[%s10389_s13 + $0xd0] sm:$0xff]   ;;  %v8080_v20 = vld [vmem:[%s10389_s13 + $0x1a0] sm:$0xff]  }
 0x800   : > { %7514 = vmatpush3.bf16.msra.mxu1 %v8040_v9  ;;  %7558 = vmatpush3.bf16.msra.mxu0 %v8079_v58  ;;  %v8060_v9 = vld [vmem:[%s10389_s13 + $0x90] sm:$0xff]   ;;  %v8082_v58 = vld [vmem:[%s10389_s13 + $0x1d8] sm:$0xff]  }
 0x801   : > { %7515 = vmatprep.subr.bf16.mxu1 %v8041_v18  ;;  %7559 = vmatprep.subr.bf16.mxu0 %v8081_v23  ;;  %v5208_v18 = vrot.slane %v10182_v33, %v5207_v6  ;;  %v8084_v23 = vld [vmem:[%s10389_s13 + $0x198] sm:$0xff]  }
 0x804   : > { %7516 = vmatpush3.bf16.msra.mxu1 %v8042_v12  ;;  %7560 = vmatpush3.bf16.msra.mxu0 %v8083_v37  ;;  %v8061_v12 = vld [vmem:[%s10389_s13 + $0xc8] sm:$0xff]   ;;  %v8086_v37 = vld [vmem:[%s10389_s13 + $0x1d0] sm:$0xff]  }
 0x805   : > { %7517 = vmatprep.subr.bf16.mxu1 %v8043_v41  ;;  %7561 = vmatprep.subr.bf16.mxu0 %v8085_v16  ;;  %v8062_v41 = vld [vmem:[%s10389_s13 + $0x88] sm:$0xff]   ;;  %v5215_v16 = vsub.s32 4, %v10176_v24 }
 0x807   : > { %v5216_v52 = vrot.slane %v10182_v33, %v5215_v16 }
 0x808   : > { %7518 = vmatpush3.bf16.msra.mxu1 %v8044_v47  ;;  %7562 = vmatpush3.bf16.msra.mxu0 %v8087_v26  ;;  %v5223_v26 = vsub.s32 6, %v10176_v24 }
 0x809   : > { %7519 = vmatprep.subr.bf16.mxu1 %v8045_v13  ;;  %7563 = vmatprep.subr.bf16.mxu0 %v8089_v36  ;;  %v8063_v13 = vld [vmem:[%s10389_s13 + $0xc0] sm:$0xff]   ;;  %v8088_v36 = vld [vmem:[%s10389_s13 + $0x190] sm:$0xff]  }
 0x80a   : > { %v5224_v19 = vrot.slane %v10182_v33, %v5223_v26 }
 0x80c   : > { %7520 = vmatpush3.bf16.msra.mxu1 %v8046_v56  ;;  %7564 = vmatpush3.bf16.msra.mxu0 %v8091_v27  ;;  %v8064_v56 = vld [vmem:[%s10389_s13 + $0x80] sm:$0xff]   ;;  %v5219_v27 = vsub.s32 5, %v10176_v24 }
 0x80d   : > { %7521 = vmatprep.subr.bf16.mxu1 %v8047_v0  ;;  %7565 = vmatprep.subr.bf16.mxu0 %v8093_v28  ;;  %v5227_v28 = vsub.s32 7, %v10176_v24 }
 0x80e   : > { %v5220_v38 = vrot.slane %v10182_v33, %v5219_v27 }
 0x80f   : > { %v5228_v59 = vrot.slane %v10182_v33, %v5227_v28  ;;  %v8096_v33 = vld [vmem:[%s10389_s13 + $0x180] sm:$0xff]  }
 0x810   : > { %7522 = vmatpush3.bf16.msra.mxu1 %v8048_v35  ;;  %7566 = vmatpush3.bf16.msra.mxu0 %v8095_v29  ;;  %v8066_v35 = vld [vmem:[%s10389_s13 + $0x1f8] sm:$0xff]   ;;  %v8090_v29 = vld [vmem:[%s10389_s13 + $0x1c8] sm:$0xff]   ;;  %v7365_v28 = vld [vmem:[%s10392_s16] ss:$0 sm:$0xff] }
 0x811   : > { %7529 = vmatprep.subr.bf16.mxu1 %v8049_v3  ;;  %7860 = vmatprep.subr.bf16.mxu0 %v8168_v31  ;;  %v8068_v3 = vld [vmem:[%s10389_s13 + $0x1b8] sm:$0xff]  }
 0x873   : > { %v5911_v15 = vpop.f32.mrf.mxu1  ;;  %v5952_v46 = vpop.f32.mrf.mxu0 }
 0x874   : > { %v5912_v54 = vadd.f32 %v5911_v15, %v5200_v30  ;;  %v5953_v47 = vadd.f32 %v5952_v46, %v5208_v18  ;;  %v8092_v30 = vld [vmem:[%s10389_s13 + $0x188] sm:$0xff]  }
 0x875   : > { %v5913_v55 = vpop.f32.mrf.mxu1  ;;  %v5954_v4 = vpop.f32.mrf.mxu0 }
 0x876   : > { %v5914_v49 = vadd.f32 %v5913_v55, %v5204_v40  ;;  %v5955_v63 = vadd.f32 %v5954_v4, %v5212_v44  ;;  %v6041_v48 = vmax.f32 %v5912_v54, 0.0  ;;  %v6043_v0 = vmax.f32 %v5953_v47, 0.0  ;;  %v8094_v44 = vld [vmem:[%s10389_s13 + $0x1c0] sm:$0xff]  }
 0x877   : > { %v5915_v50 = vpop.f32.mrf.mxu1  ;;  %v5956_v51 = vpop.f32.mrf.mxu0 }
 0x878   : > { %v6042_v53 = vmax.f32 %v5914_v49, 0.0  ;;  %v6044_v5 = vmax.f32 %v5955_v63, 0.0  ;;  %v6049_v57 = vpack.c.bf16 %v6041_v48, %v6041_v48  ;;  %v6051_v7 = vpack.c.bf16 %v6043_v0, %v6043_v0  ;;  %v7300_v0 = vld [vmem:[%s10390_s14] ss:$0 sm:$0xff] }
 0x879   : > { %v5916_v22 = vpop.f32.mrf.mxu1  ;;  %v5957_v43 = vpop.f32.mrf.mxu0 }
 0x87a   : > { %v6050_v60 = vpack.c.bf16 %v6042_v53, %v6042_v53  ;;  %v6052_v32 = vpack.c.bf16 %v6044_v5, %v6044_v5 }
 0x87c   : > { %6608 = vmatprep.mubr.bf16.mxu1 %v6050_v60 }
 0x87d   : > { %6609 = vmatmul.mubr.bf16.vlgmr.msra.gmra.mxu1 %v6049_v57 }
 0x87e   : > { %7530 = vmatpush3.bf16.msra.mxu1 %v8050_v21  ;;  %6648 = vmatprep.mubr.bf16.mxu1 %v6052_v32  ;;  %v8097_v32 = vld [vmem:[%s10391_s15 + $0x38] sm:$0xff]  }
 0x87f   : > { %7531 = vmatprep.subr.bf16.mxu1 %v8051_v61 }
 0x882   : > { %7532 = vmatpush3.bf16.msra.mxu1 %v8052_v62  ;;  %v8098_v62 = vld [vmem:[%s10391_s15 + $0x30] sm:$0xff]  }
 0x883   : > { %7533 = vmatprep.subr.bf16.mxu1 %v8053_v10  ;;  %v8099_v10 = vld [vmem:[%s10391_s15 + $0x28] sm:$0xff]  }
 0x886   : > { %7534 = vmatpush3.bf16.msra.mxu1 %v8054_v39  ;;  %v8100_v39 = vld [vmem:[%s10391_s15 + $0x20] sm:$0xff]  }
 0x887   : > { %7535 = vmatprep.subr.bf16.mxu1 %v8055_v8  ;;  %v8101_v8 = vld [vmem:[%s10391_s15 + $0x18] sm:$0xff]  }
 0x88a   : > { %7536 = vmatpush3.bf16.msra.mxu1 %v8056_v25  ;;  %v8102_v25 = vld [vmem:[%s10391_s15 + $0x10] sm:$0xff]  }
 0x88b   : > { %7537 = vmatprep.subr.bf16.mxu1 %v8057_v45  ;;  %v8103_v45 = vld [vmem:[%s10391_s15 + $0x8] sm:$0xff]  }
 0x88e   : > { %7538 = vmatpush3.bf16.msra.mxu1 %v8058_v2  ;;  %v8104_v2 = vld [vmem:[%s10391_s15] sm:$0xff]  }
 0x88f   : > { %7539 = vmatprep.subr.bf16.mxu1 %v8059_v11 }
 0x892   : > { %7540 = vmatpush3.bf16.msra.mxu1 %v8060_v9 }
 0x893   : > { %7541 = vmatprep.subr.bf16.mxu1 %v8061_v12 }
 0x896   : > { %7542 = vmatpush3.bf16.msra.mxu1 %v8062_v41 }
 0x897   : > { %7543 = vmatprep.subr.bf16.mxu1 %v8063_v13 }
 0x89a   : > { %7544 = vmatpush3.bf16.msra.mxu1 %v8064_v56 }
 0x89b   : > { %7573 = vmatprep.subr.bf16.mxu1 %v8066_v35 }
 0x89d   : > { %6649 = vmatmul.mubr.bf16.vlgmr.msra.gmra.mxu1 %v6051_v7 }
 0x89e   : > { %7574 = vmatpush3.bf16.msra.mxu1 %v8068_v3 }
 0x89f   : > { %7575 = vmatprep.subr.bf16.mxu1 %v8070_v17 }
 0x8a2   : > { %7576 = vmatpush3.bf16.msra.mxu1 %v8072_v42 }
 0x8a3   : > { %7577 = vmatprep.subr.bf16.mxu1 %v8074_v14 }
 0x8a6   : > { %7578 = vmatpush3.bf16.msra.mxu1 %v8076_v34 }
 0x8a7   : > { %7579 = vmatprep.subr.bf16.mxu1 %v8078_v1 }
 0x8aa   : > { %7580 = vmatpush3.bf16.msra.mxu1 %v8080_v20 }
 0x8ab   : > { %7581 = vmatprep.subr.bf16.mxu1 %v8082_v58 }
 0x8ae   : > { %7582 = vmatpush3.bf16.msra.mxu1 %v8084_v23 }
 0x8af   : > { %7583 = vmatprep.subr.bf16.mxu1 %v8086_v37 }
 0x8b2   : > { %7584 = vmatpush3.bf16.msra.mxu1 %v8088_v36 }
 0x8b3   : > { %v5993_v40 = vpop.f32.mrf.mxu1  ;;  %v6034_v24 = vpop.f32.mrf.mxu0  ;;  %7585 = vmatprep.subr.bf16.mxu1 %v8090_v29 }
 0x8b4   : > { %v5994_v15 = vadd.f32 %v5993_v40, %v5216_v52  ;;  %v6035_v46 = vadd.f32 %v6034_v24, %v5224_v19 }
 0x8b5   : > { %v5995_v54 = vpop.f32.mrf.mxu1  ;;  %v6036_v55 = vpop.f32.mrf.mxu0 }
 0x8b6   : > { %v5996_v4 = vadd.f32 %v5995_v54, %v5220_v38  ;;  %v6037_v49 = vadd.f32 %v6036_v55, %v5228_v59  ;;  %7586 = vmatpush3.bf16.msra.mxu1 %v8092_v30  ;;  %v6045_v63 = vmax.f32 %v5994_v15, 0.0  ;;  %v6047_v48 = vmax.f32 %v6035_v46, 0.0 }
 0x8b7   : > { %v5997_v50 = vpop.f32.mrf.mxu1  ;;  %v6038_v51 = vpop.f32.mrf.mxu0  ;;  %7587 = vmatprep.subr.bf16.mxu1 %v8094_v44 }
 0x8b8   : > { %v6046_v53 = vmax.f32 %v5996_v4, 0.0  ;;  %v6048_v5 = vmax.f32 %v6037_v49, 0.0  ;;  %v6053_v57 = vpack.c.bf16 %v6045_v63, %v6045_v63  ;;  %v6055_v61 = vpack.c.bf16 %v6047_v48, %v6047_v48 }
 0x8b9   : > { %v5998_v22 = vpop.f32.mrf.mxu1  ;;  %v6039_v43 = vpop.f32.mrf.mxu0 }
 0x8ba   : > { %v6054_v60 = vpack.c.bf16 %v6046_v53, %v6046_v53  ;;  %v6056_v21 = vpack.c.bf16 %v6048_v5, %v6048_v5  ;;  %7588 = vmatpush3.bf16.msra.mxu1 %v8096_v33 }
 0x8bc   : > { %6688 = vmatprep.mubr.bf16.mxu0 %v6054_v60  ;;  %6728 = vmatprep.mubr.bf16.mxu1 %v6056_v21 }
 0x8bd   : > { %6689 = vmatmul.mubr.bf16.vlgmr.msra.gmra.mxu0 %v6053_v57  ;;  %6729 = vmatmul.mubr.bf16.vlgmr.msra.gmra.mxu1 %v6055_v61 }
 0x8be   : > { %7861 = vmatpush3.bf16.msra.mxu0 %v8097_v32  ;;  %7876 = vmatprep.mubr.msk.bf16.mxu0 %vm8172_vm14, %v8168_v31 }
 0x8bf   : > { %7862 = vmatprep.subr.bf16.mxu0 %v8168_v31 }
 0x8c2   : > { %7863 = vmatpush3.bf16.msra.mxu0 %v8098_v62 }
 0x8c3   : > { %7864 = vmatprep.subr.bf16.mxu0 %v8168_v31 }
 0x8c6   : > { %7865 = vmatpush3.bf16.msra.mxu0 %v8099_v10 }
 0x8c7   : > { %7866 = vmatprep.subr.bf16.mxu0 %v8168_v31 }
 0x8ca   : > { %7867 = vmatpush3.bf16.msra.mxu0 %v8100_v39 }
 0x8cb   : > { %7868 = vmatprep.subr.bf16.mxu0 %v8168_v31 }
 0x8ce   : > { %7869 = vmatpush3.bf16.msra.mxu0 %v8101_v8 }
 0x8cf   : > { %7870 = vmatprep.subr.bf16.mxu0 %v8168_v31 }
 0x8d2   : > { %7871 = vmatpush3.bf16.msra.mxu0 %v8102_v25 }
 0x8d3   : > { %7872 = vmatprep.subr.bf16.mxu0 %v8168_v31 }
 0x8d6   : > { %7873 = vmatpush3.bf16.msra.mxu0 %v8103_v45 }
 0x8d7   : > { %7874 = vmatprep.subr.bf16.mxu0 %v8168_v31 }
 0x8da   : > { %7875 = vmatpush3.bf16.msra.mxu0 %v8104_v2 }
 0x93d   : > { %v7523_v6 = vpop.f32.mrf.mxu1 }
 0x93f   : > { %v7524_v11 = vpop.f32.mrf.mxu1 }
 0x940   : > { %v7525_v56 = vadd.f32 %v7524_v11, %v7523_v6 }
 0x941   : > { %v7526_v9 = vpop.f32.mrf.mxu1 }
 0x942   : > { %v6611_v17 = vadd.f32 %v7525_v56, %v7300_v0 }
 0x943   : > { %v7527_v18 = vpop.f32.mrf.mxu1 }
 0x95d   : > { %v7545_v12 = vpop.f32.mrf.mxu1 }
 0x95f   : > { %v7546_v41 = vpop.f32.mrf.mxu1 }
 0x960   : > { %v7547_v35 = vadd.f32 %v7546_v41, %v7545_v12 }
 0x961   : > { %v7548_v47 = vpop.f32.mrf.mxu1 }
 0x962   : > { %v6651_v14 = vadd.f32 %v7547_v35, %v6611_v17 }
 0x963   : > { %v7549_v13 = vpop.f32.mrf.mxu1 }
 0x97d   : > { %v7567_v3 = vpop.f32.mrf.mxu0  ;;  %v7589_v7 = vpop.f32.mrf.mxu1 }
 0x97f   : > { %v7568_v42 = vpop.f32.mrf.mxu0  ;;  %v7590_v31 = vpop.f32.mrf.mxu1 }
 0x980   : > { %v7569_v34 = vadd.f32 %v7568_v42, %v7567_v3  ;;  %v7591_v23 = vadd.f32 %v7590_v31, %v7589_v7 }
 0x981   : > { %v7570_v1 = vpop.f32.mrf.mxu0  ;;  %v7592_v20 = vpop.f32.mrf.mxu1 }
 0x982   : > { %v6691_v58 = vadd.f32 %v7569_v34, %v6651_v14 }
 0x983   : > { %v7571_v37 = vpop.f32.mrf.mxu0  ;;  %v7593_v16 = vpop.f32.mrf.mxu1 }
 0x984   : > { %v6731_v26 = vadd.f32 %v7591_v23, %v6691_v58 }
 0x986   : > { %v6736_v36 = vmax.f32 %v6731_v26, 0.0 }
 0x988   : > { %v6737_v27 = vpack.c.bf16 %v6736_v36, %v6736_v36 }
 0x98a   : > { %7877 = vmatmul.mubr.bf16.vlgmr.msra.gmra.mxu0 %v6737_v27 }
 0xa4a   : > { %v6843_v29 = vpop.f32.mrf.mxu0 }
 0xa4b   : > { %v6844_v52 = vadd.f32 %v7365_v28, %v6843_v29 }
 0xa4c   : > { %v7878_v19 = vpop.f32.mrf.mxu0 }
 0xa4d   : > { %6849 = vst [vmem:[%s544_s22] sm:$0xff] %v6844_v52 }
 0xa4e   : > { %v6846_v38 = vpop.f32.mrf.mxu0 }
 0xa4f   : > { %8119 = shalt.err (!%p8116_p3)
}
 0xa50   : > { %s8120_s18 = scalar_lea.hbm %s10335_s0, 128  ;;  %s8124_s19 = scalar_lea.hbm %s10393_s17, 256 }
 0xa51   : > { %p8121_p4 = scmp.ne.s32.totalorder %s10335_s0, %s8120_s18  ;;  %p8125_p9 = scmp.lt.s32.totalorder %s10335_s0, %s10393_s17 }
 0xa52   : > { %p8126_p10 = scmp.lt.s32.totalorder %s8124_s19, %s8120_s18 }
 0xa53   : > { %p8122_p7 = pnand %p8121_p4, %p8302_p5 }
 0xa54   : > { %p8127_p11 = por %p8126_p10, %p8125_p9 }
 0xa55   : > { %p8123_p8 = pneg %p8122_p7 }
 0xa57   : > { %p8128_p12 = pnand %p8127_p11, %p8123_p8 }
 0xa59   : > { %8131 = shalt.err (!%p8128_p12)
}
 0xa5a   : > { %7880 = dma.vmem_to_hbm [thread:$0]  (%p8302_p5), %s10337_s24, 128, %s10335_s0, %s6851_s30   ;;  %v7879_v59 = vpop.f32.mrf.mxu0 }
 0xa5b PF: > { %s10415_s21 = sld [smem:[#allocation9_spill]]  ;;  %p7886_p13 = scmp.ge.s32.totalorder %s8166_s27, 2 }
 0xa5d   : > { %p7883_p0 = pnand %p7886_p13, %p8306_p6 }
 0xa5f   : > { %p7884_p1 = pneg %p7883_p0 }
 0xa61   : > { %s6876_s26 = sand.u32 1, %s10415_s21  }
 0xa62   : > { %s6877_s2 = scalar_lea.sflag [#allocation7], %s6876_s26 }
 0xa63   : > { %8149 = dma.done.wait (%p7884_p1), %s6877_s2, 128  }
 0xa64   : > { %8151 = vsyncadd (%p7884_p1), %s6877_s2, 4294967168  ;;  %s10417_s27 = sld [smem:[#allocation11_spill]]  ;;  %s10420_s24 = smov %s8158_s25 }
 0xa65   : > { %s10418_s18 = sld [smem:[#allocation10_spill]] }
 0xa66   : > { %s10419_s26 = sld [smem:[#allocation12_spill]] }
 0xa6a   : > { %p27_p2 = scmp.ge.s32.totalorder %s10417_s27, 4  }
 0xa6b   : > { %s10421_s25 = smov %s10418_s18 }
 0xa6c   :  { %29 = sbr.rel (!%p27_p2) target bundleno = 7 (0x7), region = 379 }
 0xa71   :  { %6882 = vsyncpa [#allocation7], 1 }
 0xa72   :  { %6884 = vsyncpa [#allocation7 + $0x1], 1 }

</bundles_post_ra>
